<compile_context>
chip_gen: v7x
topology: tpu7x:2x2x1
jax: 0.10.0
libtpu: 0.0.40
codegen_flags: <defaults>
</compile_context>

<pallas_src>
import functools
import numpy as np
import jax
import jax.numpy as jnp
from jax.experimental import pallas as pl
from jax.experimental.pallas import tpu as pltpu

_EPS = 1e-5
# Explicit scoped-VMEM cap; tiles here are ~1 MB so this is safe on v5e/v6e/v7x.
_VMEM_LIMIT = 32 * 1024 * 1024


def _rup128(c):
    return ((c + 127) // 128) * 128


def _pick_tile(m, cap=256):
    """Largest power-of-two row tile <= cap dividing m (else the full extent)."""
    t = cap
    while t > 8 and m % t != 0:
        t //= 2
    return t if m % t == 0 else m


# --------------------------- BatchNorm statistics ----------------------------

def _bn_stats_kernel(x_ref, stat_ref, acc_ref):
    i = pl.program_id(0)

    @pl.when(i == 0)
    def _():
        acc_ref[...] = jnp.zeros_like(acc_ref)

    x = x_ref[...]
    s = jnp.sum(x, axis=0, keepdims=True)
    q = jnp.sum(x * x, axis=0, keepdims=True)
    acc_ref[...] += jnp.concatenate([s, q], axis=0)

    @pl.when(i == pl.num_programs(0) - 1)
    def _():
        stat_ref[...] = acc_ref[...]


def bn_stats(x2):
    """Per-channel [sum; sum-of-squares] of an [M, C] f32 array (tiled reduction)."""
    m, c = x2.shape
    tm = _pick_tile(m)
    return pl.pallas_call(
        _bn_stats_kernel,
        out_shape=jax.ShapeDtypeStruct((2, c), jnp.float32),
        grid=(m // tm,),
        in_specs=[pl.BlockSpec((tm, c), lambda i: (i, 0))],
        out_specs=pl.BlockSpec((2, c), lambda i: (0, 0)),
        scratch_shapes=[pltpu.VMEM((2, c), jnp.float32)],
        compiler_params=pltpu.CompilerParams(
            dimension_semantics=("arbitrary",),
            vmem_limit_bytes=_VMEM_LIMIT),
    )(x2)


def _bn_scale_shift(stats, count, gamma, beta):
    """Fold batch statistics + affine params into per-channel scale/shift (f32)."""
    mean = stats[0] / count
    var = jnp.maximum(stats[1] / count - mean * mean, 0.0)
    rstd = jax.lax.rsqrt(var + _EPS)
    scale = gamma * rstd
    shift = beta - mean * scale
    return scale, shift


# ------------------------- fused BN-apply + ReLU ------------------------------

def _bn_act_kernel(x_ref, s_ref, b_ref, o_ref):
    y = x_ref[...] * s_ref[...] + b_ref[...]
    o_ref[...] = jnp.maximum(y, 0.0).astype(o_ref.dtype)


def bn_act(x2, scale, shift):
    """relu(x * scale + shift) -> bf16, row-tiled, 'parallel' grid."""
    m, c = x2.shape
    tm = _pick_tile(m)
    return pl.pallas_call(
        _bn_act_kernel,
        out_shape=jax.ShapeDtypeStruct((m, c), jnp.bfloat16),
        grid=(m // tm,),
        in_specs=[pl.BlockSpec((tm, c), lambda i: (i, 0)),
                  pl.BlockSpec((1, c), lambda i: (0, 0)),
                  pl.BlockSpec((1, c), lambda i: (0, 0))],
        out_specs=pl.BlockSpec((tm, c), lambda i: (i, 0)),
        compiler_params=pltpu.CompilerParams(
            dimension_semantics=("parallel",),
            vmem_limit_bytes=_VMEM_LIMIT),
    )(x2, scale.reshape(1, c).astype(jnp.float32),
      shift.reshape(1, c).astype(jnp.float32))


# ---------------------- tiled matmul + bias (1x1 shortcut) --------------------

def _matmul_bias_kernel(a_ref, w_ref, b_ref, o_ref):
    o_ref[...] = (jnp.dot(a_ref[...], w_ref[...],
                          preferred_element_type=jnp.float32)
                  + b_ref[...]).astype(o_ref.dtype)


def matmul_bias(a, w, bias):
    """[M,K]@[K,N] + bias. bf16 operands, f32 accumulate, M-tiled, weight resident."""
    m, k = a.shape
    nn = w.shape[1]
    tm = _pick_tile(m)
    return pl.pallas_call(
        _matmul_bias_kernel,
        out_shape=jax.ShapeDtypeStruct((m, nn), jnp.float32),
        grid=(m // tm,),
        in_specs=[pl.BlockSpec((tm, k), lambda i: (i, 0)),
                  pl.BlockSpec((k, nn), lambda i: (0, 0)),
                  pl.BlockSpec((1, nn), lambda i: (0, 0))],
        out_specs=pl.BlockSpec((tm, nn), lambda i: (i, 0)),
        compiler_params=pltpu.CompilerParams(
            dimension_semantics=("parallel",),
            vmem_limit_bytes=_VMEM_LIMIT),
    )(a, w, bias.reshape(1, nn).astype(jnp.float32))


# ---------------- in-kernel 3x3 conv (shift-accumulate on the MXU) ------------

def conv3x3(act, w9, bias, stride, shortcut=None):
    """3x3 conv, padding=1, stride in {1,2}, on an NHWC bf16 activation.

    Computed fully in-kernel as 9 accumulated shifted-slice matmuls over a
    VMEM-resident (spatially padded) image; conv bias and the optional residual
    `shortcut` ([N, Ho*Wo, Cout] f32) are fused into the epilogue.
    Returns [N, Ho*Wo, Cout] f32.  (Per-image grid: fine for CIFAR-scale feature
    maps; tile rows with a halo for very large images.)
    """
    n, h, w, ci = act.shape
    co = w9.shape[-1]
    ho = (h - 1) // stride + 1
    wo = (w - 1) // stride + 1
    m = ho * wo

    a_pad = jnp.pad(act, ((0, 0), (1, 1), (1, 1), (0, 0)))
    if stride == 1:
        p, hh, wh = 1, h + 2, w + 2
        phases = a_pad                                   # [n, h+2, w+2, ci]
        taps = [(0, dy, dx) for dy in range(3) for dx in range(3)]
    else:
        assert stride == 2 and h % 2 == 0 and w % 2 == 0, "stride-2 assumes even H, W"
        p, hh, wh = 4, (h + 2) // 2, (w + 2) // 2
        phases = jnp.stack([a_pad[:, pp::2, qq::2, :]
                            for pp in (0, 1) for qq in (0, 1)], axis=1)
        phases = phases.reshape(n * p, hh, wh, ci)       # unit-stride per phase
        taps = [((dy % 2) * 2 + (dx % 2), dy // 2, dx // 2)
                for dy in range(3) for dx in range(3)]

    has_shortcut = shortcut is not None

    def kernel(x_ref, w_ref, b_ref, *rest):
        if has_shortcut:
            sc_ref, o_ref = rest
        else:
            (o_ref,) = rest

        def tap(t):
            ph, r0, c0 = taps[t]
            patch = x_ref[ph, r0:r0 + ho, c0:c0 + wo, :].reshape(m, ci)
            return jnp.dot(patch, w_ref[t], preferred_element_type=jnp.float32)

        acc = tap(0)
        for t in range(1, 9):
            acc = acc + tap(t)
        y = acc + b_ref[...]                 # fused conv bias (f32)
        if has_shortcut:
            y = y + sc_ref[0]                # fused residual add (f32)
        o_ref[0] = y.astype(o_ref.dtype)

    in_specs = [pl.BlockSpec((p, hh, wh, ci), lambda i: (i, 0, 0, 0)),
                pl.BlockSpec((9, ci, co), lambda i: (0, 0, 0)),
                pl.BlockSpec((1, co), lambda i: (0, 0))]
    args = [phases, w9, bias.reshape(1, co).astype(jnp.float32)]
    if has_shortcut:
        in_specs.append(pl.BlockSpec((1, m, co), lambda i: (i, 0, 0)))
        args.append(shortcut)

    return pl.pallas_call(
        kernel,
        out_shape=jax.ShapeDtypeStruct((n, m, co), jnp.float32),
        grid=(n,),
        in_specs=in_specs,
        out_specs=pl.BlockSpec((1, m, co), lambda i: (i, 0, 0)),
        compiler_params=pltpu.CompilerParams(
            dimension_semantics=("parallel",),
            vmem_limit_bytes=_VMEM_LIMIT),
    )(*args)


# --------------------------------- parameters ---------------------------------

def init_params(key, in_planes, planes, stride):
    """Raw parameters in PyTorch layout (Conv2d OIHW weights, BN gamma/beta)."""
    ks = jax.random.split(key, 10)

    def uni(k, shape, fan_in):
        b = 1.0 / np.sqrt(fan_in)
        return jax.random.uniform(k, shape, jnp.float32, -b, b)

    p = {
        'in_planes': in_planes, 'planes': planes, 'stride': stride,
        'has_shortcut': stride != 1 or in_planes != planes,
        'bn1_g': 1.0 + 0.1 * jax.random.normal(ks[0], (in_planes,), jnp.float32),
        'bn1_b': 0.1 * jax.random.normal(ks[1], (in_planes,), jnp.float32),
        'w1': uni(ks[2], (planes, in_planes, 3, 3), 9 * in_planes),
        'b1': uni(ks[3], (planes,), 9 * in_planes),
        'bn2_g': 1.0 + 0.1 * jax.random.normal(ks[4], (planes,), jnp.float32),
        'bn2_b': 0.1 * jax.random.normal(ks[5], (planes,), jnp.float32),
        'w2': uni(ks[6], (planes, planes, 3, 3), 9 * planes),
        'b2': uni(ks[7], (planes,), 9 * planes),
    }
    if p['has_shortcut']:
        p['w_sc'] = uni(ks[8], (planes, in_planes, 1, 1), in_planes)
        p['b_sc'] = uni(ks[9], (planes,), in_planes)
    return p


def _pad_vec(v, cp):
    # zero-pad => padded channels get gamma=0 / beta=0 / bias=0 and stay exactly 0.
    return jnp.pad(v.astype(jnp.float32), (0, cp - v.shape[0]))


def _pack_conv3(w_oihw, cpi, cpo):
    co, ci, _, _ = w_oihw.shape
    w = jnp.transpose(w_oihw, (2, 3, 1, 0))                        # [3,3,Ci,Co]
    w = jnp.pad(w, ((0, 0), (0, 0), (0, cpi - ci), (0, cpo - co)))
    return w.reshape(9, cpi, cpo).astype(jnp.bfloat16)


def pack_params(raw):
    """Pad channels to multiples of 128 (lane-dense) and cast conv weights to bf16."""
    cpi = _rup128(raw['in_planes'])
    cpo = _rup128(raw['planes'])
    pk = {
        'in_planes': raw['in_planes'], 'planes': raw['planes'],
        'stride': raw['stride'], 'has_shortcut': raw['has_shortcut'],
        'cpi': cpi, 'cpo': cpo,
        'bn1_g': _pad_vec(raw['bn1_g'], cpi), 'bn1_b': _pad_vec(raw['bn1_b'], cpi),
        'w1': _pack_conv3(raw['w1'], cpi, cpo), 'b1': _pad_vec(raw['b1'], cpo),
        'bn2_g': _pad_vec(raw['bn2_g'], cpo), 'bn2_b': _pad_vec(raw['bn2_b'], cpo),
        'w2': _pack_conv3(raw['w2'], cpo, cpo), 'b2': _pad_vec(raw['b2'], cpo),
    }
    if raw['has_shortcut']:
        wsc = jnp.transpose(raw['w_sc'][:, :, 0, 0], (1, 0))       # [Ci, Co]
        wsc = jnp.pad(wsc, ((0, cpi - wsc.shape[0]), (0, cpo - wsc.shape[1])))
        pk['w_sc'] = wsc.astype(jnp.bfloat16)
        pk['b_sc'] = _pad_vec(raw['b_sc'], cpo)
    return pk


# ---------------------------------- forward -----------------------------------

def preact_block_forward(p, x_nchw):
    """PreActBlock.forward (training-mode BN), NCHW in / NCHW out."""
    n, cin, h, w = x_nchw.shape
    cpi, cpo, stride = p['cpi'], p['cpo'], p['stride']
    ho = (h - 1) // stride + 1
    wo = (w - 1) // stride + 1

    # NCHW -> NHWC (channels on the lane axis), zero-pad channels to 128.
    x = jnp.transpose(x_nchw.astype(jnp.float32), (0, 2, 3, 1))
    x = jnp.pad(x, ((0, 0), (0, 0), (0, 0), (0, cpi - cin)))

    # --- BN1 + ReLU (tiled stats pass + fused scale/shift/relu, bf16 out) ---
    x2 = x.reshape(n * h * w, cpi)
    st1 = bn_stats(x2)
    s1, t1 = _bn_scale_shift(st1, n * h * w, p['bn1_g'], p['bn1_b'])
    a1 = bn_act(x2, s1, t1).reshape(n, h, w, cpi)

    # --- conv1: 3x3, stride, bias fused in-kernel ---
    y1 = conv3x3(a1, p['w1'], p['b1'], stride)                 # [n, ho*wo, cpo] f32

    # --- shortcut: applied to the raw input x, as in the reference forward ---
    if p['has_shortcut']:
        xs = x[:, ::stride, ::stride, :].reshape(n * ho * wo, cpi)
        sc = matmul_bias(xs.astype(jnp.bfloat16), p['w_sc'], p['b_sc'])
        sc = sc.reshape(n, ho * wo, cpo)
    else:
        sc = x.reshape(n, h * w, cpi)                          # cpi == cpo here

    # --- BN2 + ReLU ---
    m1 = n * ho * wo
    y1f = y1.reshape(m1, cpo)
    st2 = bn_stats(y1f)
    s2, t2 = _bn_scale_shift(st2, m1, p['bn2_g'], p['bn2_b'])
    a2 = bn_act(y1f, s2, t2).reshape(n, ho, wo, cpo)

    # --- conv2: 3x3, stride 1, bias + residual add fused into the epilogue ---
    out = conv3x3(a2, p['w2'], p['b2'], 1, shortcut=sc)        # [n, ho*wo, cpo] f32
    out = out.reshape(n, ho, wo, cpo)[..., :p['planes']]
    return jnp.transpose(out, (0, 3, 1, 2))                    # back to NCHW


# ---------------------------- pure-JAX reference -------------------------------

def reference_forward(raw, x_nchw):
    """Plain-JAX mirror of PreActBlock.forward (bf16 conv operands, f32 accumulate)."""
    def bn_relu(x, g, b):
        mean = jnp.mean(x, axis=(0, 2, 3), keepdims=True)
        var = jnp.mean(jnp.square(x - mean), axis=(0, 2, 3), keepdims=True)
        y = (x - mean) * jax.lax.rsqrt(var + _EPS) * g.reshape(1, -1, 1, 1) \
            + b.reshape(1, -1, 1, 1)
        return jnp.maximum(y, 0.0)

    def conv(x, w, b, stride, pad):
        y = jax.lax.conv_general_dilated(
            x.astype(jnp.bfloat16), w.astype(jnp.bfloat16),
            (stride, stride), ((pad, pad), (pad, pad)),
            dimension_numbers=('NCHW', 'OIHW', 'NCHW'),
            preferred_element_type=jnp.float32)
        return y + b.reshape(1, -1, 1, 1)

    x = x_nchw.astype(jnp.float32)
    shortcut = (conv(x, raw['w_sc'], raw['b_sc'], raw['stride'], 0)
                if raw['has_shortcut'] else x)
    out = conv(bn_relu(x, raw['bn1_g'], raw['bn1_b']), raw['w1'], raw['b1'],
               raw['stride'], 1)
    out = conv(bn_relu(out, raw['bn2_g'], raw['bn2_b']), raw['w2'], raw['b2'], 1, 1)
    return out + shortcut


# ------------------------------------ main -------------------------------------

if __name__ == "__main__":
    # Small shapes consistent with the module: a stride-2 transition block.
    batch, in_planes, planes, stride, height, width = 2, 16, 32, 2, 16, 16

    key = jax.random.PRNGKey(0)
    k_x, k_p = jax.random.split(key)
    x = jax.random.normal(k_x, (batch, in_planes, height, width), jnp.float32)

    raw = init_params(k_p, in_planes, planes, stride)
    packed = pack_params(raw)

    fwd = jax.jit(functools.partial(preact_block_forward, packed))
    out = jax.block_until_ready(fwd(x))

    assert out.shape == (batch, planes, height // stride, width // stride), out.shape
    assert bool(jnp.all(jnp.isfinite(out)))

    ref = reference_forward(raw, x)
    assert bool(jnp.allclose(out, ref, rtol=3e-2, atol=3e-2)), \
        float(jnp.max(jnp.abs(out - ref)))

    print("KERNEL_OK")
</pallas_src>

<mosaic_0001>
module attributes {stable_mosaic.version = 11 : i64} {
  func.func @_bn_stats_kernel(%arg0: i32, %arg1: memref<256x128xf32, #tpu.memory_space<vmem>>, %arg2: memref<2x128xf32, #tpu.memory_space<vmem>>, %arg3: memref<2x128xf32, #tpu.memory_space<vmem>>) attributes {dimension_semantics = [#tpu.dimension_semantics<arbitrary>], iteration_bounds = array<i64: 2>, scalar_prefetch = 0 : i64, scratch_operands = 1 : i64, tpu.core_type = #tpu.core_type<tc>, window_params = [{transform_indices = @transform_0, window_bounds = array<i64: 256, 128>}, {pipeline_mode = #tpu.pipeline_mode<synchronous>, transform_indices = @transform_1, window_bounds = array<i64: 2, 128>}]} {
    %c0_i32 = arith.constant 0 : i32
    %0 = arith.cmpi eq, %arg0, %c0_i32 : i32
    %1 = arith.extui %0 : i1 to i32
    %c0_i32_0 = arith.constant 0 : i32
    %2 = arith.cmpi ne, %1, %c0_i32_0 : i32
    scf.if %2 {
      %cst_8 = arith.constant 0.000000e+00 : f32
      %16 = vector.broadcast %cst_8 : f32 to vector<2x128xf32>
      %c0_9 = arith.constant 0 : index
      %c0_10 = arith.constant 0 : index
      %17 = vector.load %arg3[%c0_9, %c0_10] : memref<2x128xf32, #tpu.memory_space<vmem>>, vector<2x128xf32>
      tpu.vector_store %arg3[%c0_9, %c0_10], %16 {strides = array<i32>} : memref<2x128xf32, #tpu.memory_space<vmem>>, vector<2x128xf32>,
    } else {
    }
    %c0 = arith.constant 0 : index
    %c0_1 = arith.constant 0 : index
    %3 = vector.load %arg1[%c0, %c0_1] : memref<256x128xf32, #tpu.memory_space<vmem>>, vector<256x128xf32>
    %cst = arith.constant dense<0.000000e+00> : vector<128xf32>
    %4 = vector.multi_reduction <add>, %3, %cst [0] : vector<256x128xf32> to vector<128xf32>
    %5 = vector.shape_cast %4 : vector<128xf32> to vector<1x128xf32>
    %6 = arith.mulf %3, %3 : vector<256x128xf32>
    %cst_2 = arith.constant dense<0.000000e+00> : vector<128xf32>
    %7 = vector.multi_reduction <add>, %6, %cst_2 [0] : vector<256x128xf32> to vector<128xf32>
    %8 = vector.shape_cast %7 : vector<128xf32> to vector<1x128xf32>
    %c0_3 = arith.constant 0 : index
    %c0_4 = arith.constant 0 : index
    %9 = vector.load %arg3[%c0_3, %c0_4] : memref<2x128xf32, #tpu.memory_space<vmem>>, vector<2x128xf32>
    %10 = tpu.concatenate %5, %8 in 0 : vector<1x128xf32>, vector<1x128xf32> -> vector<2x128xf32>
    %11 = arith.addf %9, %10 : vector<2x128xf32>
    %c0_5 = arith.constant 0 : index
    %c0_6 = arith.constant 0 : index
    %12 = vector.load %arg3[%c0_5, %c0_6] : memref<2x128xf32, #tpu.memory_space<vmem>>, vector<2x128xf32>
    tpu.vector_store %arg3[%c0_5, %c0_6], %11 {strides = array<i32>} : memref<2x128xf32, #tpu.memory_space<vmem>>, vector<2x128xf32>,
    %c1_i32 = arith.constant 1 : i32
    %13 = arith.cmpi eq, %arg0, %c1_i32 : i32
    %14 = arith.extui %13 : i1 to i32
    %c0_i32_7 = arith.constant 0 : i32
    %15 = arith.cmpi ne, %14, %c0_i32_7 : i32
    scf.if %15 {
      %c0_8 = arith.constant 0 : index
      %c0_9 = arith.constant 0 : index
      %16 = vector.load %arg3[%c0_8, %c0_9] : memref<2x128xf32, #tpu.memory_space<vmem>>, vector<2x128xf32>
      %c0_10 = arith.constant 0 : index
      %c0_11 = arith.constant 0 : index
      %17 = vector.load %arg2[%c0_10, %c0_11] : memref<2x128xf32, #tpu.memory_space<vmem>>, vector<2x128xf32>
      tpu.vector_store %arg2[%c0_10, %c0_11], %16 {strides = array<i32>} : memref<2x128xf32, #tpu.memory_space<vmem>>, vector<2x128xf32>,
    } else {
    }
    return
  }
  func.func @transform_0(%arg0: i32) -> (i32, i32) {
    %c0_i32 = arith.constant 0 : i32
    %c0_i32_0 = arith.constant 0 : i32
    return %arg0, %c0_i32 : i32, i32
  }
  func.func @transform_1(%arg0: i32) -> (i32, i32) {
    %c0_i32 = arith.constant 0 : i32
    %c0_i32_0 = arith.constant 0 : i32
    %c0_i32_1 = arith.constant 0 : i32
    return %c0_i32, %c0_i32_0 : i32, i32
  }
}

module attributes {stable_mosaic.version = 11 : i64} {
  func.func @_bn_act_kernel(%arg0: i32, %arg1: memref<256x128xf32, #tpu.memory_space<vmem>>, %arg2: memref<1x128xf32, #tpu.memory_space<vmem>>, %arg3: memref<1x128xf32, #tpu.memory_space<vmem>>, %arg4: memref<256x128xbf16, #tpu.memory_space<vmem>>) attributes {dimension_semantics = [#tpu.dimension_semantics<parallel>], iteration_bounds = array<i64: 2>, scalar_prefetch = 0 : i64, scratch_operands = 0 : i64, tpu.core_type = #tpu.core_type<tc>, window_params = [{transform_indices = @transform_0, window_bounds = array<i64: 256, 128>}, {pipeline_mode = #tpu.pipeline_mode<synchronous>, transform_indices = @transform_1, window_bounds = array<i64: 1, 128>}, {pipeline_mode = #tpu.pipeline_mode<synchronous>, transform_indices = @transform_2, window_bounds = array<i64: 1, 128>}, {transform_indices = @transform_3, window_bounds = array<i64: 256, 128>}]} {
    %c0 = arith.constant 0 : index
    %c0_0 = arith.constant 0 : index
    %0 = vector.load %arg1[%c0, %c0_0] : memref<256x128xf32, #tpu.memory_space<vmem>>, vector<256x128xf32>
    %c0_1 = arith.constant 0 : index
    %c0_2 = arith.constant 0 : index
    %1 = vector.load %arg2[%c0_1, %c0_2] : memref<1x128xf32, #tpu.memory_space<vmem>>, vector<1x128xf32>
    %2 = vector.broadcast %1 : vector<1x128xf32> to vector<256x128xf32>
    %3 = arith.mulf %0, %2 : vector<256x128xf32>
    %c0_3 = arith.constant 0 : index
    %c0_4 = arith.constant 0 : index
    %4 = vector.load %arg3[%c0_3, %c0_4] : memref<1x128xf32, #tpu.memory_space<vmem>>, vector<1x128xf32>
    %5 = vector.broadcast %4 : vector<1x128xf32> to vector<256x128xf32>
    %6 = arith.addf %3, %5 : vector<256x128xf32>
    %cst = arith.constant 0.000000e+00 : f32
    %7 = vector.broadcast %cst : f32 to vector<256x128xf32>
    %8 = arith.maximumf %6, %7 : vector<256x128xf32>
    %9 = arith.truncf %8 : vector<256x128xf32> to vector<256x128xbf16>
    %c0_5 = arith.constant 0 : index
    %c0_6 = arith.constant 0 : index
    %10 = vector.load %arg4[%c0_5, %c0_6] : memref<256x128xbf16, #tpu.memory_space<vmem>>, vector<256x128xbf16>
    tpu.vector_store %arg4[%c0_5, %c0_6], %9 {strides = array<i32>} : memref<256x128xbf16, #tpu.memory_space<vmem>>, vector<256x128xbf16>,
    return
  }
  func.func @transform_0(%arg0: i32) -> (i32, i32) {
    %c0_i32 = arith.constant 0 : i32
    %c0_i32_0 = arith.constant 0 : i32
    return %arg0, %c0_i32 : i32, i32
  }
  func.func @transform_1(%arg0: i32) -> (i32, i32) {
    %c0_i32 = arith.constant 0 : i32
    %c0_i32_0 = arith.constant 0 : i32
    %c0_i32_1 = arith.constant 0 : i32
    return %c0_i32, %c0_i32_0 : i32, i32
  }
  func.func @transform_2(%arg0: i32) -> (i32, i32) {
    %c0_i32 = arith.constant 0 : i32
    %c0_i32_0 = arith.constant 0 : i32
    %c0_i32_1 = arith.constant 0 : i32
    return %c0_i32, %c0_i32_0 : i32, i32
  }
  func.func @transform_3(%arg0: i32) -> (i32, i32) {
    %c0_i32 = arith.constant 0 : i32
    %c0_i32_0 = arith.constant 0 : i32
    return %arg0, %c0_i32 : i32, i32
  }
}

module attributes {stable_mosaic.version = 11 : i64} {
  func.func @kernel(%arg0: i32, %arg1: memref<4x9x9x128xbf16, #tpu.memory_space<vmem>>, %arg2: memref<9x128x128xbf16, #tpu.memory_space<vmem>>, %arg3: memref<1x128xf32, #tpu.memory_space<vmem>>, %arg4: memref<1x64x128xf32, #tpu.memory_space<vmem>>) attributes {dimension_semantics = [#tpu.dimension_semantics<parallel>], iteration_bounds = array<i64: 2>, scalar_prefetch = 0 : i64, scratch_operands = 0 : i64, tpu.core_type = #tpu.core_type<tc>, window_params = [{transform_indices = @transform_0, window_bounds = array<i64: 4, 9, 9, 128>}, {pipeline_mode = #tpu.pipeline_mode<synchronous>, transform_indices = @transform_1, window_bounds = array<i64: 9, 128, 128>}, {pipeline_mode = #tpu.pipeline_mode<synchronous>, transform_indices = @transform_2, window_bounds = array<i64: 1, 128>}, {transform_indices = @transform_3, window_bounds = array<i64: 1, 64, 128>}]} {
    %c0 = arith.constant 0 : index
    %c0_0 = arith.constant 0 : index
    %c0_1 = arith.constant 0 : index
    %c0_2 = arith.constant 0 : index
    %0 = vector.load %arg1[%c0, %c0_0, %c0_1, %c0_2] : memref<4x9x9x128xbf16, #tpu.memory_space<vmem>>, vector<1x8x8x128xbf16>
    %1 = vector.shape_cast %0 : vector<1x8x8x128xbf16> to vector<8x8x128xbf16>
    %2 = vector.shape_cast %1 : vector<8x8x128xbf16> to vector<64x128xbf16>
    %c0_3 = arith.constant 0 : index
    %c0_4 = arith.constant 0 : index
    %c0_5 = arith.constant 0 : index
    %3 = vector.load %arg2[%c0_3, %c0_4, %c0_5] : memref<9x128x128xbf16, #tpu.memory_space<vmem>>, vector<1x128x128xbf16>
    %4 = vector.shape_cast %3 : vector<1x128x128xbf16> to vector<128x128xbf16>
    %cst = arith.constant dense<0.000000e+00> : vector<64x128xf32>
    %5 = tpu.matmul %2, %4, %cst {dimension_numbers = #tpu.dot_dimension_numbers<[1], [0], [0], [1], [0, 0, 1, 1], [], []>} : vector<64x128xbf16>, vector<128x128xbf16>, vector<64x128xf32> -> vector<64x128xf32>
    %c1 = arith.constant 1 : index
    %c0_6 = arith.constant 0 : index
    %c0_7 = arith.constant 0 : index
    %c0_8 = arith.constant 0 : index
    %6 = vector.load %arg1[%c1, %c0_6, %c0_7, %c0_8] : memref<4x9x9x128xbf16, #tpu.memory_space<vmem>>, vector<1x8x8x128xbf16>
    %7 = vector.shape_cast %6 : vector<1x8x8x128xbf16> to vector<8x8x128xbf16>
    %8 = vector.shape_cast %7 : vector<8x8x128xbf16> to vector<64x128xbf16>
    %c1_9 = arith.constant 1 : index
    %c0_10 = arith.constant 0 : index
    %c0_11 = arith.constant 0 : index
    %9 = vector.load %arg2[%c1_9, %c0_10, %c0_11] : memref<9x128x128xbf16, #tpu.memory_space<vmem>>, vector<1x128x128xbf16>
    %10 = vector.shape_cast %9 : vector<1x128x128xbf16> to vector<128x128xbf16>
    %cst_12 = arith.constant dense<0.000000e+00> : vector<64x128xf32>
    %11 = tpu.matmul %8, %10, %cst_12 {dimension_numbers = #tpu.dot_dimension_numbers<[1], [0], [0], [1], [0, 0, 1, 1], [], []>} : vector<64x128xbf16>, vector<128x128xbf16>, vector<64x128xf32> -> vector<64x128xf32>
    %12 = arith.addf %5, %11 : vector<64x128xf32>
    %c0_13 = arith.constant 0 : index
    %c0_14 = arith.constant 0 : index
    %c1_15 = arith.constant 1 : index
    %c0_16 = arith.constant 0 : index
    %13 = vector.load %arg1[%c0_13, %c0_14, %c1_15, %c0_16] : memref<4x9x9x128xbf16, #tpu.memory_space<vmem>>, vector<1x8x8x128xbf16>
    %14 = vector.shape_cast %13 : vector<1x8x8x128xbf16> to vector<8x8x128xbf16>
    %15 = vector.shape_cast %14 : vector<8x8x128xbf16> to vector<64x128xbf16>
    %c2 = arith.constant 2 : index
    %c0_17 = arith.constant 0 : index
    %c0_18 = arith.constant 0 : index
    %16 = vector.load %arg2[%c2, %c0_17, %c0_18] : memref<9x128x128xbf16, #tpu.memory_space<vmem>>, vector<1x128x128xbf16>
    %17 = vector.shape_cast %16 : vector<1x128x128xbf16> to vector<128x128xbf16>
    %cst_19 = arith.constant dense<0.000000e+00> : vector<64x128xf32>
    %18 = tpu.matmul %15, %17, %cst_19 {dimension_numbers = #tpu.dot_dimension_numbers<[1], [0], [0], [1], [0, 0, 1, 1], [], []>} : vector<64x128xbf16>, vector<128x128xbf16>, vector<64x128xf32> -> vector<64x128xf32>
    %19 = arith.addf %12, %18 : vector<64x128xf32>
    %c2_20 = arith.constant 2 : index
    %c0_21 = arith.constant 0 : index
    %c0_22 = arith.constant 0 : index
    %c0_23 = arith.constant 0 : index
    %20 = vector.load %arg1[%c2_20, %c0_21, %c0_22, %c0_23] : memref<4x9x9x128xbf16, #tpu.memory_space<vmem>>, vector<1x8x8x128xbf16>
    %21 = vector.shape_cast %20 : vector<1x8x8x128xbf16> to vector<8x8x128xbf16>
    %22 = vector.shape_cast %21 : vector<8x8x128xbf16> to vector<64x128xbf16>
    %c3 = arith.constant 3 : index
    %c0_24 = arith.constant 0 : index
    %c0_25 = arith.constant 0 : index
    %23 = vector.load %arg2[%c3, %c0_24, %c0_25] : memref<9x128x128xbf16, #tpu.memory_space<vmem>>, vector<1x128x128xbf16>
    %24 = vector.shape_cast %23 : vector<1x128x128xbf16> to vector<128x128xbf16>
    %cst_26 = arith.constant dense<0.000000e+00> : vector<64x128xf32>
    %25 = tpu.matmul %22, %24, %cst_26 {dimension_numbers = #tpu.dot_dimension_numbers<[1], [0], [0], [1], [0, 0, 1, 1], [], []>} : vector<64x128xbf16>, vector<128x128xbf16>, vector<64x128xf32> -> vector<64x128xf32>
    %26 = arith.addf %19, %25 : vector<64x128xf32>
    %c3_27 = arith.constant 3 : index
    %c0_28 = arith.constant 0 : index
    %c0_29 = arith.constant 0 : index
    %c0_30 = arith.constant 0 : index
    %27 = vector.load %arg1[%c3_27, %c0_28, %c0_29, %c0_30] : memref<4x9x9x128xbf16, #tpu.memory_space<vmem>>, vector<1x8x8x128xbf16>
    %28 = vector.shape_cast %27 : vector<1x8x8x128xbf16> to vector<8x8x128xbf16>
    %29 = vector.shape_cast %28 : vector<8x8x128xbf16> to vector<64x128xbf16>
    %c4 = arith.constant 4 : index
    %c0_31 = arith.constant 0 : index
    %c0_32 = arith.constant 0 : index
    %30 = vector.load %arg2[%c4, %c0_31, %c0_32] : memref<9x128x128xbf16, #tpu.memory_space<vmem>>, vector<1x128x128xbf16>
    %31 = vector.shape_cast %30 : vector<1x128x128xbf16> to vector<128x128xbf16>
    %cst_33 = arith.constant dense<0.000000e+00> : vector<64x128xf32>
    %32 = tpu.matmul %29, %31, %cst_33 {dimension_numbers = #tpu.dot_dimension_numbers<[1], [0], [0], [1], [0, 0, 1, 1], [], []>} : vector<64x128xbf16>, vector<128x128xbf16>, vector<64x128xf32> -> vector<64x128xf32>
    %33 = arith.addf %26, %32 : vector<64x128xf32>
    %c2_34 = arith.constant 2 : index
    %c0_35 = arith.constant 0 : index
    %c1_36 = arith.constant 1 : index
    %c0_37 = arith.constant 0 : index
    %34 = vector.load %arg1[%c2_34, %c0_35, %c1_36, %c0_37] : memref<4x9x9x128xbf16, #tpu.memory_space<vmem>>, vector<1x8x8x128xbf16>
    %35 = vector.shape_cast %34 : vector<1x8x8x128xbf16> to vector<8x8x128xbf16>
    %36 = vector.shape_cast %35 : vector<8x8x128xbf16> to vector<64x128xbf16>
    %c5 = arith.constant 5 : index
    %c0_38 = arith.constant 0 : index
    %c0_39 = arith.constant 0 : index
    %37 = vector.load %arg2[%c5, %c0_38, %c0_39] : memref<9x128x128xbf16, #tpu.memory_space<vmem>>, vector<1x128x128xbf16>
    %38 = vector.shape_cast %37 : vector<1x128x128xbf16> to vector<128x128xbf16>
    %cst_40 = arith.constant dense<0.000000e+00> : vector<64x128xf32>
    %39 = tpu.matmul %36, %38, %cst_40 {dimension_numbers = #tpu.dot_dimension_numbers<[1], [0], [0], [1], [0, 0, 1, 1], [], []>} : vector<64x128xbf16>, vector<128x128xbf16>, vector<64x128xf32> -> vector<64x128xf32>
    %40 = arith.addf %33, %39 : vector<64x128xf32>
    %c0_41 = arith.constant 0 : index
    %c1_42 = arith.constant 1 : index
    %c0_43 = arith.constant 0 : index
    %c0_44 = arith.constant 0 : index
    %41 = vector.load %arg1[%c0_41, %c1_42, %c0_43, %c0_44] : memref<4x9x9x128xbf16, #tpu.memory_space<vmem>>, vector<1x8x8x128xbf16>
    %42 = vector.shape_cast %41 : vector<1x8x8x128xbf16> to vector<8x8x128xbf16>
    %43 = vector.shape_cast %42 : vector<8x8x128xbf16> to vector<64x128xbf16>
    %c6 = arith.constant 6 : index
    %c0_45 = arith.constant 0 : index
    %c0_46 = arith.constant 0 : index
    %44 = vector.load %arg2[%c6, %c0_45, %c0_46] : memref<9x128x128xbf16, #tpu.memory_space<vmem>>, vector<1x128x128xbf16>
    %45 = vector.shape_cast %44 : vector<1x128x128xbf16> to vector<128x128xbf16>
    %cst_47 = arith.constant dense<0.000000e+00> : vector<64x128xf32>
    %46 = tpu.matmul %43, %45, %cst_47 {dimension_numbers = #tpu.dot_dimension_numbers<[1], [0], [0], [1], [0, 0, 1, 1], [], []>} : vector<64x128xbf16>, vector<128x128xbf16>, vector<64x128xf32> -> vector<64x128xf32>
    %47 = arith.addf %40, %46 : vector<64x128xf32>
    %c1_48 = arith.constant 1 : index
    %c1_49 = arith.constant 1 : index
    %c0_50 = arith.constant 0 : index
    %c0_51 = arith.constant 0 : index
    %48 = vector.load %arg1[%c1_48, %c1_49, %c0_50, %c0_51] : memref<4x9x9x128xbf16, #tpu.memory_space<vmem>>, vector<1x8x8x128xbf16>
    %49 = vector.shape_cast %48 : vector<1x8x8x128xbf16> to vector<8x8x128xbf16>
    %50 = vector.shape_cast %49 : vector<8x8x128xbf16> to vector<64x128xbf16>
    %c7 = arith.constant 7 : index
    %c0_52 = arith.constant 0 : index
    %c0_53 = arith.constant 0 : index
    %51 = vector.load %arg2[%c7, %c0_52, %c0_53] : memref<9x128x128xbf16, #tpu.memory_space<vmem>>, vector<1x128x128xbf16>
    %52 = vector.shape_cast %51 : vector<1x128x128xbf16> to vector<128x128xbf16>
    %cst_54 = arith.constant dense<0.000000e+00> : vector<64x128xf32>
    %53 = tpu.matmul %50, %52, %cst_54 {dimension_numbers = #tpu.dot_dimension_numbers<[1], [0], [0], [1], [0, 0, 1, 1], [], []>} : vector<64x128xbf16>, vector<128x128xbf16>, vector<64x128xf32> -> vector<64x128xf32>
    %54 = arith.addf %47, %53 : vector<64x128xf32>
    %c0_55 = arith.constant 0 : index
    %c1_56 = arith.constant 1 : index
    %c1_57 = arith.constant 1 : index
    %c0_58 = arith.constant 0 : index
    %55 = vector.load %arg1[%c0_55, %c1_56, %c1_57, %c0_58] : memref<4x9x9x128xbf16, #tpu.memory_space<vmem>>, vector<1x8x8x128xbf16>
    %56 = vector.shape_cast %55 : vector<1x8x8x128xbf16> to vector<8x8x128xbf16>
    %57 = vector.shape_cast %56 : vector<8x8x128xbf16> to vector<64x128xbf16>
    %c8 = arith.constant 8 : index
    %c0_59 = arith.constant 0 : index
    %c0_60 = arith.constant 0 : index
    %58 = vector.load %arg2[%c8, %c0_59, %c0_60] : memref<9x128x128xbf16, #tpu.memory_space<vmem>>, vector<1x128x128xbf16>
    %59 = vector.shape_cast %58 : vector<1x128x128xbf16> to vector<128x128xbf16>
    %cst_61 = arith.constant dense<0.000000e+00> : vector<64x128xf32>
    %60 = tpu.matmul %57, %59, %cst_61 {dimension_numbers = #tpu.dot_dimension_numbers<[1], [0], [0], [1], [0, 0, 1, 1], [], []>} : vector<64x128xbf16>, vector<128x128xbf16>, vector<64x128xf32> -> vector<64x128xf32>
    %61 = arith.addf %54, %60 : vector<64x128xf32>
    %c0_62 = arith.constant 0 : index
    %c0_63 = arith.constant 0 : index
    %62 = vector.load %arg3[%c0_62, %c0_63] : memref<1x128xf32, #tpu.memory_space<vmem>>, vector<1x128xf32>
    %63 = vector.broadcast %62 : vector<1x128xf32> to vector<64x128xf32>
    %64 = arith.addf %61, %63 : vector<64x128xf32>
    %c0_64 = arith.constant 0 : index
    %c0_65 = arith.constant 0 : index
    %c0_66 = arith.constant 0 : index
    %65 = vector.load %arg4[%c0_64, %c0_65, %c0_66] : memref<1x64x128xf32, #tpu.memory_space<vmem>>, vector<1x64x128xf32>
    %66 = vector.shape_cast %65 : vector<1x64x128xf32> to vector<64x128xf32>
    %67 = vector.shape_cast %64 : vector<64x128xf32> to vector<1x64x128xf32>
    tpu.vector_store %arg4[%c0_64, %c0_65, %c0_66], %67 {strides = array<i32>} : memref<1x64x128xf32, #tpu.memory_space<vmem>>, vector<1x64x128xf32>,
    return
  }
  func.func @transform_0(%arg0: i32) -> (i32, i32, i32, i32) {
    %c0_i32 = arith.constant 0 : i32
    %c0_i32_0 = arith.constant 0 : i32
    %c0_i32_1 = arith.constant 0 : i32
    %c0_i32_2 = arith.constant 0 : i32
    return %arg0, %c0_i32, %c0_i32_0, %c0_i32_1 : i32, i32, i32, i32
  }
  func.func @transform_1(%arg0: i32) -> (i32, i32, i32) {
    %c0_i32 = arith.constant 0 : i32
    %c0_i32_0 = arith.constant 0 : i32
    %c0_i32_1 = arith.constant 0 : i32
    %c0_i32_2 = arith.constant 0 : i32
    return %c0_i32, %c0_i32_0, %c0_i32_1 : i32, i32, i32
  }
  func.func @transform_2(%arg0: i32) -> (i32, i32) {
    %c0_i32 = arith.constant 0 : i32
    %c0_i32_0 = arith.constant 0 : i32
    %c0_i32_1 = arith.constant 0 : i32
    return %c0_i32, %c0_i32_0 : i32, i32
  }
  func.func @transform_3(%arg0: i32) -> (i32, i32, i32) {
    %c0_i32 = arith.constant 0 : i32
    %c0_i32_0 = arith.constant 0 : i32
    %c0_i32_1 = arith.constant 0 : i32
    return %arg0, %c0_i32, %c0_i32_0 : i32, i32, i32
  }
}

module attributes {stable_mosaic.version = 11 : i64} {
  func.func @_bn_act_kernel(%arg0: i32, %arg1: memref<128x128xf32, #tpu.memory_space<vmem>>, %arg2: memref<1x128xf32, #tpu.memory_space<vmem>>, %arg3: memref<1x128xf32, #tpu.memory_space<vmem>>, %arg4: memref<128x128xbf16, #tpu.memory_space<vmem>>) attributes {dimension_semantics = [#tpu.dimension_semantics<parallel>], iteration_bounds = array<i64: 1>, scalar_prefetch = 0 : i64, scratch_operands = 0 : i64, tpu.core_type = #tpu.core_type<tc>, window_params = [{transform_indices = @transform_0, window_bounds = array<i64: 128, 128>}, {pipeline_mode = #tpu.pipeline_mode<synchronous>, transform_indices = @transform_1, window_bounds = array<i64: 1, 128>}, {pipeline_mode = #tpu.pipeline_mode<synchronous>, transform_indices = @transform_2, window_bounds = array<i64: 1, 128>}, {transform_indices = @transform_3, window_bounds = array<i64: 128, 128>}]} {
    %c0 = arith.constant 0 : index
    %c0_0 = arith.constant 0 : index
    %0 = vector.load %arg1[%c0, %c0_0] : memref<128x128xf32, #tpu.memory_space<vmem>>, vector<128x128xf32>
    %c0_1 = arith.constant 0 : index
    %c0_2 = arith.constant 0 : index
    %1 = vector.load %arg2[%c0_1, %c0_2] : memref<1x128xf32, #tpu.memory_space<vmem>>, vector<1x128xf32>
    %2 = vector.broadcast %1 : vector<1x128xf32> to vector<128x128xf32>
    %3 = arith.mulf %0, %2 : vector<128x128xf32>
    %c0_3 = arith.constant 0 : index
    %c0_4 = arith.constant 0 : index
    %4 = vector.load %arg3[%c0_3, %c0_4] : memref<1x128xf32, #tpu.memory_space<vmem>>, vector<1x128xf32>
    %5 = vector.broadcast %4 : vector<1x128xf32> to vector<128x128xf32>
    %6 = arith.addf %3, %5 : vector<128x128xf32>
    %cst = arith.constant 0.000000e+00 : f32
    %7 = vector.broadcast %cst : f32 to vector<128x128xf32>
    %8 = arith.maximumf %6, %7 : vector<128x128xf32>
    %9 = arith.truncf %8 : vector<128x128xf32> to vector<128x128xbf16>
    %c0_5 = arith.constant 0 : index
    %c0_6 = arith.constant 0 : index
    %10 = vector.load %arg4[%c0_5, %c0_6] : memref<128x128xbf16, #tpu.memory_space<vmem>>, vector<128x128xbf16>
    tpu.vector_store %arg4[%c0_5, %c0_6], %9 {strides = array<i32>} : memref<128x128xbf16, #tpu.memory_space<vmem>>, vector<128x128xbf16>,
    return
  }
  func.func @transform_0(%arg0: i32) -> (i32, i32) {
    %c0_i32 = arith.constant 0 : i32
    %c0_i32_0 = arith.constant 0 : i32
    return %arg0, %c0_i32 : i32, i32
  }
  func.func @transform_1(%arg0: i32) -> (i32, i32) {
    %c0_i32 = arith.constant 0 : i32
    %c0_i32_0 = arith.constant 0 : i32
    %c0_i32_1 = arith.constant 0 : i32
    return %c0_i32, %c0_i32_0 : i32, i32
  }
  func.func @transform_2(%arg0: i32) -> (i32, i32) {
    %c0_i32 = arith.constant 0 : i32
    %c0_i32_0 = arith.constant 0 : i32
    %c0_i32_1 = arith.constant 0 : i32
    return %c0_i32, %c0_i32_0 : i32, i32
  }
  func.func @transform_3(%arg0: i32) -> (i32, i32) {
    %c0_i32 = arith.constant 0 : i32
    %c0_i32_0 = arith.constant 0 : i32
    return %arg0, %c0_i32 : i32, i32
  }
}

module attributes {stable_mosaic.version = 11 : i64} {
  func.func @_bn_stats_kernel(%arg0: i32, %arg1: memref<128x128xf32, #tpu.memory_space<vmem>>, %arg2: memref<2x128xf32, #tpu.memory_space<vmem>>, %arg3: memref<2x128xf32, #tpu.memory_space<vmem>>) attributes {dimension_semantics = [#tpu.dimension_semantics<arbitrary>], iteration_bounds = array<i64: 1>, scalar_prefetch = 0 : i64, scratch_operands = 1 : i64, tpu.core_type = #tpu.core_type<tc>, window_params = [{transform_indices = @transform_0, window_bounds = array<i64: 128, 128>}, {pipeline_mode = #tpu.pipeline_mode<synchronous>, transform_indices = @transform_1, window_bounds = array<i64: 2, 128>}]} {
    %c0_i32 = arith.constant 0 : i32
    %0 = arith.cmpi eq, %arg0, %c0_i32 : i32
    %1 = arith.extui %0 : i1 to i32
    %c0_i32_0 = arith.constant 0 : i32
    %2 = arith.cmpi ne, %1, %c0_i32_0 : i32
    scf.if %2 {
      %cst_9 = arith.constant 0.000000e+00 : f32
      %16 = vector.broadcast %cst_9 : f32 to vector<2x128xf32>
      %c0_10 = arith.constant 0 : index
      %c0_11 = arith.constant 0 : index
      %17 = vector.load %arg3[%c0_10, %c0_11] : memref<2x128xf32, #tpu.memory_space<vmem>>, vector<2x128xf32>
      tpu.vector_store %arg3[%c0_10, %c0_11], %16 {strides = array<i32>} : memref<2x128xf32, #tpu.memory_space<vmem>>, vector<2x128xf32>,
    } else {
    }
    %c0 = arith.constant 0 : index
    %c0_1 = arith.constant 0 : index
    %3 = vector.load %arg1[%c0, %c0_1] : memref<128x128xf32, #tpu.memory_space<vmem>>, vector<128x128xf32>
    %cst = arith.constant dense<0.000000e+00> : vector<128xf32>
    %4 = vector.multi_reduction <add>, %3, %cst [0] : vector<128x128xf32> to vector<128xf32>
    %5 = vector.shape_cast %4 : vector<128xf32> to vector<1x128xf32>
    %6 = arith.mulf %3, %3 : vector<128x128xf32>
    %cst_2 = arith.constant dense<0.000000e+00> : vector<128xf32>
    %7 = vector.multi_reduction <add>, %6, %cst_2 [0] : vector<128x128xf32> to vector<128xf32>
    %8 = vector.shape_cast %7 : vector<128xf32> to vector<1x128xf32>
    %c0_3 = arith.constant 0 : index
    %c0_4 = arith.constant 0 : index
    %9 = vector.load %arg3[%c0_3, %c0_4] : memref<2x128xf32, #tpu.memory_space<vmem>>, vector<2x128xf32>
    %10 = tpu.concatenate %5, %8 in 0 : vector<1x128xf32>, vector<1x128xf32> -> vector<2x128xf32>
    %11 = arith.addf %9, %10 : vector<2x128xf32>
    %c0_5 = arith.constant 0 : index
    %c0_6 = arith.constant 0 : index
    %12 = vector.load %arg3[%c0_5, %c0_6] : memref<2x128xf32, #tpu.memory_space<vmem>>, vector<2x128xf32>
    tpu.vector_store %arg3[%c0_5, %c0_6], %11 {strides = array<i32>} : memref<2x128xf32, #tpu.memory_space<vmem>>, vector<2x128xf32>,
    %c0_i32_7 = arith.constant 0 : i32
    %13 = arith.cmpi eq, %arg0, %c0_i32_7 : i32
    %14 = arith.extui %13 : i1 to i32
    %c0_i32_8 = arith.constant 0 : i32
    %15 = arith.cmpi ne, %14, %c0_i32_8 : i32
    scf.if %15 {
      %c0_9 = arith.constant 0 : index
      %c0_10 = arith.constant 0 : index
      %16 = vector.load %arg3[%c0_9, %c0_10] : memref<2x128xf32, #tpu.memory_space<vmem>>, vector<2x128xf32>
      %c0_11 = arith.constant 0 : index
      %c0_12 = arith.constant 0 : index
      %17 = vector.load %arg2[%c0_11, %c0_12] : memref<2x128xf32, #tpu.memory_space<vmem>>, vector<2x128xf32>
      tpu.vector_store %arg2[%c0_11, %c0_12], %16 {strides = array<i32>} : memref<2x128xf32, #tpu.memory_space<vmem>>, vector<2x128xf32>,
    } else {
    }
    return
  }
  func.func @transform_0(%arg0: i32) -> (i32, i32) {
    %c0_i32 = arith.constant 0 : i32
    %c0_i32_0 = arith.constant 0 : i32
    return %arg0, %c0_i32 : i32, i32
  }
  func.func @transform_1(%arg0: i32) -> (i32, i32) {
    %c0_i32 = arith.constant 0 : i32
    %c0_i32_0 = arith.constant 0 : i32
    %c0_i32_1 = arith.constant 0 : i32
    return %c0_i32, %c0_i32_0 : i32, i32
  }
}

module attributes {stable_mosaic.version = 11 : i64} {
  func.func @_matmul_bias_kernel(%arg0: i32, %arg1: memref<128x128xbf16, #tpu.memory_space<vmem>>, %arg2: memref<128x128xbf16, #tpu.memory_space<vmem>>, %arg3: memref<1x128xf32, #tpu.memory_space<vmem>>, %arg4: memref<128x128xf32, #tpu.memory_space<vmem>>) attributes {dimension_semantics = [#tpu.dimension_semantics<parallel>], iteration_bounds = array<i64: 1>, scalar_prefetch = 0 : i64, scratch_operands = 0 : i64, tpu.core_type = #tpu.core_type<tc>, window_params = [{transform_indices = @transform_0, window_bounds = array<i64: 128, 128>}, {pipeline_mode = #tpu.pipeline_mode<synchronous>, transform_indices = @transform_1, window_bounds = array<i64: 128, 128>}, {pipeline_mode = #tpu.pipeline_mode<synchronous>, transform_indices = @transform_2, window_bounds = array<i64: 1, 128>}, {transform_indices = @transform_3, window_bounds = array<i64: 128, 128>}]} {
    %c0 = arith.constant 0 : index
    %c0_0 = arith.constant 0 : index
    %0 = vector.load %arg1[%c0, %c0_0] : memref<128x128xbf16, #tpu.memory_space<vmem>>, vector<128x128xbf16>
    %c0_1 = arith.constant 0 : index
    %c0_2 = arith.constant 0 : index
    %1 = vector.load %arg2[%c0_1, %c0_2] : memref<128x128xbf16, #tpu.memory_space<vmem>>, vector<128x128xbf16>
    %cst = arith.constant dense<0.000000e+00> : vector<128x128xf32>
    %2 = tpu.matmul %0, %1, %cst {dimension_numbers = #tpu.dot_dimension_numbers<[1], [0], [0], [1], [0, 0, 1, 1], [], []>} : vector<128x128xbf16>, vector<128x128xbf16>, vector<128x128xf32> -> vector<128x128xf32>
    %c0_3 = arith.constant 0 : index
    %c0_4 = arith.constant 0 : index
    %3 = vector.load %arg3[%c0_3, %c0_4] : memref<1x128xf32, #tpu.memory_space<vmem>>, vector<1x128xf32>
    %4 = vector.broadcast %3 : vector<1x128xf32> to vector<128x128xf32>
    %5 = arith.addf %2, %4 : vector<128x128xf32>
    %c0_5 = arith.constant 0 : index
    %c0_6 = arith.constant 0 : index
    %6 = vector.load %arg4[%c0_5, %c0_6] : memref<128x128xf32, #tpu.memory_space<vmem>>, vector<128x128xf32>
    tpu.vector_store %arg4[%c0_5, %c0_6], %5 {strides = array<i32>} : memref<128x128xf32, #tpu.memory_space<vmem>>, vector<128x128xf32>,
    return
  }
  func.func @transform_0(%arg0: i32) -> (i32, i32) {
    %c0_i32 = arith.constant 0 : i32
    %c0_i32_0 = arith.constant 0 : i32
    return %arg0, %c0_i32 : i32, i32
  }
  func.func @transform_1(%arg0: i32) -> (i32, i32) {
    %c0_i32 = arith.constant 0 : i32
    %c0_i32_0 = arith.constant 0 : i32
    %c0_i32_1 = arith.constant 0 : i32
    return %c0_i32, %c0_i32_0 : i32, i32
  }
  func.func @transform_2(%arg0: i32) -> (i32, i32) {
    %c0_i32 = arith.constant 0 : i32
    %c0_i32_0 = arith.constant 0 : i32
    %c0_i32_1 = arith.constant 0 : i32
    return %c0_i32, %c0_i32_0 : i32, i32
  }
  func.func @transform_3(%arg0: i32) -> (i32, i32) {
    %c0_i32 = arith.constant 0 : i32
    %c0_i32_0 = arith.constant 0 : i32
    return %arg0, %c0_i32 : i32, i32
  }
}

module attributes {stable_mosaic.version = 11 : i64} {
  func.func @kernel(%arg0: i32, %arg1: memref<1x10x10x128xbf16, #tpu.memory_space<vmem>>, %arg2: memref<9x128x128xbf16, #tpu.memory_space<vmem>>, %arg3: memref<1x128xf32, #tpu.memory_space<vmem>>, %arg4: memref<1x64x128xf32, #tpu.memory_space<vmem>>, %arg5: memref<1x64x128xf32, #tpu.memory_space<vmem>>) attributes {dimension_semantics = [#tpu.dimension_semantics<parallel>], iteration_bounds = array<i64: 2>, scalar_prefetch = 0 : i64, scratch_operands = 0 : i64, tpu.core_type = #tpu.core_type<tc>, window_params = [{transform_indices = @transform_0, window_bounds = array<i64: 1, 10, 10, 128>}, {pipeline_mode = #tpu.pipeline_mode<synchronous>, transform_indices = @transform_1, window_bounds = array<i64: 9, 128, 128>}, {pipeline_mode = #tpu.pipeline_mode<synchronous>, transform_indices = @transform_2, window_bounds = array<i64: 1, 128>}, {transform_indices = @transform_3, window_bounds = array<i64: 1, 64, 128>}, {transform_indices = @transform_4, window_bounds = array<i64: 1, 64, 128>}]} {
    %c0 = arith.constant 0 : index
    %c0_0 = arith.constant 0 : index
    %c0_1 = arith.constant 0 : index
    %c0_2 = arith.constant 0 : index
    %0 = vector.load %arg1[%c0, %c0_0, %c0_1, %c0_2] : memref<1x10x10x128xbf16, #tpu.memory_space<vmem>>, vector<1x8x8x128xbf16>
    %1 = vector.shape_cast %0 : vector<1x8x8x128xbf16> to vector<8x8x128xbf16>
    %2 = vector.shape_cast %1 : vector<8x8x128xbf16> to vector<64x128xbf16>
    %c0_3 = arith.constant 0 : index
    %c0_4 = arith.constant 0 : index
    %c0_5 = arith.constant 0 : index
    %3 = vector.load %arg2[%c0_3, %c0_4, %c0_5] : memref<9x128x128xbf16, #tpu.memory_space<vmem>>, vector<1x128x128xbf16>
    %4 = vector.shape_cast %3 : vector<1x128x128xbf16> to vector<128x128xbf16>
    %cst = arith.constant dense<0.000000e+00> : vector<64x128xf32>
    %5 = tpu.matmul %2, %4, %cst {dimension_numbers = #tpu.dot_dimension_numbers<[1], [0], [0], [1], [0, 0, 1, 1], [], []>} : vector<64x128xbf16>, vector<128x128xbf16>, vector<64x128xf32> -> vector<64x128xf32>
    %c0_6 = arith.constant 0 : index
    %c0_7 = arith.constant 0 : index
    %c1 = arith.constant 1 : index
    %c0_8 = arith.constant 0 : index
    %6 = vector.load %arg1[%c0_6, %c0_7, %c1, %c0_8] : memref<1x10x10x128xbf16, #tpu.memory_space<vmem>>, vector<1x8x8x128xbf16>
    %7 = vector.shape_cast %6 : vector<1x8x8x128xbf16> to vector<8x8x128xbf16>
    %8 = vector.shape_cast %7 : vector<8x8x128xbf16> to vector<64x128xbf16>
    %c1_9 = arith.constant 1 : index
    %c0_10 = arith.constant 0 : index
    %c0_11 = arith.constant 0 : index
    %9 = vector.load %arg2[%c1_9, %c0_10, %c0_11] : memref<9x128x128xbf16, #tpu.memory_space<vmem>>, vector<1x128x128xbf16>
    %10 = vector.shape_cast %9 : vector<1x128x128xbf16> to vector<128x128xbf16>
    %cst_12 = arith.constant dense<0.000000e+00> : vector<64x128xf32>
    %11 = tpu.matmul %8, %10, %cst_12 {dimension_numbers = #tpu.dot_dimension_numbers<[1], [0], [0], [1], [0, 0, 1, 1], [], []>} : vector<64x128xbf16>, vector<128x128xbf16>, vector<64x128xf32> -> vector<64x128xf32>
    %12 = arith.addf %5, %11 : vector<64x128xf32>
    %c0_13 = arith.constant 0 : index
    %c0_14 = arith.constant 0 : index
    %c2 = arith.constant 2 : index
    %c0_15 = arith.constant 0 : index
    %13 = vector.load %arg1[%c0_13, %c0_14, %c2, %c0_15] : memref<1x10x10x128xbf16, #tpu.memory_space<vmem>>, vector<1x8x8x128xbf16>
    %14 = vector.shape_cast %13 : vector<1x8x8x128xbf16> to vector<8x8x128xbf16>
    %15 = vector.shape_cast %14 : vector<8x8x128xbf16> to vector<64x128xbf16>
    %c2_16 = arith.constant 2 : index
    %c0_17 = arith.constant 0 : index
    %c0_18 = arith.constant 0 : index
    %16 = vector.load %arg2[%c2_16, %c0_17, %c0_18] : memref<9x128x128xbf16, #tpu.memory_space<vmem>>, vector<1x128x128xbf16>
    %17 = vector.shape_cast %16 : vector<1x128x128xbf16> to vector<128x128xbf16>
    %cst_19 = arith.constant dense<0.000000e+00> : vector<64x128xf32>
    %18 = tpu.matmul %15, %17, %cst_19 {dimension_numbers = #tpu.dot_dimension_numbers<[1], [0], [0], [1], [0, 0, 1, 1], [], []>} : vector<64x128xbf16>, vector<128x128xbf16>, vector<64x128xf32> -> vector<64x128xf32>
    %19 = arith.addf %12, %18 : vector<64x128xf32>
    %c0_20 = arith.constant 0 : index
    %c1_21 = arith.constant 1 : index
    %c0_22 = arith.constant 0 : index
    %c0_23 = arith.constant 0 : index
    %20 = vector.load %arg1[%c0_20, %c1_21, %c0_22, %c0_23] : memref<1x10x10x128xbf16, #tpu.memory_space<vmem>>, vector<1x8x8x128xbf16>
    %21 = vector.shape_cast %20 : vector<1x8x8x128xbf16> to vector<8x8x128xbf16>
    %22 = vector.shape_cast %21 : vector<8x8x128xbf16> to vector<64x128xbf16>
    %c3 = arith.constant 3 : index
    %c0_24 = arith.constant 0 : index
    %c0_25 = arith.constant 0 : index
    %23 = vector.load %arg2[%c3, %c0_24, %c0_25] : memref<9x128x128xbf16, #tpu.memory_space<vmem>>, vector<1x128x128xbf16>
    %24 = vector.shape_cast %23 : vector<1x128x128xbf16> to vector<128x128xbf16>
    %cst_26 = arith.constant dense<0.000000e+00> : vector<64x128xf32>
    %25 = tpu.matmul %22, %24, %cst_26 {dimension_numbers = #tpu.dot_dimension_numbers<[1], [0], [0], [1], [0, 0, 1, 1], [], []>} : vector<64x128xbf16>, vector<128x128xbf16>, vector<64x128xf32> -> vector<64x128xf32>
    %26 = arith.addf %19, %25 : vector<64x128xf32>
    %c0_27 = arith.constant 0 : index
    %c1_28 = arith.constant 1 : index
    %c1_29 = arith.constant 1 : index
    %c0_30 = arith.constant 0 : index
    %27 = vector.load %arg1[%c0_27, %c1_28, %c1_29, %c0_30] : memref<1x10x10x128xbf16, #tpu.memory_space<vmem>>, vector<1x8x8x128xbf16>
    %28 = vector.shape_cast %27 : vector<1x8x8x128xbf16> to vector<8x8x128xbf16>
    %29 = vector.shape_cast %28 : vector<8x8x128xbf16> to vector<64x128xbf16>
    %c4 = arith.constant 4 : index
    %c0_31 = arith.constant 0 : index
    %c0_32 = arith.constant 0 : index
    %30 = vector.load %arg2[%c4, %c0_31, %c0_32] : memref<9x128x128xbf16, #tpu.memory_space<vmem>>, vector<1x128x128xbf16>
    %31 = vector.shape_cast %30 : vector<1x128x128xbf16> to vector<128x128xbf16>
    %cst_33 = arith.constant dense<0.000000e+00> : vector<64x128xf32>
    %32 = tpu.matmul %29, %31, %cst_33 {dimension_numbers = #tpu.dot_dimension_numbers<[1], [0], [0], [1], [0, 0, 1, 1], [], []>} : vector<64x128xbf16>, vector<128x128xbf16>, vector<64x128xf32> -> vector<64x128xf32>
    %33 = arith.addf %26, %32 : vector<64x128xf32>
    %c0_34 = arith.constant 0 : index
    %c1_35 = arith.constant 1 : index
    %c2_36 = arith.constant 2 : index
    %c0_37 = arith.constant 0 : index
    %34 = vector.load %arg1[%c0_34, %c1_35, %c2_36, %c0_37] : memref<1x10x10x128xbf16, #tpu.memory_space<vmem>>, vector<1x8x8x128xbf16>
    %35 = vector.shape_cast %34 : vector<1x8x8x128xbf16> to vector<8x8x128xbf16>
    %36 = vector.shape_cast %35 : vector<8x8x128xbf16> to vector<64x128xbf16>
    %c5 = arith.constant 5 : index
    %c0_38 = arith.constant 0 : index
    %c0_39 = arith.constant 0 : index
    %37 = vector.load %arg2[%c5, %c0_38, %c0_39] : memref<9x128x128xbf16, #tpu.memory_space<vmem>>, vector<1x128x128xbf16>
    %38 = vector.shape_cast %37 : vector<1x128x128xbf16> to vector<128x128xbf16>
    %cst_40 = arith.constant dense<0.000000e+00> : vector<64x128xf32>
    %39 = tpu.matmul %36, %38, %cst_40 {dimension_numbers = #tpu.dot_dimension_numbers<[1], [0], [0], [1], [0, 0, 1, 1], [], []>} : vector<64x128xbf16>, vector<128x128xbf16>, vector<64x128xf32> -> vector<64x128xf32>
    %40 = arith.addf %33, %39 : vector<64x128xf32>
    %c0_41 = arith.constant 0 : index
    %c2_42 = arith.constant 2 : index
    %c0_43 = arith.constant 0 : index
    %c0_44 = arith.constant 0 : index
    %41 = vector.load %arg1[%c0_41, %c2_42, %c0_43, %c0_44] : memref<1x10x10x128xbf16, #tpu.memory_space<vmem>>, vector<1x8x8x128xbf16>
    %42 = vector.shape_cast %41 : vector<1x8x8x128xbf16> to vector<8x8x128xbf16>
    %43 = vector.shape_cast %42 : vector<8x8x128xbf16> to vector<64x128xbf16>
    %c6 = arith.constant 6 : index
    %c0_45 = arith.constant 0 : index
    %c0_46 = arith.constant 0 : index
    %44 = vector.load %arg2[%c6, %c0_45, %c0_46] : memref<9x128x128xbf16, #tpu.memory_space<vmem>>, vector<1x128x128xbf16>
    %45 = vector.shape_cast %44 : vector<1x128x128xbf16> to vector<128x128xbf16>
    %cst_47 = arith.constant dense<0.000000e+00> : vector<64x128xf32>
    %46 = tpu.matmul %43, %45, %cst_47 {dimension_numbers = #tpu.dot_dimension_numbers<[1], [0], [0], [1], [0, 0, 1, 1], [], []>} : vector<64x128xbf16>, vector<128x128xbf16>, vector<64x128xf32> -> vector<64x128xf32>
    %47 = arith.addf %40, %46 : vector<64x128xf32>
    %c0_48 = arith.constant 0 : index
    %c2_49 = arith.constant 2 : index
    %c1_50 = arith.constant 1 : index
    %c0_51 = arith.constant 0 : index
    %48 = vector.load %arg1[%c0_48, %c2_49, %c1_50, %c0_51] : memref<1x10x10x128xbf16, #tpu.memory_space<vmem>>, vector<1x8x8x128xbf16>
    %49 = vector.shape_cast %48 : vector<1x8x8x128xbf16> to vector<8x8x128xbf16>
    %50 = vector.shape_cast %49 : vector<8x8x128xbf16> to vector<64x128xbf16>
    %c7 = arith.constant 7 : index
    %c0_52 = arith.constant 0 : index
    %c0_53 = arith.constant 0 : index
    %51 = vector.load %arg2[%c7, %c0_52, %c0_53] : memref<9x128x128xbf16, #tpu.memory_space<vmem>>, vector<1x128x128xbf16>
    %52 = vector.shape_cast %51 : vector<1x128x128xbf16> to vector<128x128xbf16>
    %cst_54 = arith.constant dense<0.000000e+00> : vector<64x128xf32>
    %53 = tpu.matmul %50, %52, %cst_54 {dimension_numbers = #tpu.dot_dimension_numbers<[1], [0], [0], [1], [0, 0, 1, 1], [], []>} : vector<64x128xbf16>, vector<128x128xbf16>, vector<64x128xf32> -> vector<64x128xf32>
    %54 = arith.addf %47, %53 : vector<64x128xf32>
    %c0_55 = arith.constant 0 : index
    %c2_56 = arith.constant 2 : index
    %c2_57 = arith.constant 2 : index
    %c0_58 = arith.constant 0 : index
    %55 = vector.load %arg1[%c0_55, %c2_56, %c2_57, %c0_58] : memref<1x10x10x128xbf16, #tpu.memory_space<vmem>>, vector<1x8x8x128xbf16>
    %56 = vector.shape_cast %55 : vector<1x8x8x128xbf16> to vector<8x8x128xbf16>
    %57 = vector.shape_cast %56 : vector<8x8x128xbf16> to vector<64x128xbf16>
    %c8 = arith.constant 8 : index
    %c0_59 = arith.constant 0 : index
    %c0_60 = arith.constant 0 : index
    %58 = vector.load %arg2[%c8, %c0_59, %c0_60] : memref<9x128x128xbf16, #tpu.memory_space<vmem>>, vector<1x128x128xbf16>
    %59 = vector.shape_cast %58 : vector<1x128x128xbf16> to vector<128x128xbf16>
    %cst_61 = arith.constant dense<0.000000e+00> : vector<64x128xf32>
    %60 = tpu.matmul %57, %59, %cst_61 {dimension_numbers = #tpu.dot_dimension_numbers<[1], [0], [0], [1], [0, 0, 1, 1], [], []>} : vector<64x128xbf16>, vector<128x128xbf16>, vector<64x128xf32> -> vector<64x128xf32>
    %61 = arith.addf %54, %60 : vector<64x128xf32>
    %c0_62 = arith.constant 0 : index
    %c0_63 = arith.constant 0 : index
    %62 = vector.load %arg3[%c0_62, %c0_63] : memref<1x128xf32, #tpu.memory_space<vmem>>, vector<1x128xf32>
    %63 = vector.broadcast %62 : vector<1x128xf32> to vector<64x128xf32>
    %64 = arith.addf %61, %63 : vector<64x128xf32>
    %c0_64 = arith.constant 0 : index
    %c0_65 = arith.constant 0 : index
    %c0_66 = arith.constant 0 : index
    %65 = vector.load %arg4[%c0_64, %c0_65, %c0_66] : memref<1x64x128xf32, #tpu.memory_space<vmem>>, vector<1x64x128xf32>
    %66 = vector.shape_cast %65 : vector<1x64x128xf32> to vector<64x128xf32>
    %67 = arith.addf %64, %66 : vector<64x128xf32>
    %c0_67 = arith.constant 0 : index
    %c0_68 = arith.constant 0 : index
    %c0_69 = arith.constant 0 : index
    %68 = vector.load %arg5[%c0_67, %c0_68, %c0_69] : memref<1x64x128xf32, #tpu.memory_space<vmem>>, vector<1x64x128xf32>
    %69 = vector.shape_cast %68 : vector<1x64x128xf32> to vector<64x128xf32>
    %70 = vector.shape_cast %67 : vector<64x128xf32> to vector<1x64x128xf32>
    tpu.vector_store %arg5[%c0_67, %c0_68, %c0_69], %70 {strides = array<i32>} : memref<1x64x128xf32, #tpu.memory_space<vmem>>, vector<1x64x128xf32>,
    return
  }
  func.func @transform_0(%arg0: i32) -> (i32, i32, i32, i32) {
    %c0_i32 = arith.constant 0 : i32
    %c0_i32_0 = arith.constant 0 : i32
    %c0_i32_1 = arith.constant 0 : i32
    %c0_i32_2 = arith.constant 0 : i32
    return %arg0, %c0_i32, %c0_i32_0, %c0_i32_1 : i32, i32, i32, i32
  }
  func.func @transform_1(%arg0: i32) -> (i32, i32, i32) {
    %c0_i32 = arith.constant 0 : i32
    %c0_i32_0 = arith.constant 0 : i32
    %c0_i32_1 = arith.constant 0 : i32
    %c0_i32_2 = arith.constant 0 : i32
    return %c0_i32, %c0_i32_0, %c0_i32_1 : i32, i32, i32
  }
  func.func @transform_2(%arg0: i32) -> (i32, i32) {
    %c0_i32 = arith.constant 0 : i32
    %c0_i32_0 = arith.constant 0 : i32
    %c0_i32_1 = arith.constant 0 : i32
    return %c0_i32, %c0_i32_0 : i32, i32
  }
  func.func @transform_3(%arg0: i32) -> (i32, i32, i32) {
    %c0_i32 = arith.constant 0 : i32
    %c0_i32_0 = arith.constant 0 : i32
    %c0_i32_1 = arith.constant 0 : i32
    return %arg0, %c0_i32, %c0_i32_0 : i32, i32, i32
  }
  func.func @transform_4(%arg0: i32) -> (i32, i32, i32) {
    %c0_i32 = arith.constant 0 : i32
    %c0_i32_0 = arith.constant 0 : i32
    %c0_i32_1 = arith.constant 0 : i32
    return %arg0, %c0_i32, %c0_i32_0 : i32, i32, i32
  }
}

</mosaic_0001>

<bundles_post_ra>
// kernel: preact_block_forward.7
= control target key start
LH: loop header
LB: loop body
LE: loop exit
PB: predicated region body
PF: predicated region fallthrough
CT: control target
= control target key end

     0   :  { %s324_s6 = smov 0   ;;  %s380_s0 = inlined_call_operand.vmem [shape: f32[512,128], index: 0, kind: input, shape index: {}]   ;;  %s381_s1 = inlined_call_operand.vmem [shape: f32[2,128], index: 1, kind: output, shape index: {}]  }
   0x1 LB: > { %s330_s7 = sadd.s32 4294967295, %s311_s6   ;;  %p289_p0 = scmp.ge.s32.totalorder %s311_s6, 1  ;;  %s311_s6 = sphi %s324_s6, %s11_s6  }
   0x2   : > { %p83_p1 = scmp.lt.s32.totalorder %s311_s6, 3 }
   0x4   : > { %p84_p2 = pnand %p289_p0, %p83_p1 }
   0x5   : > { %s290_s8 = sshll.u32 (!%p84_p2), %s330_s7, 5  ;;  %p292_p4 = scmp.ne.s32.totalorder (!%p84_p2), %s330_s7, 0 }
   0x6   : > { %87 = sbr.rel (%p84_p2) target bundleno = 109 (0x6d), region = 24  ;;  %p99_p3 = scmp.lt.s32.totalorder (!%p84_p2), %s290_s8, 63 }
   0xd   : > { %s383_s8 = smov (!%p99_p3, %s290_s8), 63  ;;  %107 = sbr.rel (%p292_p4) target bundleno = 20 (0x14), region = 28 }
   0xe   : > { %s291_s9 = sshll.u32 %s383_s8, 3  ;;  %v313_v0 = vmov (!%p292_p4), 0.0  }
   0xf   : > { %s338_s12 = scalar_lea.vmem %s380_s0, %s291_s9  ;;  %108 = vst [vmem:[#allocation2] sm:$0x3] (!%p292_p4), %v313_v0 }
  0x14 PF: > { %v109_v1 = vld [vmem:[%s338_s12] sm:$0xff]  ;;  %v110_v2 = vld [vmem:[%s338_s12 + $0x8] sm:$0xff]  ;;  %v111_v3 = vld [vmem:[%s338_s12 + $0x10] sm:$0xff]  ;;  %vm248_vm0 = vcmask 1040384   ;;  %p293_p5 = scmp.ne.s32.totalorder %s330_s7, 1 }
  0x15   : > { %v112_v4 = vld [vmem:[%s338_s12 + $0x18] sm:$0xff]  ;;  %v141_v5 = vadd.f32 %v110_v2, %v109_v1  ;;  %v178_v6 = vmul.f32 %v109_v1, %v109_v1  ;;  %v179_v7 = vmul.f32 %v110_v2, %v110_v2  ;;  %v180_v8 = vmul.f32 %v111_v3, %v111_v3  ;;  %v113_v9 = vld [vmem:[%s338_s12 + $0x20] sm:$0xff]  ;;  %v114_v13 = vld [vmem:[%s338_s12 + $0x28] sm:$0xff] }
  0x16   : > { %v181_v11 = vmul.f32 %v112_v4, %v112_v4  ;;  %v182_v15 = vmul.f32 %v113_v9, %v113_v9  ;;  %v115_v17 = vld [vmem:[%s338_s12 + $0x30] sm:$0xff]  ;;  %v183_v19 = vmul.f32 %v114_v13, %v114_v13  ;;  %v116_v21 = vld [vmem:[%s338_s12 + $0x38] sm:$0xff]  ;;  %v117_v25 = vld [vmem:[%s338_s12 + $0x40] sm:$0xff] }
  0x17   : > { %v142_v10 = vadd.f32 %v141_v5, %v111_v3  ;;  %v210_v12 = vadd.f32 %v179_v7, %v178_v6  ;;  %v184_v23 = vmul.f32 %v115_v17, %v115_v17  ;;  %v185_v27 = vmul.f32 %v116_v21, %v116_v21  ;;  %v118_v29 = vld [vmem:[%s338_s12 + $0x48] sm:$0xff]  ;;  %v119_v33 = vld [vmem:[%s338_s12 + $0x50] sm:$0xff]  ;;  %v120_v37 = vld [vmem:[%s338_s12 + $0x58] sm:$0xff] }
  0x18   : > { %v186_v31 = vmul.f32 %v117_v25, %v117_v25  ;;  %v187_v35 = vmul.f32 %v118_v29, %v118_v29  ;;  %v188_v39 = vmul.f32 %v119_v33, %v119_v33  ;;  %v121_v41 = vld [vmem:[%s338_s12 + $0x60] sm:$0xff]  ;;  %v189_v43 = vmul.f32 %v120_v37, %v120_v37  ;;  %v122_v45 = vld [vmem:[%s338_s12 + $0x68] sm:$0xff]  ;;  %v123_v49 = vld [vmem:[%s338_s12 + $0x70] sm:$0xff] }
  0x19   : > { %v143_v14 = vadd.f32 %v142_v10, %v112_v4  ;;  %v211_v16 = vadd.f32 %v210_v12, %v180_v8  ;;  %v190_v47 = vmul.f32 %v121_v41, %v121_v41  ;;  %v191_v51 = vmul.f32 %v122_v45, %v122_v45  ;;  %v124_v53 = vld [vmem:[%s338_s12 + $0x78] sm:$0xff]  ;;  %v125_v57 = vld [vmem:[%s338_s12 + $0x80] sm:$0xff]  ;;  %v126_v61 = vld [vmem:[%s338_s12 + $0x88] sm:$0xff] }
  0x1a   : > { %v192_v55 = vmul.f32 %v123_v49, %v123_v49  ;;  %v193_v59 = vmul.f32 %v124_v53, %v124_v53  ;;  %v194_v63 = vmul.f32 %v125_v57, %v125_v57  ;;  %v127_v1 = vld [vmem:[%s338_s12 + $0x90] sm:$0xff]  ;;  %v195_v3 = vmul.f32 %v126_v61, %v126_v61  ;;  %v128_v5 = vld [vmem:[%s338_s12 + $0x98] sm:$0xff] }
  0x1b   : > { %v144_v18 = vadd.f32 %v143_v14, %v113_v9  ;;  %v212_v20 = vadd.f32 %v211_v16, %v181_v11  ;;  %v196_v7 = vmul.f32 %v127_v1, %v127_v1  ;;  %v129_v9 = vld [vmem:[%s338_s12 + $0xa0] sm:$0xff]  ;;  %v197_v11 = vmul.f32 %v128_v5, %v128_v5 }
  0x1d   : > { %v145_v22 = vadd.f32 %v144_v18, %v114_v13  ;;  %v213_v24 = vadd.f32 %v212_v20, %v182_v15  ;;  %v130_v13 = vld [vmem:[%s338_s12 + $0xa8] sm:$0xff]  ;;  %v198_v15 = vmul.f32 %v129_v9, %v129_v9 }
  0x1f   : > { %v146_v26 = vadd.f32 %v145_v22, %v115_v17  ;;  %v214_v28 = vadd.f32 %v213_v24, %v183_v19  ;;  %v131_v17 = vld [vmem:[%s338_s12 + $0xb0] sm:$0xff]  ;;  %v199_v19 = vmul.f32 %v130_v13, %v130_v13 }
  0x21   : > { %v147_v30 = vadd.f32 %v146_v26, %v116_v21  ;;  %v215_v32 = vadd.f32 %v214_v28, %v184_v23  ;;  %v132_v21 = vld [vmem:[%s338_s12 + $0xb8] sm:$0xff]  ;;  %v200_v23 = vmul.f32 %v131_v17, %v131_v17 }
  0x23   : > { %v148_v34 = vadd.f32 %v147_v30, %v117_v25  ;;  %v216_v36 = vadd.f32 %v215_v32, %v185_v27  ;;  %v133_v25 = vld [vmem:[%s338_s12 + $0xc0] sm:$0xff]  ;;  %v201_v27 = vmul.f32 %v132_v21, %v132_v21 }
  0x25   : > { %v149_v38 = vadd.f32 %v148_v34, %v118_v29  ;;  %v217_v40 = vadd.f32 %v216_v36, %v186_v31  ;;  %v134_v29 = vld [vmem:[%s338_s12 + $0xc8] sm:$0xff]  ;;  %v202_v31 = vmul.f32 %v133_v25, %v133_v25 }
  0x27   : > { %v150_v42 = vadd.f32 %v149_v38, %v119_v33  ;;  %v218_v44 = vadd.f32 %v217_v40, %v187_v35  ;;  %v135_v33 = vld [vmem:[%s338_s12 + $0xd0] sm:$0xff]  ;;  %v203_v35 = vmul.f32 %v134_v29, %v134_v29 }
  0x29   : > { %v151_v46 = vadd.f32 %v150_v42, %v120_v37  ;;  %v219_v48 = vadd.f32 %v218_v44, %v188_v39  ;;  %v136_v37 = vld [vmem:[%s338_s12 + $0xd8] sm:$0xff]  ;;  %v204_v39 = vmul.f32 %v135_v33, %v135_v33 }
  0x2b   : > { %v152_v50 = vadd.f32 %v151_v46, %v121_v41  ;;  %v220_v52 = vadd.f32 %v219_v48, %v189_v43  ;;  %v137_v41 = vld [vmem:[%s338_s12 + $0xe0] sm:$0xff]  ;;  %v205_v43 = vmul.f32 %v136_v37, %v136_v37 }
  0x2d   : > { %v153_v54 = vadd.f32 %v152_v50, %v122_v45  ;;  %v221_v56 = vadd.f32 %v220_v52, %v190_v47  ;;  %v138_v45 = vld [vmem:[%s338_s12 + $0xe8] sm:$0xff]  ;;  %v206_v47 = vmul.f32 %v137_v41, %v137_v41 }
  0x2f   : > { %v154_v58 = vadd.f32 %v153_v54, %v123_v49  ;;  %v222_v60 = vadd.f32 %v221_v56, %v191_v51  ;;  %v139_v49 = vld [vmem:[%s338_s12 + $0xf0] sm:$0xff]  ;;  %v207_v51 = vmul.f32 %v138_v45, %v138_v45 }
  0x31   : > { %v155_v62 = vadd.f32 %v154_v58, %v124_v53  ;;  %v223_v0 = vadd.f32 %v222_v60, %v192_v55  ;;  %v140_v53 = vld [vmem:[%s338_s12 + $0xf8] sm:$0xff]  ;;  %v208_v55 = vmul.f32 %v139_v49, %v139_v49 }
  0x32   : > { %v209_v58 = vmul.f32 %v140_v53, %v140_v53 }
  0x33   : > { %v156_v2 = vadd.f32 %v155_v62, %v125_v57  ;;  %v224_v4 = vadd.f32 %v223_v0, %v193_v59 }
  0x35   : > { %v157_v6 = vadd.f32 %v156_v2, %v126_v61  ;;  %v225_v8 = vadd.f32 %v224_v4, %v194_v63 }
  0x37   : > { %v158_v10 = vadd.f32 %v157_v6, %v127_v1  ;;  %v226_v12 = vadd.f32 %v225_v8, %v195_v3 }
  0x39   : > { %v159_v14 = vadd.f32 %v158_v10, %v128_v5  ;;  %v227_v16 = vadd.f32 %v226_v12, %v196_v7 }
  0x3b   : > { %v160_v18 = vadd.f32 %v159_v14, %v129_v9  ;;  %v228_v20 = vadd.f32 %v227_v16, %v197_v11  ;;  %v247_v11 = vld [vmem:[#allocation2] sm:$0x3] }
  0x3d   : > { %v161_v22 = vadd.f32 %v160_v18, %v130_v13  ;;  %v229_v24 = vadd.f32 %v228_v20, %v198_v15 }
  0x3f   : > { %v162_v26 = vadd.f32 %v161_v22, %v131_v17  ;;  %v230_v28 = vadd.f32 %v229_v24, %v199_v19 }
  0x41   : > { %v163_v30 = vadd.f32 %v162_v26, %v132_v21  ;;  %v231_v32 = vadd.f32 %v230_v28, %v200_v23 }
  0x43   : > { %v164_v34 = vadd.f32 %v163_v30, %v133_v25  ;;  %v232_v36 = vadd.f32 %v231_v32, %v201_v27 }
  0x45   : > { %v165_v38 = vadd.f32 %v164_v34, %v134_v29  ;;  %v233_v40 = vadd.f32 %v232_v36, %v202_v31 }
  0x47   : > { %v166_v42 = vadd.f32 %v165_v38, %v135_v33  ;;  %v234_v44 = vadd.f32 %v233_v40, %v203_v35 }
  0x49   : > { %v167_v46 = vadd.f32 %v166_v42, %v136_v37  ;;  %v235_v48 = vadd.f32 %v234_v44, %v204_v39 }
  0x4b   : > { %v168_v50 = vadd.f32 %v167_v46, %v137_v41  ;;  %v236_v52 = vadd.f32 %v235_v48, %v205_v43 }
  0x4d   : > { %v169_v54 = vadd.f32 %v168_v50, %v138_v45  ;;  %v237_v56 = vadd.f32 %v236_v52, %v206_v47 }
  0x4f   : > { %v170_v57 = vadd.f32 %v169_v54, %v139_v49  ;;  %v238_v59 = vadd.f32 %v237_v56, %v207_v51 }
  0x51   : > { %v171_v60 = vadd.f32 %v170_v57, %v140_v53  ;;  %v239_v61 = vadd.f32 %v238_v59, %v208_v55 }
  0x53   : > { %v172_v62 = vrot.slane %v171_v60, 4  ;;  %v240_v63 = vadd.f32 %v239_v61, %v209_v58 }
  0x55   : > { %v173_v0 = vadd.f32 %v172_v62, %v171_v60  ;;  %v241_v1 = vrot.slane %v240_v63, 4 }
  0x57   : > { %v174_v2 = vrot.slane %v173_v0, 2  ;;  %v242_v3 = vadd.f32 %v241_v1, %v240_v63 }
  0x59   : > { %v175_v4 = vadd.f32 %v174_v2, %v173_v0  ;;  %v243_v5 = vrot.slane %v242_v3, 2 }
  0x5b   : > { %v176_v6 = vrot.slane %v175_v4, 1  ;;  %v244_v7 = vadd.f32 %v243_v5, %v242_v3 }
  0x5d   : > { %v177_v8 = vadd.f32 %v176_v6, %v175_v4  ;;  %v245_v9 = vrot.slane %v244_v7, 1 }
  0x5e   : > { %255 = sbr.rel (%p293_p5) target bundleno = 109 (0x6d), region = 32 }
  0x5f   : > { %v246_v10 = vadd.f32 %v245_v9, %v244_v7 }
  0x61   : > { %v249_v12 = vsel %vm248_vm0, %v177_v8, %v246_v10 }
  0x62   : > { %v250_v13 = vadd.f32 %v249_v12, %v247_v11 }
  0x64   : > { %251 = vst [vmem:[#allocation2] sm:$0x3] %v250_v13 }
  0x6b   : > { %v256_v14 = vld [vmem:[#allocation2] sm:$0x3] }
  0x6c   : > { %257 = vst [vmem:[%s381_s1] sm:$0x3] %v256_v14 }
  0x6d PF: > { %s11_s6 = sadd.s32 1, %s311_s6  }
  0x6e   : > { %p8_p6 = scmp.ge.s32.totalorder %s11_s6, 4  }
  0x70   :  { %10 = sbr.rel (!%p8_p6) target bundleno = 1 (0x1), region = 58 }

// kernel: preact_block_forward.8
= control target key start
LH: loop header
LB: loop body
LE: loop exit
PB: predicated region body
PF: predicated region fallthrough
CT: control target
= control target key end

     0   :  { %s740_s12 = smov 0   ;;  %s887_s0 = inlined_call_operand.vmem [shape: f32[512,128], index: 0, kind: input, shape index: {}]   ;;  %s888_s1 = inlined_call_operand.vmem [shape: f32[1,128], index: 1, kind: input, shape index: {}]   ;;  %s889_s2 = inlined_call_operand.vmem [shape: f32[1,128], index: 2, kind: input, shape index: {}]   ;;  %s890_s3 = inlined_call_operand.vmem [shape: bf16[512,128], index: 3, kind: output, shape index: {}]  }
   0x1 LB: > { %s532_s13 = sadd.s32 4294967295, %s718_s12   ;;  %p536_p0 = scmp.ge.s32.totalorder %s718_s12, 1  ;;  %s718_s12 = sphi %s740_s12, %s13_s12  }
   0x2   : > { %p138_p1 = scmp.lt.s32.totalorder %s718_s12, 3 }
   0x4   : > { %p139_p2 = pnand %p536_p0, %p138_p1 }
   0x5   : > { %s537_s14 = sshll.u32 (!%p139_p2), %s532_s13, 5  ;;  %v754_v0 = vld [vmem:[%s888_s1] ss:$0 sm:$0xff] (!%p139_p2) }
   0x6   : > { %142 = sbr.rel (%p139_p2) target bundleno = 51 (0x33), region = 32  ;;  %p163_p3 = scmp.lt.s32.totalorder (!%p139_p2), %s537_s14, 63  ;;  %v764_v1 = vld [vmem:[%s889_s2] ss:$0 sm:$0xff] (!%p139_p2) }
   0xd   : > { %s892_s14 = smov (!%p163_p3, %s537_s14), 63 }
   0xe   : > { %s538_s15 = sshll.u32 %s892_s14, 3  ;;  %s540_s23 = sshll.u32 %s892_s14, 2 }
   0xf   : > { %s759_s20 = scalar_lea.vmem %s887_s0, %s538_s15  ;;  %s796_s26 = scalar_lea.vmem %s890_s3, %s540_s23 }
  0x10   : > { %v174_v2 = vld [vmem:[%s759_s20] sm:$0xff]  ;;  %v175_v3 = vld [vmem:[%s759_s20 + $0x8] sm:$0xff]  ;;  %v176_v4 = vld [vmem:[%s759_s20 + $0x10] sm:$0xff] }
  0x11   : > { %v213_v5 = vmul.f32 %v754_v0, %v174_v2  ;;  %v214_v6 = vmul.f32 %v754_v0, %v175_v3  ;;  %v177_v7 = vld [vmem:[%s759_s20 + $0x18] sm:$0xff]  ;;  %v215_v8 = vmul.f32 %v754_v0, %v176_v4  ;;  %v178_v9 = vld [vmem:[%s759_s20 + $0x20] sm:$0xff]  ;;  %v179_v10 = vld [vmem:[%s759_s20 + $0x28] sm:$0xff] }
  0x12   : > { %v216_v11 = vmul.f32 %v754_v0, %v177_v7  ;;  %v217_v12 = vmul.f32 %v754_v0, %v178_v9  ;;  %v218_v13 = vmul.f32 %v754_v0, %v179_v10  ;;  %v180_v14 = vld [vmem:[%s759_s20 + $0x30] sm:$0xff]  ;;  %v181_v15 = vld [vmem:[%s759_s20 + $0x38] sm:$0xff]  ;;  %v182_v24 = vld [vmem:[%s759_s20 + $0x40] sm:$0xff] }
  0x13   : > { %v252_v16 = vadd.f32 %v764_v1, %v213_v5  ;;  %v253_v17 = vadd.f32 %v764_v1, %v214_v6  ;;  %v254_v18 = vadd.f32 %v764_v1, %v215_v8  ;;  %v219_v19 = vmul.f32 %v754_v0, %v180_v14  ;;  %v183_v25 = vld [vmem:[%s759_s20 + $0x48] sm:$0xff]  ;;  %v184_v30 = vld [vmem:[%s759_s20 + $0x50] sm:$0xff]  ;;  %v185_v35 = vld [vmem:[%s759_s20 + $0x58] sm:$0xff] }
  0x14   : > { %v255_v20 = vadd.f32 %v764_v1, %v216_v11  ;;  %v256_v21 = vadd.f32 %v764_v1, %v217_v12  ;;  %v257_v22 = vadd.f32 %v764_v1, %v218_v13  ;;  %v220_v23 = vmul.f32 %v754_v0, %v181_v15  ;;  %v186_v36 = vld [vmem:[%s759_s20 + $0x60] sm:$0xff]  ;;  %v187_v41 = vld [vmem:[%s759_s20 + $0x68] sm:$0xff]  ;;  %v188_v42 = vld [vmem:[%s759_s20 + $0x70] sm:$0xff] }
  0x15   : > { %v284_v26 = vmax.f32 %v252_v16, 0.0  ;;  %v285_v27 = vmax.f32 %v253_v17, 0.0  ;;  %v286_v28 = vmax.f32 %v254_v18, 0.0  ;;  %v258_v29 = vadd.f32 %v764_v1, %v219_v19  ;;  %v189_v51 = vld [vmem:[%s759_s20 + $0x78] sm:$0xff]  ;;  %v190_v56 = vld [vmem:[%s759_s20 + $0x80] sm:$0xff]  ;;  %v191_v61 = vld [vmem:[%s759_s20 + $0x88] sm:$0xff] }
  0x16   : > { %v287_v31 = vmax.f32 %v255_v20, 0.0  ;;  %v288_v32 = vmax.f32 %v256_v21, 0.0  ;;  %v289_v33 = vmax.f32 %v257_v22, 0.0  ;;  %v259_v34 = vadd.f32 %v764_v1, %v220_v23  ;;  %v192_v4 = vld [vmem:[%s759_s20 + $0x90] sm:$0xff]  ;;  %v193_v5 = vld [vmem:[%s759_s20 + $0x98] sm:$0xff]  ;;  %v194_v10 = vld [vmem:[%s759_s20 + $0xa0] sm:$0xff] }
  0x17   : > { %v612_v37 = vpack.c.bf16 %v285_v27, %v284_v26  ;;  %v290_v38 = vmax.f32 %v258_v29, 0.0  ;;  %v221_v39 = vmul.f32 %v754_v0, %v182_v24  ;;  %v222_v40 = vmul.f32 %v754_v0, %v183_v25  ;;  %v195_v15 = vld [vmem:[%s759_s20 + $0xa8] sm:$0xff]  ;;  %v196_v20 = vld [vmem:[%s759_s20 + $0xb0] sm:$0xff]  ;;  %v197_v25 = vld [vmem:[%s759_s20 + $0xb8] sm:$0xff] }
  0x18   : > { %v617_v43 = vpack.c.bf16 %v287_v31, %v286_v28  ;;  %v622_v44 = vpack.c.bf16 %v289_v33, %v288_v32  ;;  %v291_v45 = vmax.f32 %v259_v34, 0.0  ;;  %v223_v46 = vmul.f32 %v754_v0, %v184_v30  ;;  %v198_v30 = vld [vmem:[%s759_s20 + $0xc0] sm:$0xff] }
  0x19   : > { %613 = vst [vmem:[%s796_s26] sm:$0xff] %v612_v37   ;;  %v260_v47 = vadd.f32 %v764_v1, %v221_v39  ;;  %v261_v48 = vadd.f32 %v764_v1, %v222_v40  ;;  %v224_v49 = vmul.f32 %v754_v0, %v185_v35  ;;  %v225_v50 = vmul.f32 %v754_v0, %v186_v36  ;;  %v199_v35 = vld [vmem:[%s759_s20 + $0xc8] sm:$0xff]  ;;  %v200_v40 = vld [vmem:[%s759_s20 + $0xd0] sm:$0xff] }
  0x1a   : > { %689 = vst [vmem:[%s796_s26 + $0x8] sm:$0xff] %v617_v43   ;;  %690 = vst [vmem:[%s796_s26 + $0x10] sm:$0xff] %v622_v44   ;;  %v627_v52 = vpack.c.bf16 %v291_v45, %v290_v38  ;;  %v262_v53 = vadd.f32 %v764_v1, %v223_v46  ;;  %v226_v54 = vmul.f32 %v754_v0, %v187_v41  ;;  %v201_v41 = vld [vmem:[%s759_s20 + $0xd8] sm:$0xff]  ;;  %v202_v46 = vld [vmem:[%s759_s20 + $0xe0] sm:$0xff] }
  0x1b   : > { %v227_v55 = vmul.f32 %v754_v0, %v188_v42  ;;  %v292_v57 = vmax.f32 %v260_v47, 0.0  ;;  %v293_v58 = vmax.f32 %v261_v48, 0.0  ;;  %v263_v59 = vadd.f32 %v764_v1, %v224_v49 }
  0x1c   : > { %v264_v60 = vadd.f32 %v764_v1, %v225_v50  ;;  %691 = vst [vmem:[%s796_s26 + $0x18] sm:$0xff] %v627_v52   ;;  %v294_v62 = vmax.f32 %v262_v53, 0.0  ;;  %v265_v63 = vadd.f32 %v764_v1, %v226_v54  ;;  %v228_v2 = vmul.f32 %v754_v0, %v189_v51  ;;  %v203_v51 = vld [vmem:[%s759_s20 + $0xe8] sm:$0xff] }
  0x1d   : > { %v266_v3 = vadd.f32 %v764_v1, %v227_v55  ;;  %v632_v6 = vpack.c.bf16 %v293_v58, %v292_v57  ;;  %v295_v7 = vmax.f32 %v263_v59, 0.0  ;;  %v229_v9 = vmul.f32 %v754_v0, %v190_v56  ;;  %v204_v56 = vld [vmem:[%s759_s20 + $0xf0] sm:$0xff] }
  0x1e   : > { %v296_v8 = vmax.f32 %v264_v60, 0.0  ;;  %v297_v11 = vmax.f32 %v265_v63, 0.0  ;;  %v267_v12 = vadd.f32 %v764_v1, %v228_v2  ;;  %v230_v14 = vmul.f32 %v754_v0, %v191_v61  ;;  %v205_v61 = vld [vmem:[%s759_s20 + $0xf8] sm:$0xff] }
  0x1f   : > { %v298_v13 = vmax.f32 %v266_v3, 0.0  ;;  %692 = vst [vmem:[%s796_s26 + $0x20] sm:$0xff] %v632_v6   ;;  %v637_v16 = vpack.c.bf16 %v295_v7, %v294_v62  ;;  %v268_v17 = vadd.f32 %v764_v1, %v229_v9  ;;  %v231_v18 = vmul.f32 %v754_v0, %v192_v4 }
  0x20   : > { %v232_v19 = vmul.f32 %v754_v0, %v193_v5  ;;  %v642_v21 = vpack.c.bf16 %v297_v11, %v296_v8  ;;  %v299_v22 = vmax.f32 %v267_v12, 0.0  ;;  %v269_v23 = vadd.f32 %v764_v1, %v230_v14 }
  0x21   : > { %v233_v24 = vmul.f32 %v754_v0, %v194_v10  ;;  %693 = vst [vmem:[%s796_s26 + $0x28] sm:$0xff] %v637_v16   ;;  %v300_v26 = vmax.f32 %v268_v17, 0.0  ;;  %v270_v27 = vadd.f32 %v764_v1, %v231_v18  ;;  %v234_v29 = vmul.f32 %v754_v0, %v195_v15 }
  0x22   : > { %v271_v28 = vadd.f32 %v764_v1, %v232_v19  ;;  %694 = vst [vmem:[%s796_s26 + $0x30] sm:$0xff] %v642_v21   ;;  %v647_v31 = vpack.c.bf16 %v299_v22, %v298_v13  ;;  %v301_v32 = vmax.f32 %v269_v23, 0.0  ;;  %v235_v34 = vmul.f32 %v754_v0, %v196_v20 }
  0x23   : > { %v272_v33 = vadd.f32 %v764_v1, %v233_v24  ;;  %v302_v36 = vmax.f32 %v270_v27, 0.0  ;;  %v273_v38 = vadd.f32 %v764_v1, %v234_v29  ;;  %v236_v39 = vmul.f32 %v754_v0, %v197_v25 }
  0x24   : > { %v303_v37 = vmax.f32 %v271_v28, 0.0  ;;  %695 = vst [vmem:[%s796_s26 + $0x38] sm:$0xff] %v647_v31   ;;  %v652_v42 = vpack.c.bf16 %v301_v32, %v300_v26  ;;  %v274_v44 = vadd.f32 %v764_v1, %v235_v34  ;;  %v237_v45 = vmul.f32 %v754_v0, %v198_v30 }
  0x25   : > { %v304_v43 = vmax.f32 %v272_v33, 0.0  ;;  %v305_v48 = vmax.f32 %v273_v38, 0.0  ;;  %v275_v49 = vadd.f32 %v764_v1, %v236_v39  ;;  %v238_v50 = vmul.f32 %v754_v0, %v199_v35 }
  0x26   : > { %v657_v47 = vpack.c.bf16 %v303_v37, %v302_v36  ;;  %696 = vst [vmem:[%s796_s26 + $0x40] sm:$0xff] %v652_v42   ;;  %v306_v52 = vmax.f32 %v274_v44, 0.0  ;;  %v276_v53 = vadd.f32 %v764_v1, %v237_v45  ;;  %v239_v54 = vmul.f32 %v754_v0, %v200_v40 }
  0x27   : > { %v240_v55 = vmul.f32 %v754_v0, %v201_v41  ;;  %v662_v57 = vpack.c.bf16 %v305_v48, %v304_v43  ;;  %v307_v58 = vmax.f32 %v275_v49, 0.0  ;;  %v277_v59 = vadd.f32 %v764_v1, %v238_v50 }
  0x28   : > { %697 = vst [vmem:[%s796_s26 + $0x48] sm:$0xff] %v657_v47   ;;  %v241_v60 = vmul.f32 %v754_v0, %v202_v46  ;;  %v308_v62 = vmax.f32 %v276_v53, 0.0  ;;  %v278_v63 = vadd.f32 %v764_v1, %v239_v54  ;;  %v242_v3 = vmul.f32 %v754_v0, %v203_v51 }
  0x29   : > { %v279_v2 = vadd.f32 %v764_v1, %v240_v55  ;;  %698 = vst [vmem:[%s796_s26 + $0x50] sm:$0xff] %v662_v57   ;;  %v667_v4 = vpack.c.bf16 %v307_v58, %v306_v52  ;;  %v309_v5 = vmax.f32 %v277_v59, 0.0  ;;  %v243_v7 = vmul.f32 %v754_v0, %v204_v56 }
  0x2a   : > { %v280_v6 = vadd.f32 %v764_v1, %v241_v60  ;;  %v310_v8 = vmax.f32 %v278_v63, 0.0  ;;  %v281_v10 = vadd.f32 %v764_v1, %v242_v3  ;;  %v244_v11 = vmul.f32 %v754_v0, %v205_v61 }
  0x2b   : > { %v311_v9 = vmax.f32 %v279_v2, 0.0  ;;  %699 = vst [vmem:[%s796_s26 + $0x58] sm:$0xff] %v667_v4   ;;  %v672_v12 = vpack.c.bf16 %v309_v5, %v308_v62  ;;  %v282_v14 = vadd.f32 %v764_v1, %v243_v7 }
  0x2c   : > { %v312_v13 = vmax.f32 %v280_v6, 0.0  ;;  %v313_v16 = vmax.f32 %v281_v10, 0.0  ;;  %v283_v17 = vadd.f32 %v764_v1, %v244_v11 }
  0x2d   : > { %v677_v15 = vpack.c.bf16 %v311_v9, %v310_v8  ;;  %700 = vst [vmem:[%s796_s26 + $0x60] sm:$0xff] %v672_v12   ;;  %v314_v18 = vmax.f32 %v282_v14, 0.0 }
  0x2e   : > { %v682_v19 = vpack.c.bf16 %v313_v16, %v312_v13  ;;  %v315_v20 = vmax.f32 %v283_v17, 0.0 }
  0x2f   : > { %701 = vst [vmem:[%s796_s26 + $0x68] sm:$0xff] %v677_v15  }
  0x30   : > { %702 = vst [vmem:[%s796_s26 + $0x70] sm:$0xff] %v682_v19   ;;  %v687_v21 = vpack.c.bf16 %v315_v20, %v314_v18 }
  0x32   : > { %703 = vst [vmem:[%s796_s26 + $0x78] sm:$0xff] %v687_v21  }
  0x33 PF: > { %s13_s12 = sadd.s32 1, %s718_s12  }
  0x34   : > { %p10_p4 = scmp.ge.s32.totalorder %s13_s12, 4  }
  0x36   :  { %12 = sbr.rel (!%p10_p4) target bundleno = 1 (0x1), region = 62 }

// kernel: preact_block_forward.12
= control target key start
LH: loop header
LB: loop body
LE: loop exit
PB: predicated region body
PF: predicated region fallthrough
CT: control target
= control target key end

     0   :  { %s391_s0 = inlined_call_operand.vmem [shape: f32[128,128], index: 0, kind: input, shape index: {}]   ;;  %s392_s1 = inlined_call_operand.vmem [shape: f32[1,128], index: 1, kind: input, shape index: {}]   ;;  %s393_s2 = inlined_call_operand.vmem [shape: f32[1,128], index: 2, kind: input, shape index: {}]   ;;  %s394_s3 = inlined_call_operand.vmem [shape: bf16[128,128], index: 3, kind: output, shape index: {}]  }
   0x1   :  { %v14_v0 = vld [vmem:[%s391_s0] sm:$0xff]  ;;  %v15_v1 = vld [vmem:[%s391_s0 + $0x8] sm:$0xff]  ;;  %v16_v6 = vld [vmem:[%s391_s0 + $0x10] sm:$0xff] }
   0x2   :  { %v286_v2 = vld [vmem:[%s392_s1] ss:$0 sm:$0xff]  ;;  %v17_v7 = vld [vmem:[%s391_s0 + $0x18] sm:$0xff]  ;;  %v19_v11 = vld [vmem:[%s391_s0 + $0x28] sm:$0xff] }
   0x3   :  { %v37_v3 = vmul.f32 %v286_v2, %v14_v0  ;;  %v38_v4 = vmul.f32 %v286_v2, %v15_v1  ;;  %v293_v5 = vld [vmem:[%s393_s2] ss:$0 sm:$0xff]  ;;  %v39_v8 = vmul.f32 %v286_v2, %v16_v6  ;;  %v40_v9 = vmul.f32 %v286_v2, %v17_v7  ;;  %v20_v12 = vld [vmem:[%s391_s0 + $0x30] sm:$0xff]  ;;  %v21_v17 = vld [vmem:[%s391_s0 + $0x38] sm:$0xff] }
   0x4   :  { %v18_v10 = vld [vmem:[%s391_s0 + $0x20] sm:$0xff]  ;;  %v42_v16 = vmul.f32 %v286_v2, %v19_v11  ;;  %v43_v20 = vmul.f32 %v286_v2, %v20_v12  ;;  %v44_v21 = vmul.f32 %v286_v2, %v21_v17  ;;  %v23_v27 = vld [vmem:[%s391_s0 + $0x48] sm:$0xff]  ;;  %v24_v32 = vld [vmem:[%s391_s0 + $0x50] sm:$0xff] }
   0x5   :  { %v60_v13 = vadd.f32 %v293_v5, %v37_v3  ;;  %v61_v14 = vadd.f32 %v293_v5, %v38_v4  ;;  %v41_v15 = vmul.f32 %v286_v2, %v18_v10  ;;  %v62_v18 = vadd.f32 %v293_v5, %v39_v8  ;;  %v22_v22 = vld [vmem:[%s391_s0 + $0x40] sm:$0xff]  ;;  %v25_v33 = vld [vmem:[%s391_s0 + $0x58] sm:$0xff]  ;;  %v27_v39 = vld [vmem:[%s391_s0 + $0x68] sm:$0xff] }
   0x6   :  { %v63_v19 = vadd.f32 %v293_v5, %v40_v9  ;;  %v65_v26 = vadd.f32 %v293_v5, %v42_v16  ;;  %v66_v30 = vadd.f32 %v293_v5, %v43_v20  ;;  %v67_v31 = vadd.f32 %v293_v5, %v44_v21  ;;  %v26_v38 = vld [vmem:[%s391_s0 + $0x60] sm:$0xff]  ;;  %v28_v44 = vld [vmem:[%s391_s0 + $0x70] sm:$0xff]  ;;  %v29_v49 = vld [vmem:[%s391_s0 + $0x78] sm:$0xff] }
   0x7   :  { %v76_v23 = vmax.f32 %v60_v13, 0.0  ;;  %v77_v24 = vmax.f32 %v61_v14, 0.0  ;;  %v64_v25 = vadd.f32 %v293_v5, %v41_v15  ;;  %v78_v28 = vmax.f32 %v62_v18, 0.0 }
   0x8   :  { %v79_v29 = vmax.f32 %v63_v19, 0.0  ;;  %v81_v36 = vmax.f32 %v65_v26, 0.0  ;;  %v45_v37 = vmul.f32 %v286_v2, %v22_v22  ;;  %v82_v41 = vmax.f32 %v66_v30, 0.0 }
   0x9   :  { %v213_v34 = vpack.c.bf16 %v77_v24, %v76_v23  ;;  %v80_v35 = vmax.f32 %v64_v25, 0.0  ;;  %v83_v42 = vmax.f32 %v67_v31, 0.0  ;;  %v46_v43 = vmul.f32 %v286_v2, %v23_v27 }
   0xa   :  { %v218_v40 = vpack.c.bf16 %v79_v29, %v78_v28  ;;  %v68_v46 = vadd.f32 %v293_v5, %v45_v37  ;;  %v47_v47 = vmul.f32 %v286_v2, %v24_v32  ;;  %v48_v48 = vmul.f32 %v286_v2, %v25_v33 }
   0xb   :  { %214 = vst [vmem:[%s394_s3] sm:$0xff] %v213_v34   ;;  %v223_v45 = vpack.c.bf16 %v81_v36, %v80_v35  ;;  %v228_v50 = vpack.c.bf16 %v83_v42, %v82_v41  ;;  %v69_v51 = vadd.f32 %v293_v5, %v46_v43  ;;  %v49_v52 = vmul.f32 %v286_v2, %v26_v38 }
   0xc   :  { %250 = vst [vmem:[%s394_s3 + $0x8] sm:$0xff] %v218_v40   ;;  %v50_v53 = vmul.f32 %v286_v2, %v27_v39  ;;  %v84_v54 = vmax.f32 %v68_v46, 0.0  ;;  %v70_v55 = vadd.f32 %v293_v5, %v47_v47  ;;  %v71_v56 = vadd.f32 %v293_v5, %v48_v48 }
   0xd   :  { %251 = vst [vmem:[%s394_s3 + $0x10] sm:$0xff] %v223_v45   ;;  %v51_v57 = vmul.f32 %v286_v2, %v28_v44  ;;  %252 = vst [vmem:[%s394_s3 + $0x18] sm:$0xff] %v228_v50   ;;  %v85_v58 = vmax.f32 %v69_v51, 0.0  ;;  %v72_v59 = vadd.f32 %v293_v5, %v49_v52  ;;  %v52_v61 = vmul.f32 %v286_v2, %v29_v49 }
   0xe   :  { %v73_v60 = vadd.f32 %v293_v5, %v50_v53  ;;  %v86_v62 = vmax.f32 %v70_v55, 0.0  ;;  %v87_v63 = vmax.f32 %v71_v56, 0.0 }
   0xf   :  { %v74_v0 = vadd.f32 %v293_v5, %v51_v57  ;;  %v233_v1 = vpack.c.bf16 %v85_v58, %v84_v54  ;;  %v88_v3 = vmax.f32 %v72_v59, 0.0  ;;  %v75_v6 = vadd.f32 %v293_v5, %v52_v61 }
  0x10   :  { %v89_v4 = vmax.f32 %v73_v60, 0.0  ;;  %v238_v7 = vpack.c.bf16 %v87_v63, %v86_v62 }
  0x11   :  { %v90_v8 = vmax.f32 %v74_v0, 0.0  ;;  %253 = vst [vmem:[%s394_s3 + $0x20] sm:$0xff] %v233_v1   ;;  %v91_v10 = vmax.f32 %v75_v6, 0.0 }
  0x12   :  { %v243_v9 = vpack.c.bf16 %v89_v4, %v88_v3  ;;  %254 = vst [vmem:[%s394_s3 + $0x28] sm:$0xff] %v238_v7  }
  0x13   :  { %v248_v2 = vpack.c.bf16 %v91_v10, %v90_v8 }
  0x14   :  { %255 = vst [vmem:[%s394_s3 + $0x30] sm:$0xff] %v243_v9  }
  0x15   :  { %256 = vst [vmem:[%s394_s3 + $0x38] sm:$0xff] %v248_v2  }

// kernel: preact_block_forward.11
= control target key start
LH: loop header
LB: loop body
LE: loop exit
PB: predicated region body
PF: predicated region fallthrough
CT: control target
= control target key end

     0   :  { %v102_v0 = vmov 0.0   ;;  %vm88_vm0 = vcmask 1040384   ;;  %s164_s0 = inlined_call_operand.vmem [shape: f32[128,128], index: 0, kind: input, shape index: {}]   ;;  %s165_s1 = inlined_call_operand.vmem [shape: f32[2,128], index: 1, kind: output, shape index: {}]  }
   0x1   :  { %12 = vst [vmem:[#allocation2] sm:$0x3] %v102_v0  ;;  %v13_v1 = vld [vmem:[%s164_s0] sm:$0xff]  ;;  %v14_v2 = vld [vmem:[%s164_s0 + $0x8] sm:$0xff]  ;;  %v15_v3 = vld [vmem:[%s164_s0 + $0x10] sm:$0xff] }
   0x2   :  { %v16_v4 = vld [vmem:[%s164_s0 + $0x18] sm:$0xff]  ;;  %v29_v5 = vadd.f32 %v14_v2, %v13_v1  ;;  %v50_v6 = vmul.f32 %v13_v1, %v13_v1  ;;  %v51_v7 = vmul.f32 %v14_v2, %v14_v2  ;;  %v52_v8 = vmul.f32 %v15_v3, %v15_v3  ;;  %v17_v9 = vld [vmem:[%s164_s0 + $0x20] sm:$0xff]  ;;  %v18_v13 = vld [vmem:[%s164_s0 + $0x28] sm:$0xff] }
   0x3   :  { %v53_v11 = vmul.f32 %v16_v4, %v16_v4  ;;  %v54_v15 = vmul.f32 %v17_v9, %v17_v9  ;;  %v19_v17 = vld [vmem:[%s164_s0 + $0x30] sm:$0xff]  ;;  %v55_v19 = vmul.f32 %v18_v13, %v18_v13  ;;  %v20_v21 = vld [vmem:[%s164_s0 + $0x38] sm:$0xff]  ;;  %v21_v25 = vld [vmem:[%s164_s0 + $0x40] sm:$0xff] }
   0x4   :  { %v30_v10 = vadd.f32 %v29_v5, %v15_v3  ;;  %v66_v12 = vadd.f32 %v51_v7, %v50_v6  ;;  %v56_v23 = vmul.f32 %v19_v17, %v19_v17  ;;  %v57_v27 = vmul.f32 %v20_v21, %v20_v21  ;;  %v22_v29 = vld [vmem:[%s164_s0 + $0x48] sm:$0xff]  ;;  %v23_v33 = vld [vmem:[%s164_s0 + $0x50] sm:$0xff]  ;;  %v24_v37 = vld [vmem:[%s164_s0 + $0x58] sm:$0xff] }
   0x5   :  { %v58_v31 = vmul.f32 %v21_v25, %v21_v25  ;;  %v59_v35 = vmul.f32 %v22_v29, %v22_v29  ;;  %v60_v39 = vmul.f32 %v23_v33, %v23_v33  ;;  %v25_v41 = vld [vmem:[%s164_s0 + $0x60] sm:$0xff]  ;;  %v61_v43 = vmul.f32 %v24_v37, %v24_v37  ;;  %v26_v45 = vld [vmem:[%s164_s0 + $0x68] sm:$0xff]  ;;  %v27_v49 = vld [vmem:[%s164_s0 + $0x70] sm:$0xff] }
   0x6   :  { %v31_v14 = vadd.f32 %v30_v10, %v16_v4  ;;  %v67_v16 = vadd.f32 %v66_v12, %v52_v8  ;;  %v62_v47 = vmul.f32 %v25_v41, %v25_v41  ;;  %v63_v51 = vmul.f32 %v26_v45, %v26_v45  ;;  %v28_v53 = vld [vmem:[%s164_s0 + $0x78] sm:$0xff] }
   0x7   :  { %v64_v55 = vmul.f32 %v27_v49, %v27_v49  ;;  %v65_v58 = vmul.f32 %v28_v53, %v28_v53 }
   0x8   :  { %v32_v18 = vadd.f32 %v31_v14, %v17_v9  ;;  %v68_v20 = vadd.f32 %v67_v16, %v53_v11  ;;  %v87_v11 = vld [vmem:[#allocation2] sm:$0x3] }
   0xa   :  { %v33_v22 = vadd.f32 %v32_v18, %v18_v13  ;;  %v69_v24 = vadd.f32 %v68_v20, %v54_v15 }
   0xc   :  { %v34_v26 = vadd.f32 %v33_v22, %v19_v17  ;;  %v70_v28 = vadd.f32 %v69_v24, %v55_v19 }
   0xe   :  { %v35_v30 = vadd.f32 %v34_v26, %v20_v21  ;;  %v71_v32 = vadd.f32 %v70_v28, %v56_v23 }
  0x10   :  { %v36_v34 = vadd.f32 %v35_v30, %v21_v25  ;;  %v72_v36 = vadd.f32 %v71_v32, %v57_v27 }
  0x12   :  { %v37_v38 = vadd.f32 %v36_v34, %v22_v29  ;;  %v73_v40 = vadd.f32 %v72_v36, %v58_v31 }
  0x14   :  { %v38_v42 = vadd.f32 %v37_v38, %v23_v33  ;;  %v74_v44 = vadd.f32 %v73_v40, %v59_v35 }
  0x16   :  { %v39_v46 = vadd.f32 %v38_v42, %v24_v37  ;;  %v75_v48 = vadd.f32 %v74_v44, %v60_v39 }
  0x18   :  { %v40_v50 = vadd.f32 %v39_v46, %v25_v41  ;;  %v76_v52 = vadd.f32 %v75_v48, %v61_v43 }
  0x1a   :  { %v41_v54 = vadd.f32 %v40_v50, %v26_v45  ;;  %v77_v56 = vadd.f32 %v76_v52, %v62_v47 }
  0x1c   :  { %v42_v57 = vadd.f32 %v41_v54, %v27_v49  ;;  %v78_v59 = vadd.f32 %v77_v56, %v63_v51 }
  0x1e   :  { %v43_v60 = vadd.f32 %v42_v57, %v28_v53  ;;  %v79_v61 = vadd.f32 %v78_v59, %v64_v55 }
  0x20   :  { %v44_v62 = vrot.slane %v43_v60, 4  ;;  %v80_v63 = vadd.f32 %v79_v61, %v65_v58 }
  0x22   :  { %v45_v0 = vadd.f32 %v44_v62, %v43_v60  ;;  %v81_v1 = vrot.slane %v80_v63, 4 }
  0x24   :  { %v46_v2 = vrot.slane %v45_v0, 2  ;;  %v82_v3 = vadd.f32 %v81_v1, %v80_v63 }
  0x26   :  { %v47_v4 = vadd.f32 %v46_v2, %v45_v0  ;;  %v83_v5 = vrot.slane %v82_v3, 2 }
  0x28   :  { %v48_v6 = vrot.slane %v47_v4, 1  ;;  %v84_v7 = vadd.f32 %v83_v5, %v82_v3 }
  0x2a   :  { %v49_v8 = vadd.f32 %v48_v6, %v47_v4  ;;  %v85_v9 = vrot.slane %v84_v7, 1 }
  0x2c   :  { %v86_v10 = vadd.f32 %v85_v9, %v84_v7 }
  0x2e   :  { %v89_v12 = vsel %vm88_vm0, %v49_v8, %v86_v10 }
  0x2f   :  { %v90_v13 = vadd.f32 %v89_v12, %v87_v11 }
  0x31   :  { %91 = vst [vmem:[#allocation2] sm:$0x3] %v90_v13 }
  0x38   :  { %v95_v14 = vld [vmem:[#allocation2] sm:$0x3] }
  0x39   :  { %96 = vst [vmem:[%s165_s1] sm:$0x3] %v95_v14 }

// kernel: preact_block_forward.9
= control target key start
LH: loop header
LB: loop body
LE: loop exit
PB: predicated region body
PF: predicated region fallthrough
CT: control target
= control target key end

     0   :  { %s2970_s12 = smov 0   ;;  %s3339_s0 = inlined_call_operand.vmem [shape: bf16[8,9,9,128], index: 0, kind: input, shape index: {}]   ;;  %s3340_s1 = inlined_call_operand.vmem [shape: bf16[9,128,128], index: 1, kind: input, shape index: {}]   ;;  %s3341_s2 = inlined_call_operand.vmem [shape: f32[1,128], index: 2, kind: input, shape index: {}]   ;;  %s3342_s3 = inlined_call_operand.vmem [shape: f32[2,64,128], index: 3, kind: output, shape index: {}]  }
   0x1 LB: > { %s2976_s13 = sadd.s32 4294967295, %s2948_s12   ;;  %p2116_p0 = scmp.ge.s32.totalorder %s2948_s12, 1  ;;  %s2948_s12 = sphi %s2970_s12, %s13_s12  }
   0x2   : > { %p139_p1 = scmp.lt.s32.totalorder %s2948_s12, 3 }
   0x4   : > { %p140_p2 = pnand %p2116_p0, %p139_p1 }
   0x5   : > { %v2846_v0 = vld [vmem:[%s3340_s1 + $0x40] sm:$0xff] (!%p140_p2)   ;;  %s2117_s16 = sshll.u32 (!%p140_p2), %s2976_s13, 2  ;;  %v2848_v2 = vld [vmem:[%s3340_s1 + $0x48] sm:$0xff] (!%p140_p2)   ;;  %v2850_v4 = vld [vmem:[%s3340_s1 + $0x50] sm:$0xff] (!%p140_p2)   ;;  %vm517_vm0 = vsmask.f32 (!%p140_p2), 3328 }
   0x6   : > { %143 = sbr.rel (%p140_p2) target bundleno = 387 (0x183), region = 32  ;;  %v2847_v1 = vld [vmem:[%s3340_s1 + $0x100] sm:$0xff] (!%p140_p2)   ;;  %p165_p3 = scmp.lt.s32.totalorder (!%p140_p2), %s2117_s16, 7  ;;  %2541 = vmatprep.subr.bf16.mxu1 (!%p140_p2), %v2846_v0  ;;  %v2849_v3 = vld [vmem:[%s3340_s1 + $0x108] sm:$0xff] (!%p140_p2)   ;;  %v2851_v5 = vld [vmem:[%s3340_s1 + $0x110] sm:$0xff] (!%p140_p2)  }
   0x7   : > { %2637 = vmatprep.subr.bf16.mxu0 (!%p140_p2), %v2847_v1  ;;  %2542 = vmatpush3.bf16.msra.mxu1 (!%p140_p2), %v2846_v0  ;;  %v2852_v6 = vld [vmem:[%s3340_s1 + $0x58] sm:$0xff] (!%p140_p2)   ;;  %v2854_v8 = vld [vmem:[%s3340_s1 + $0x60] sm:$0xff] (!%p140_p2)   ;;  %v2856_v10 = vld [vmem:[%s3340_s1 + $0x68] sm:$0xff] (!%p140_p2)   ;;  %vm518_vm1 = vsmask.f32 (!%p140_p2), 7440  ;;  %p171_p4 = scmp.lt.s32.totalorder (!%p140_p2), %s2976_s13, 1 }
   0x8   : > { %2638 = vmatpush3.bf16.msra.mxu0 (!%p140_p2), %v2847_v1  ;;  %2543 = vmatprep.subr.bf16.mxu1 (!%p140_p2), %v2848_v2  ;;  %v2853_v7 = vld [vmem:[%s3340_s1 + $0x118] sm:$0xff] (!%p140_p2)   ;;  %v2855_v9 = vld [vmem:[%s3340_s1 + $0x120] sm:$0xff] (!%p140_p2)   ;;  %v2857_v12 = vld [vmem:[%s3340_s1 + $0x128] sm:$0xff] (!%p140_p2)  }
   0x9   : > { %2639 = vmatprep.subr.bf16.mxu0 (!%p140_p2), %v2849_v3  ;;  %v2858_v14 = vld [vmem:[%s3340_s1 + $0x70] sm:$0xff] (!%p140_p2)   ;;  %v2860_v16 = vld [vmem:[%s3340_s1 + $0x78] sm:$0xff] (!%p140_p2)   ;;  %v2863_v18 = vld [vmem:[%s3340_s1] sm:$0xff] (!%p140_p2)  }
   0xa   : > { %v2859_v15 = vld [vmem:[%s3340_s1 + $0x130] sm:$0xff] (!%p140_p2)   ;;  %v2861_v17 = vld [vmem:[%s3340_s1 + $0x138] sm:$0xff] (!%p140_p2)   ;;  %v2865_v19 = vld [vmem:[%s3340_s1 + $0x140] sm:$0xff] (!%p140_p2)  }
   0xb   : > { %2544 = vmatpush3.bf16.msra.mxu1 (!%p140_p2), %v2848_v2  ;;  %v2868_v22 = vld [vmem:[%s3340_s1 + $0x8] sm:$0xff] (!%p140_p2)   ;;  %v2870_v26 = vld [vmem:[%s3340_s1 + $0x10] sm:$0xff] (!%p140_p2)   ;;  %v2872_v28 = vld [vmem:[%s3340_s1 + $0x18] sm:$0xff] (!%p140_p2)  }
   0xc   : > { %2640 = vmatpush3.bf16.msra.mxu0 (!%p140_p2), %v2849_v3  ;;  %2545 = vmatprep.subr.bf16.mxu1 (!%p140_p2), %v2850_v4  ;;  %v2869_v23 = vld [vmem:[%s3340_s1 + $0x148] sm:$0xff] (!%p140_p2)   ;;  %v2871_v27 = vld [vmem:[%s3340_s1 + $0x150] sm:$0xff] (!%p140_p2)   ;;  %v2873_v31 = vld [vmem:[%s3340_s1 + $0x158] sm:$0xff] (!%p140_p2)  }
   0xd   : > { %s3346_s16 = smov (!%p165_p3, %s2117_s16), 7  ;;  %2641 = vmatprep.subr.bf16.mxu0 %v2851_v5  ;;  %v2874_v38 = vld [vmem:[%s3340_s1 + $0x20] sm:$0xff]   ;;  %v2876_v47 = vld [vmem:[%s3340_s1 + $0x28] sm:$0xff]   ;;  %vm3085_vm2 = vmor %vm517_vm0, %vm518_vm1  ;;  %s3348_s13 = smov (!%p171_p4, %s2976_s13), 1 }
   0xe   : > { %s2837_s4 = smul.u32 72, %s3346_s16  ;;  %v2875_v43 = vld [vmem:[%s3340_s1 + $0x160] sm:$0xff]   ;;  %v2877_v50 = vld [vmem:[%s3340_s1 + $0x168] sm:$0xff]   ;;  %v2879_v2 = vld [vmem:[%s3340_s1 + $0x30] sm:$0xff]   ;;  %s2432_s17 = sshll.u32 %s3348_s13, 6 }
   0xf   : > { %2546 = vmatpush3.bf16.msra.mxu1 %v2850_v4  ;;  %s175_s22 = scalar_lea.vmem %s3342_s3, %s2432_s17 }
  0x10   : > { %2642 = vmatpush3.bf16.msra.mxu0 %v2851_v5  ;;  %2547 = vmatprep.subr.bf16.mxu1 %v2852_v6  ;;  %s3014_s11 = scalar_lea.vmem %s3339_s0, %s2837_s4 }
  0x11   : > { %2643 = vmatprep.subr.bf16.mxu0 %v2853_v7  ;;  %v2862_v11 = vld [vmem:[%s3014_s11 + $0x48] ss:$8 sps:$4 sm:$0xff]   ;;  %v2864_v13 = vld [vmem:[%s3014_s11 + $0xd8] ss:$8 sps:$4 sm:$0xff]   ;;  %v2270_v34 = vld [vmem:[%s3014_s11 + $0x94] sm:$0x1] }
  0x12   : > { %2557 = vmatprep.mubr.bf16.mxu1 %v2862_v11  ;;  %2653 = vmatprep.mubr.bf16.mxu0 %v2864_v13  ;;  %v2866_v20 = vld [vmem:[%s3014_s11 + $0x58] ss:$8 sps:$4 sm:$0xff]   ;;  %v2867_v21 = vld [vmem:[%s3014_s11 + $0xe8] ss:$8 sps:$4 sm:$0xff]   ;;  %v2272_v39 = vld [vmem:[%s3014_s11 + $0x9c] sm:$0x1] }
  0x13   : > { %2548 = vmatpush3.bf16.msra.mxu1 %v2852_v6  ;;  %v2878_v24 = vld [vmem:[%s3014_s11 + $0x68] ss:$8 sps:$4 sm:$0xff]   ;;  %v2880_v25 = vld [vmem:[%s3014_s11 + $0xf8] ss:$8 sps:$4 sm:$0xff]   ;;  %v1154_v40 = vshll.u32 %v2270_v34, 16  ;;  %v1168_v46 = vshll.u32 %v2272_v39, 16 }
  0x14   : > { %2644 = vmatpush3.bf16.msra.mxu0 %v2853_v7  ;;  %2549 = vmatprep.subr.bf16.mxu1 %v2854_v8  ;;  %v2882_v29 = vld [vmem:[%s3014_s11 + $0x78] ss:$8 sps:$4 sm:$0xff]   ;;  %v2883_v30 = vld [vmem:[%s3014_s11 + $0x108] ss:$8 sps:$4 sm:$0xff]   ;;  %v2274_v57 = vld [vmem:[%s3014_s11 + $0xa4] sm:$0x1] }
  0x15   : > { %2645 = vmatprep.subr.bf16.mxu0 %v2855_v9  ;;  %v2886_v32 = vld [vmem:[%s3014_s11] ss:$8 sps:$4 sm:$0xff]   ;;  %v2269_v33 = vld [vmem:[%s3014_s11 + $0x90] sm:$0xf]  ;;  %v2271_v35 = vld [vmem:[%s3014_s11 + $0x98] sm:$0xf] }
  0x16   : > { %v1145_v36 = vshrl.u32 %v2269_v33, 16  ;;  %v1148_v37 = vshll.u32 %v2269_v33, 16  ;;  %v1159_v41 = vshrl.u32 %v2271_v35, 16  ;;  %v1162_v42 = vshll.u32 %v2271_v35, 16  ;;  %v2273_v56 = vld [vmem:[%s3014_s11 + $0xa0] sm:$0xf] }
  0x17   : > { %2550 = vmatpush3.bf16.msra.mxu1 %v2854_v8  ;;  %v1156_v52 = vrot.slane %v1154_v40, 5  ;;  %v1170_v55 = vrot.slane %v1168_v46, 5  ;;  %v2275_v59 = vld [vmem:[%s3014_s11 + $0xa8] sm:$0xf]  ;;  %v2276_v60 = vld [vmem:[%s3014_s11 + $0xac] sm:$0x1] }
  0x18   : > { %2646 = vmatpush3.bf16.msra.mxu0 %v2855_v9  ;;  %2551 = vmatprep.subr.bf16.mxu1 %v2856_v10  ;;  %v1147_v44 = vrot.slane %v1145_v36, 4  ;;  %v1150_v45 = vrot.slane %v1148_v37, 5  ;;  %v1161_v48 = vrot.slane %v1159_v41, 4  ;;  %v1164_v49 = vrot.slane %v1162_v42, 5  ;;  %v2881_v6 = vld [vmem:[%s3340_s1 + $0x170] sm:$0xff]  }
  0x19   : > { %2647 = vmatprep.subr.bf16.mxu0 %v2857_v12  ;;  %v1173_v61 = vshrl.u32 %v2273_v56, 16  ;;  %v1176_v63 = vshll.u32 %v2273_v56, 16  ;;  %v1182_v0 = vshll.u32 %v2274_v57, 16  ;;  %v1187_v1 = vshrl.u32 %v2275_v59, 16  ;;  %v2900_v37 = vld [vmem:[%s3014_s11 + $0x20] ss:$8 sps:$4 sm:$0xff]  }
  0x1a   : > { %v1151_v51 = vor.u32 %v1150_v45, %v1147_v44  ;;  %v1165_v54 = vor.u32 %v1164_v49, %v1161_v48  ;;  %v1190_v5 = vshll.u32 %v2275_v59, 16  ;;  %v2903_v48 = vld [vmem:[%s3014_s11 + $0x30] ss:$8 sps:$4 sm:$0xff]   ;;  %v2281_v49 = vld [vmem:[%s3014_s11 + $0xc0] sm:$0xf] }
  0x1b   : > { %2552 = vmatpush3.bf16.msra.mxu1 %v2856_v10  ;;  %v1175_v4 = vrot.slane %v1173_v61, 4  ;;  %v1178_v8 = vrot.slane %v1176_v63, 5  ;;  %v1189_v9 = vrot.slane %v1187_v1, 4  ;;  %v1196_v10 = vshll.u32 %v2276_v60, 16  ;;  %v2894_v59 = vld [vmem:[%s3340_s1 + $0x98] sm:$0xff]  }
  0x1c   : > { %2648 = vmatpush3.bf16.msra.mxu0 %v2857_v12  ;;  %2553 = vmatprep.subr.bf16.mxu1 %v2858_v14  ;;  %v1152_v58 = vrot.slane %v1151_v51, 4  ;;  %v1166_v62 = vrot.slane %v1165_v54, 4  ;;  %v1184_v12 = vrot.slane %v1182_v0, 5  ;;  %v1192_v13 = vrot.slane %v1190_v5, 5  ;;  %v2283_v51 = vld [vmem:[%s3014_s11 + $0xc8] sm:$0xf] }
  0x1d   : > { %2649 = vmatprep.subr.bf16.mxu0 %v2859_v15  ;;  %v1229_v56 = vshrl.u32 %v2281_v49, 16  ;;  %v1232_v57 = vshll.u32 %v2281_v49, 16  ;;  %v1243_v61 = vshrl.u32 %v2283_v51, 16 }
  0x1e   : > { %v1157_v3 = vsel %vm3085_vm2, %v1152_v58, %v1156_v52  ;;  %v1171_v7 = vsel %vm3085_vm2, %v1166_v62, %v1170_v55  ;;  %v2893_v52 = vld [vmem:[%s3340_s1 + $0x190] sm:$0xff]   ;;  %v2284_v55 = vld [vmem:[%s3014_s11 + $0xcc] sm:$0x1]  ;;  %v1246_v62 = vshll.u32 %v2283_v51, 16 }
  0x1f   : > { %2554 = vmatpush3.bf16.msra.mxu1 %v2858_v14  ;;  %v2301_v11 = vcombine.low %v1157_v3, %v1171_v7  ;;  %v2884_v14 = vld [vmem:[%s3340_s1 + $0x38] sm:$0xff]   ;;  %v1252_v63 = vshll.u32 %v2284_v55, 16  ;;  %v1231_v1 = vrot.slane %v1229_v56, 4 }
  0x20   : > { %2650 = vmatpush3.bf16.msra.mxu0 %v2859_v15  ;;  %2555 = vmatprep.subr.bf16.mxu1 %v2860_v16  ;;  %v1179_v15 = vor.u32 %v1178_v8, %v1175_v4  ;;  %v2895_v4 = vld [vmem:[%s3340_s1 + $0x198] sm:$0xff]   ;;  %v1248_v7 = vrot.slane %v1246_v62, 5 }
  0x21   : > { %2651 = vmatprep.subr.bf16.mxu0 %v2861_v17  ;;  %v1254_v8 = vrot.slane %v1252_v63, 5 }
  0x23   : > { %2556 = vmatpush3.bf16.msra.mxu1 %v2860_v16  ;;  %v1193_v16 = vor.u32 %v1192_v13, %v1189_v9  ;;  %v2896_v13 = vld [vmem:[%s3340_s1 + $0xa0] sm:$0xff]  }
  0x24   : > { %2652 = vmatpush3.bf16.msra.mxu0 %v2861_v17  ;;  %2565 = vmatprep.subr.bf16.mxu1 %v2863_v18  ;;  %v1180_v17 = vrot.slane %v1179_v15, 4 }
  0x25   : > { %2661 = vmatprep.subr.bf16.mxu0 %v2865_v19 }
  0x26   : > { %2558 = vmatmul.mubr.bf16.vlgmr.msra.gmra.mrb[0].mxu1 %v2866_v20  ;;  %v1194_v20 = vrot.slane %v1193_v16, 4  ;;  %v503_v16 = vld [vmem:[%s3014_s11 + $0x8] sm:$0xf] }
  0x27   : > { %2566 = vmatpush3.bf16.msra.mxu1 %v2863_v18  ;;  %2654 = vmatmul.mubr.bf16.vlgmr.msra.gmra.mrb[0].mxu0 %v2867_v21  ;;  %v1198_v18 = vrot.slane %v1196_v10, 5  ;;  %v2887_v21 = vld [vmem:[%s3340_s1 + $0x80] sm:$0xff]  }
  0x28   : > { %2662 = vmatpush3.bf16.msra.mxu0 %v2865_v19  ;;  %2567 = vmatprep.subr.bf16.mxu1 %v2868_v22  ;;  %v2885_v19 = vld [vmem:[%s3340_s1 + $0x178] sm:$0xff]  }
  0x29   : > { %2663 = vmatprep.subr.bf16.mxu0 %v2869_v23  ;;  %2561 = vmatprep.mubr.bf16.mxu1 %v2878_v24  ;;  %v2888_v24 = vld [vmem:[%s3340_s1 + $0x180] sm:$0xff]  }
  0x2a   : > { %2657 = vmatprep.mubr.bf16.mxu0 %v2880_v25  ;;  %v2889_v25 = vld [vmem:[%s3014_s11 + $0x10] ss:$8 sps:$4 sm:$0xff]  }
  0x2b   : > { %2568 = vmatpush3.bf16.msra.mxu1 %v2868_v22  ;;  %v1185_v22 = vsel %vm3085_vm2, %v1180_v17, %v1184_v12  ;;  %v502_v12 = vld [vmem:[%s3014_s11 + $0x4] sm:$0x1]  ;;  %v504_v17 = vld [vmem:[%s3014_s11 + $0xc] sm:$0x1] }
  0x2c   : > { %2664 = vmatpush3.bf16.msra.mxu0 %v2869_v23  ;;  %2569 = vmatprep.subr.bf16.mxu1 %v2870_v26  ;;  %v1199_v23 = vsel %vm3085_vm2, %v1194_v20, %v1198_v18 }
  0x2d   : > { %2665 = vmatprep.subr.bf16.mxu0 %v2871_v27 }
  0x2e   : > { %2562 = vmatmul.mubr.bf16.gmra.mrb[4].mxu1 %v2882_v29  ;;  %v2891_v29 = vld [vmem:[%s3340_s1 + $0x188] sm:$0xff]  }
  0x2f   : > { %2570 = vmatpush3.bf16.msra.mxu1 %v2870_v26  ;;  %2658 = vmatmul.mubr.bf16.gmra.mrb[4].mxu0 %v2883_v30  ;;  %v2890_v26 = vld [vmem:[%s3340_s1 + $0x88] sm:$0xff]   ;;  %v2278_v30 = vld [vmem:[%s3014_s11 + $0xb4] sm:$0x1] }
  0x30   : > { %2666 = vmatpush3.bf16.msra.mxu0 %v2871_v27  ;;  %2571 = vmatprep.subr.bf16.mxu1 %v2872_v28  ;;  %v2277_v27 = vld [vmem:[%s3014_s11 + $0xb0] sm:$0xf]  ;;  %v1210_v35 = vshll.u32 %v2278_v30, 16 }
  0x31   : > { %2667 = vmatprep.subr.bf16.mxu0 %v2873_v31  ;;  %2581 = vmatprep.mubr.bf16.mxu1 %v2886_v32  ;;  %v2280_v32 = vld [vmem:[%s3014_s11 + $0xbc] sm:$0x1]  ;;  %v1201_v33 = vshrl.u32 %v2277_v27, 16  ;;  %v1204_v34 = vshll.u32 %v2277_v27, 16  ;;  %v544_v27 = vshll.u32 %v504_v17, 16 }
  0x32   : > { %2677 = vmatprep.mubr.bf16.mxu0 %v2301_v11  ;;  %v1224_v39 = vshll.u32 %v2280_v32, 16  ;;  %v1212_v44 = vrot.slane %v1210_v35, 5  ;;  %v501_v11 = vld [vmem:[%s3014_s11] sm:$0xf]  ;;  %v2898_v32 = vld [vmem:[%s3340_s1 + $0xa8] sm:$0xff]  }
  0x33   : > { %2572 = vmatpush3.bf16.msra.mxu1 %v2872_v28  ;;  %v2302_v28 = vcombine.low %v1185_v22, %v1199_v23  ;;  %v1203_v40 = vrot.slane %v1201_v33, 4  ;;  %v1206_v41 = vrot.slane %v1204_v34, 5  ;;  %v521_v18 = vshrl.u32 %v501_v11, 16  ;;  %v512_v17 = vld [vmem:[%s3014_s11 + $0x2c] sm:$0x1] }
  0x34   : > { %2668 = vmatpush3.bf16.msra.mxu0 %v2873_v31  ;;  %2573 = vmatprep.subr.bf16.mxu1 %v2874_v38  ;;  %v2279_v31 = vld [vmem:[%s3014_s11 + $0xb8] sm:$0xf]  ;;  %v1226_v46 = vrot.slane %v1224_v39, 5  ;;  %v535_v22 = vshrl.u32 %v503_v16, 16  ;;  %v538_v23 = vshll.u32 %v503_v16, 16 }
  0x35   : > { %2669 = vmatprep.subr.bf16.mxu0 %v2875_v43  ;;  %v1215_v36 = vshrl.u32 %v2279_v31, 16  ;;  %v511_v16 = vld [vmem:[%s3014_s11 + $0x28] sm:$0xf] }
  0x36   : > { %v537_v30 = vrot.slane %v535_v22, 4  ;;  %v591_v22 = vshrl.u32 %v511_v16, 16 }
  0x37   : > { %2574 = vmatpush3.bf16.msra.mxu1 %v2874_v38  ;;  %v1218_v38 = vshll.u32 %v2279_v31, 16  ;;  %v1217_v42 = vrot.slane %v1215_v36, 4  ;;  %v540_v31 = vrot.slane %v538_v23, 5  ;;  %v546_v36 = vrot.slane %v544_v27, 5 }
  0x38   : > { %2670 = vmatpush3.bf16.msra.mxu0 %v2875_v43  ;;  %2575 = vmatprep.subr.bf16.mxu1 %v2876_v47  ;;  %v2892_v43 = vld [vmem:[%s3340_s1 + $0x90] sm:$0xff]   ;;  %v594_v23 = vshll.u32 %v511_v16, 16  ;;  %v2386_v16 = vld [vmem:[%s3014_s11 + $0xc] sm:$0x1] }
  0x39   : > { %2671 = vmatprep.subr.bf16.mxu0 %v2877_v50  ;;  %v1220_v45 = vrot.slane %v1218_v38, 5  ;;  %v2899_v38 = vld [vmem:[%s3340_s1 + $0x1a8] sm:$0xff]  }
  0x3b   : > { %2576 = vmatpush3.bf16.msra.mxu1 %v2876_v47  ;;  %v1207_v47 = vor.u32 %v1206_v41, %v1203_v40  ;;  %v1221_v54 = vor.u32 %v1220_v45, %v1217_v42  ;;  %v541_v40 = vor.u32 %v540_v31, %v537_v30  ;;  %v505_v41 = vld [vmem:[%s3014_s11 + $0x10] sm:$0xf]  ;;  %v596_v31 = vrot.slane %v594_v23, 5 }
  0x3c   : > { %2672 = vmatpush3.bf16.msra.mxu0 %v2877_v50  ;;  %2577 = vmatprep.subr.bf16.mxu1 %v2879_v2  ;;  %v2282_v50 = vld [vmem:[%s3014_s11 + $0xc4] sm:$0x1]  ;;  %v549_v45 = vshrl.u32 %v505_v41, 16  ;;  %v513_v30 = vld [vmem:[%s3014_s11 + $0x30] sm:$0xf] }
  0x3d   : > { %2673 = vmatprep.subr.bf16.mxu0 %v2881_v6  ;;  %v1238_v58 = vshll.u32 %v2282_v50, 16  ;;  %v1208_v60 = vrot.slane %v1207_v47, 4  ;;  %v1222_v0 = vrot.slane %v1221_v54, 4  ;;  %v508_v47 = vld [vmem:[%s3014_s11 + $0x1c] sm:$0x1] }
  0x3f   : > { %2578 = vmatpush3.bf16.msra.mxu1 %v2879_v2  ;;  %v1234_v2 = vrot.slane %v1232_v57, 5  ;;  %v1240_v3 = vrot.slane %v1238_v58, 5  ;;  %v1213_v5 = vsel %vm3085_vm2, %v1208_v60, %v1212_v44  ;;  %v1227_v9 = vsel %vm3085_vm2, %v1222_v0, %v1226_v46  ;;  %v507_v44 = vld [vmem:[%s3014_s11 + $0x18] sm:$0xf]  ;;  %v2902_v60 = vld [vmem:[%s3340_s1 + $0x1b0] sm:$0xff]  }
  0x40   : > { %2674 = vmatpush3.bf16.msra.mxu0 %v2881_v6  ;;  %2579 = vmatprep.subr.bf16.mxu1 %v2884_v14  ;;  %v1245_v6 = vrot.slane %v1243_v61, 4  ;;  %v542_v46 = vrot.slane %v541_v40, 4  ;;  %v563_v50 = vshrl.u32 %v507_v44, 16  ;;  %v566_v54 = vshll.u32 %v507_v44, 16 }
  0x41   : > { %2675 = vmatprep.subr.bf16.mxu0 %v2885_v19  ;;  %v1235_v10 = vor.u32 %v1234_v2, %v1231_v1  ;;  %v572_v58 = vshll.u32 %v508_v47, 16 }
  0x42   : > { %v1249_v15 = vor.u32 %v1248_v7, %v1245_v6  ;;  %v547_v55 = vsel %vm3085_vm2, %v542_v46, %v546_v36  ;;  %v565_v57 = vrot.slane %v563_v50, 4  ;;  %v568_v63 = vrot.slane %v566_v54, 5  ;;  %v2905_v6 = vld [vmem:[%s3340_s1 + $0x1b8] sm:$0xff]   ;;  %v2906_v7 = vld [vmem:[%s3340_s1 + $0xc0] sm:$0xff]  }
  0x43   : > { %2580 = vmatpush3.bf16.msra.mxu1 %v2884_v14  ;;  %v2303_v14 = vcombine.low %v1213_v5, %v1227_v9  ;;  %v1236_v20 = vrot.slane %v1235_v10, 4  ;;  %v2908_v10 = vld [vmem:[%s3340_s1 + $0x1c0] sm:$0xff]   ;;  %v2914_v50 = vld [vmem:[%s3340_s1 + $0xd8] sm:$0xff]  }
  0x44   : > { %2676 = vmatpush3.bf16.msra.mxu0 %v2885_v19  ;;  %2589 = vmatprep.subr.bf16.mxu1 %v2887_v21  ;;  %v524_v19 = vshll.u32 %v501_v11, 16  ;;  %v569_v1 = vor.u32 %v568_v63, %v565_v57  ;;  %v2909_v11 = vld [vmem:[%s3014_s11 + $0x18] ss:$8 sps:$4 sm:$0xff]  }
  0x45   : > { %2685 = vmatprep.subr.bf16.mxu0 %v2888_v24 }
  0x46   : > { %2582 = vmatmul.mubr.bf16.vlgmr.msra.gmra.mrb[0].mxu1 %v2889_v25  ;;  %v523_v25 = vrot.slane %v521_v18, 4  ;;  %v570_v5 = vrot.slane %v569_v1, 4  ;;  %v2911_v18 = vld [vmem:[%s3340_s1 + $0x1c8] sm:$0xff]   ;;  %v2916_v1 = vld [vmem:[%s3340_s1 + $0xe0] sm:$0xff]  }
  0x47   : > { %2590 = vmatpush3.bf16.msra.mxu1 %v2887_v21  ;;  %2678 = vmatmul.mubr.bf16.vlgmr.msra.gmra.mrb[0].mxu0 %v2302_v28  ;;  %v530_v21 = vshll.u32 %v502_v12, 16  ;;  %v2897_v28 = vld [vmem:[%s3340_s1 + $0x1a0] sm:$0xff]  }
  0x48   : > { %2686 = vmatpush3.bf16.msra.mxu0 %v2888_v24  ;;  %2591 = vmatprep.subr.bf16.mxu1 %v2890_v26  ;;  %v1250_v24 = vrot.slane %v1249_v15, 4  ;;  %v509_v12 = vld [vmem:[%s3014_s11 + $0x20] sm:$0xf]  ;;  %v510_v15 = vld [vmem:[%s3014_s11 + $0x24] sm:$0x1] }
  0x49   : > { %2687 = vmatprep.subr.bf16.mxu0 %v2891_v29  ;;  %2585 = vmatprep.mubr.bf16.mxu1 %v2900_v37  ;;  %v532_v35 = vrot.slane %v530_v21, 5  ;;  %v2907_v37 = vld [vmem:[%s3014_s11 + $0x8] ss:$8 sps:$4 sm:$0xff]   ;;  %v586_v21 = vshll.u32 %v510_v15, 16 }
  0x4a   : > { %2681 = vmatprep.mubr.bf16.mxu0 %v2303_v14  ;;  %v1255_v33 = vsel %vm3085_vm2, %v1250_v24, %v1254_v8  ;;  %v2910_v14 = vld [vmem:[%s3340_s1 + $0xc8] sm:$0xff]   ;;  %v600_v24 = vshll.u32 %v512_v17, 16  ;;  %v2387_v17 = vld [vmem:[%s3014_s11 + $0x10] sm:$0xf] }
  0x4b   : > { %2592 = vmatpush3.bf16.msra.mxu1 %v2890_v26  ;;  %v526_v26 = vrot.slane %v524_v19, 5  ;;  %v577_v19 = vshrl.u32 %v509_v12, 16  ;;  %v2385_v15 = vld [vmem:[%s3014_s11 + $0x8] sm:$0xf]  ;;  %v1786_v23 = vshll.u32 %v2387_v17, 16 }
  0x4c   : > { %2688 = vmatpush3.bf16.msra.mxu0 %v2891_v29  ;;  %2593 = vmatprep.subr.bf16.mxu1 %v2892_v43  ;;  %v1241_v29 = vsel %vm3085_vm2, %v1236_v20, %v1240_v3  ;;  %v574_v3 = vrot.slane %v572_v58, 5  ;;  %v580_v20 = vshll.u32 %v509_v12, 16  ;;  %v2922_v58 = vld [vmem:[%s3014_s11 + $0x38] ss:$8 sps:$4 sm:$0xff]  }
  0x4d   : > { %2689 = vmatprep.subr.bf16.mxu0 %v2893_v52  ;;  %v527_v34 = vor.u32 %v526_v26, %v523_v25  ;;  %v2304_v39 = vcombine.low %v1241_v29, %v1255_v33  ;;  %v2920_v25 = vld [vmem:[%s3014_s11 + $0x28] ss:$8 sps:$4 sm:$0xff]   ;;  %v579_v26 = vrot.slane %v577_v19, 4  ;;  %v593_v29 = vrot.slane %v591_v22, 4  ;;  %v514_v33 = vld [vmem:[%s3014_s11 + $0x34] sm:$0x1] }
  0x4e   : > { %2586 = vmatmul.mubr.bf16.gmra.mrb[4].mxu1 %v2903_v48  ;;  %v552_v48 = vshll.u32 %v505_v41, 16  ;;  %v575_v9 = vsel %vm3085_vm2, %v570_v5, %v574_v3  ;;  %v582_v27 = vrot.slane %v580_v20, 5  ;;  %v614_v40 = vshll.u32 %v514_v33, 16  ;;  %v2913_v41 = vld [vmem:[%s3340_s1 + $0x1d0] sm:$0xff]   ;;  %v2917_v5 = vld [vmem:[%s3340_s1 + $0x1e0] sm:$0xff]   ;;  %v2924_v12 = vld [vmem:[%s3340_s1 + $0xf8] sm:$0xff]  }
  0x4f   : > { %2594 = vmatpush3.bf16.msra.mxu1 %v2892_v43  ;;  %v528_v42 = vrot.slane %v527_v34, 4  ;;  %v506_v43 = vld [vmem:[%s3014_s11 + $0x14] sm:$0x1]  ;;  %2682 = vmatmul.mubr.bf16.gmra.mrb[4].mxu0 %v2304_v39  ;;  %v515_v34 = vld [vmem:[%s3014_s11 + $0x38] sm:$0xf]  ;;  %v608_v39 = vshll.u32 %v513_v30, 16 }
  0x50   : > { %2690 = vmatpush3.bf16.msra.mxu0 %v2893_v52  ;;  %2595 = vmatprep.subr.bf16.mxu1 %v2894_v59  ;;  %v558_v49 = vshll.u32 %v506_v43, 16  ;;  %v551_v52 = vrot.slane %v549_v45, 4  ;;  %v554_v56 = vrot.slane %v552_v48, 5  ;;  %v583_v36 = vor.u32 %v582_v27, %v579_v26  ;;  %v2396_v33 = vld [vmem:[%s3014_s11 + $0x34] sm:$0x1] }
  0x51   : > { %2691 = vmatprep.subr.bf16.mxu0 %v2895_v4  ;;  %v533_v51 = vsel %vm3085_vm2, %v528_v42, %v532_v35  ;;  %2701 = vmatprep.mubr.bf16.mxu0 %v2907_v37  ;;  %v2912_v35 = vld [vmem:[%s3340_s1 + $0xd0] sm:$0xff]   ;;  %v516_v37 = vld [vmem:[%s3014_s11 + $0x3c] sm:$0x1]  ;;  %v597_v42 = vor.u32 %v596_v31, %v593_v29  ;;  %v619_v43 = vshrl.u32 %v515_v34, 16  ;;  %v622_v44 = vshll.u32 %v515_v34, 16 }
  0x52   : > { %v2185_v61 = vcombine.low %v533_v51, %v547_v55  ;;  %v560_v62 = vrot.slane %v558_v49, 5  ;;  %v555_v0 = vor.u32 %v554_v56, %v551_v52  ;;  %v628_v45 = vshll.u32 %v516_v37, 16  ;;  %v2395_v29 = vld [vmem:[%s3014_s11 + $0x30] sm:$0xf]  ;;  %v2929_v34 = vld [vmem:[%s3014_s11 + $0x60] ss:$8 sps:$4 sm:$0xff]  }
  0x53   : > { %2596 = vmatpush3.bf16.msra.mxu1 %v2894_v59  ;;  %v2901_v59 = vld [vmem:[%s3340_s1 + $0xb0] sm:$0xff]   ;;  %v584_v46 = vrot.slane %v583_v36, 4  ;;  %v610_v48 = vrot.slane %v608_v39, 5  ;;  %v616_v49 = vrot.slane %v614_v40, 5  ;;  %v598_v51 = vrot.slane %v597_v42, 4  ;;  %v2931_v39 = vld [vmem:[%s3340_s1 + $0x208] sm:$0xff]  }
  0x54   : > { %2692 = vmatpush3.bf16.msra.mxu0 %v2895_v4  ;;  %2597 = vmatprep.subr.bf16.mxu1 %v2896_v13  ;;  %v556_v2 = vrot.slane %v555_v0, 4  ;;  %v2904_v4 = vld [vmem:[%s3340_s1 + $0xb8] sm:$0xff]   ;;  %v621_v52 = vrot.slane %v619_v43, 4  ;;  %v624_v54 = vrot.slane %v622_v44, 5  ;;  %v630_v55 = vrot.slane %v628_v45, 5 }
  0x55   : > { %2693 = vmatprep.subr.bf16.mxu0 %v2897_v28  ;;  %2605 = vmatprep.mubr.bf16.mxu1 %v2185_v61  ;;  %v2915_v61 = vld [vmem:[%s3340_s1 + $0x1d8] sm:$0xff]   ;;  %v1769_v19 = vshrl.u32 %v2385_v15, 16  ;;  %v1772_v20 = vshll.u32 %v2385_v15, 16  ;;  %v1783_v22 = vshrl.u32 %v2387_v17, 16  ;;  %v1842_v42 = vshll.u32 %v2395_v29, 16  ;;  %v2938_v15 = vld [vmem:[%s3340_s1 + $0x220] sm:$0xff]  }
  0x56   : > { %v561_v8 = vsel %vm3085_vm2, %v556_v2, %v560_v62  ;;  %v1848_v43 = vshll.u32 %v2396_v33, 16  ;;  %v2932_v44 = vld [vmem:[%s3014_s11 + $0xb0] ss:$8 sps:$4 sm:$0xff]  }
  0x57   : > { %2598 = vmatpush3.bf16.msra.mxu1 %v2896_v13  ;;  %v2186_v13 = vcombine.low %v561_v8, %v575_v9  ;;  %v2918_v8 = vld [vmem:[%s3340_s1 + $0xe8] sm:$0xff]   ;;  %v1771_v26 = vrot.slane %v1769_v19, 4  ;;  %v1774_v27 = vrot.slane %v1772_v20, 5  ;;  %v1785_v31 = vrot.slane %v1783_v22, 4 }
  0x58   : > { %2694 = vmatpush3.bf16.msra.mxu0 %v2897_v28  ;;  %2599 = vmatprep.subr.bf16.mxu1 %v2898_v32  ;;  %v588_v28 = vrot.slane %v586_v21, 5  ;;  %v2919_v9 = vld [vmem:[%s3340_s1 + $0x1e8] sm:$0xff]   ;;  %v1778_v21 = vshll.u32 %v2386_v16, 16 }
  0x59   : > { %2695 = vmatprep.subr.bf16.mxu0 %v2899_v38  ;;  %v2939_v20 = vld [vmem:[%s3340_s1 + $0x228] sm:$0xff]  }
  0x5a   : > { %v589_v56 = vsel %vm3085_vm2, %v584_v46, %v588_v28  ;;  %v2394_v28 = vld [vmem:[%s3014_s11 + $0x2c] sm:$0x1]  ;;  %v1780_v45 = vrot.slane %v1778_v21, 5  ;;  %v2398_v21 = vld [vmem:[%s3014_s11 + $0x3c] sm:$0x1] }
  0x5b   : > { %2600 = vmatpush3.bf16.msra.mxu1 %v2898_v32  ;;  %v602_v32 = vrot.slane %v600_v24, 5 }
  0x5c   : > { %2696 = vmatpush3.bf16.msra.mxu0 %v2899_v38  ;;  %2601 = vmatprep.subr.bf16.mxu1 %v2901_v59  ;;  %v605_v38 = vshrl.u32 %v513_v30, 16  ;;  %v2928_v30 = vld [vmem:[%s3014_s11 + $0xa0] ss:$8 sps:$4 sm:$0xff]  }
  0x5d   : > { %2697 = vmatprep.subr.bf16.mxu0 %v2902_v60 }
  0x5e   : > { %v607_v47 = vrot.slane %v605_v38, 4  ;;  %v1834_v38 = vshll.u32 %v2394_v28, 16 }
  0x5f   : > { %2602 = vmatpush3.bf16.msra.mxu1 %v2901_v59  ;;  %v603_v59 = vsel %vm3085_vm2, %v598_v51, %v602_v32  ;;  %v1788_v32 = vrot.slane %v1786_v23, 5 }
  0x60   : > { %2698 = vmatpush3.bf16.msra.mxu0 %v2902_v60  ;;  %2603 = vmatprep.subr.bf16.mxu1 %v2904_v4  ;;  %v611_v57 = vor.u32 %v610_v48, %v607_v47  ;;  %v625_v60 = vor.u32 %v624_v54, %v621_v52  ;;  %v2187_v62 = vcombine.low %v589_v56, %v603_v59  ;;  %v1844_v54 = vrot.slane %v1842_v42, 5 }
  0x61   : > { %2699 = vmatprep.subr.bf16.mxu0 %v2905_v6  ;;  %v1789_v40 = vor.u32 %v1788_v32, %v1785_v31  ;;  %v1836_v56 = vrot.slane %v1834_v38, 5  ;;  %v1850_v59 = vrot.slane %v1848_v43, 5  ;;  %v2390_v31 = vld [vmem:[%s3014_s11 + $0x1c] sm:$0x1]  ;;  %v2392_v32 = vld [vmem:[%s3014_s11 + $0x24] sm:$0x1] }
  0x62   : > { %v612_v63 = vrot.slane %v611_v57, 4  ;;  %v626_v0 = vrot.slane %v625_v60, 4  ;;  %v2936_v57 = vld [vmem:[%s3340_s1 + $0x210] sm:$0xff]  }
  0x63   : > { %2604 = vmatpush3.bf16.msra.mxu1 %v2904_v4  ;;  %v2927_v4 = vld [vmem:[%s3014_s11 + $0x50] ss:$8 sps:$4 sm:$0xff]   ;;  %v1790_v51 = vrot.slane %v1789_v40, 4 }
  0x64   : > { %2700 = vmatpush3.bf16.msra.mxu0 %v2905_v6  ;;  %2613 = vmatprep.subr.bf16.mxu1 %v2906_v7  ;;  %v617_v2 = vsel %vm3085_vm2, %v612_v63, %v616_v49  ;;  %v631_v3 = vsel %vm3085_vm2, %v626_v0, %v630_v55  ;;  %v2933_v49 = vld [vmem:[%s3014_s11 + $0x70] ss:$8 sps:$4 sm:$0xff]  }
  0x65   : > { %2709 = vmatprep.subr.bf16.mxu0 %v2908_v10  ;;  %v2188_v6 = vcombine.low %v617_v2, %v631_v3  ;;  %v2937_v3 = vld [vmem:[%s3340_s1 + $0x218] sm:$0xff]  }
  0x66   : > { %2606 = vmatmul.mubr.bf16.vlgmr.msra.gmra.mrb[0].mxu1 %v2186_v13  ;;  %v2925_v13 = vld [vmem:[%s3340_s1 + $0x1f8] sm:$0xff]  }
  0x67   : > { %2614 = vmatpush3.bf16.msra.mxu1 %v2906_v7  ;;  %2702 = vmatmul.mubr.bf16.vlgmr.msra.gmra.mrb[0].mxu0 %v2909_v11  ;;  %v2926_v7 = vld [vmem:[%s3014_s11 + $0x90] ss:$8 sps:$4 sm:$0xff]  }
  0x68   : > { %2710 = vmatpush3.bf16.msra.mxu0 %v2908_v10  ;;  %2615 = vmatprep.subr.bf16.mxu1 %v2910_v14  ;;  %v2921_v10 = vld [vmem:[%s3340_s1 + $0xf0] sm:$0xff]  }
  0x69   : > { %2711 = vmatprep.subr.bf16.mxu0 %v2911_v18  ;;  %2705 = vmatprep.mubr.bf16.mxu0 %v2920_v25  ;;  %v2923_v11 = vld [vmem:[%s3340_s1 + $0x1f0] sm:$0xff]   ;;  %v2393_v25 = vld [vmem:[%s3014_s11 + $0x28] sm:$0xf] }
  0x6a   : > { %2609 = vmatprep.mubr.bf16.mxu1 %v2187_v62  ;;  %v1825_v36 = vshrl.u32 %v2393_v25, 16  ;;  %v1828_v37 = vshll.u32 %v2393_v25, 16 }
  0x6b   : > { %2616 = vmatpush3.bf16.msra.mxu1 %v2910_v14  ;;  %v2930_v14 = vld [vmem:[%s3340_s1 + $0x200] sm:$0xff]  }
  0x6c   : > { %2712 = vmatpush3.bf16.msra.mxu0 %v2911_v18  ;;  %2617 = vmatprep.subr.bf16.mxu1 %v2912_v35  ;;  %v2388_v18 = vld [vmem:[%s3014_s11 + $0x14] sm:$0x1]  ;;  %v1827_v47 = vrot.slane %v1825_v36, 4  ;;  %v1830_v48 = vrot.slane %v1828_v37, 5 }
  0x6d   : > { %2713 = vmatprep.subr.bf16.mxu0 %v2913_v41  ;;  %v1792_v24 = vshll.u32 %v2388_v18, 16  ;;  %v2940_v37 = vld [vmem:[%s3340_s1 + $0x230] sm:$0xff]  }
  0x6e   : > { %2610 = vmatmul.mubr.bf16.gmra.mrb[4].mxu1 %v2188_v6  ;;  %v1831_v55 = vor.u32 %v1830_v48, %v1827_v47  ;;  %v2399_v6 = vld [vmem:[%s3014_s11 + $0x40] sm:$0xf] }
  0x6f   : > { %2618 = vmatpush3.bf16.msra.mxu1 %v2912_v35  ;;  %2706 = vmatmul.mubr.bf16.gmra.mrb[4].mxu0 %v2922_v58  ;;  %v1775_v35 = vor.u32 %v1774_v27, %v1771_v26  ;;  %v1794_v46 = vrot.slane %v1792_v24, 5 }
  0x70   : > { %2714 = vmatpush3.bf16.msra.mxu0 %v2913_v41  ;;  %2619 = vmatprep.subr.bf16.mxu1 %v2914_v50  ;;  %v1839_v41 = vshrl.u32 %v2395_v29, 16  ;;  %v1832_v60 = vrot.slane %v1831_v55, 4 }
  0x71   : > { %2715 = vmatprep.subr.bf16.mxu0 %v2915_v61  ;;  %2725 = vmatprep.mubr.bf16.mxu0 %v2927_v4  ;;  %v1795_v63 = vsel %vm3085_vm2, %v1790_v51, %v1794_v46  ;;  %v2941_v46 = vld [vmem:[%s3340_s1 + $0x238] sm:$0xff]  }
  0x72   : > { %2629 = vmatprep.mubr.bf16.mxu1 %v2926_v7  ;;  %v1841_v52 = vrot.slane %v1839_v41, 4  ;;  %v1837_v2 = vsel %vm3085_vm2, %v1832_v60, %v1836_v56  ;;  %v1820_v41 = vshll.u32 %v2392_v32, 16 }
  0x73   : > { %2620 = vmatpush3.bf16.msra.mxu1 %v2914_v50  ;;  %v1776_v50 = vrot.slane %v1775_v35, 4 }
  0x74   : > { %2716 = vmatpush3.bf16.msra.mxu0 %v2915_v61  ;;  %2621 = vmatprep.subr.bf16.mxu1 %v2916_v1  ;;  %v1845_v58 = vor.u32 %v1844_v54, %v1841_v52  ;;  %v2934_v61 = vld [vmem:[%s3014_s11 + $0xc0] ss:$8 sps:$4 sm:$0xff]  }
  0x75   : > { %2717 = vmatprep.subr.bf16.mxu0 %v2917_v5  ;;  %v1781_v62 = vsel %vm3085_vm2, %v1776_v50, %v1780_v45  ;;  %v1822_v50 = vrot.slane %v1820_v41, 5 }
  0x76   : > { %v1846_v0 = vrot.slane %v1845_v58, 4  ;;  %v2417_v7 = vcombine.low %v1781_v62, %v1795_v63 }
  0x77   : > { %2622 = vmatpush3.bf16.msra.mxu1 %v2916_v1  ;;  %v2935_v1 = vld [vmem:[%s3014_s11 + $0x80] ss:$8 sps:$4 sm:$0xff]  }
  0x78   : > { %2718 = vmatpush3.bf16.msra.mxu0 %v2917_v5  ;;  %2623 = vmatprep.subr.bf16.mxu1 %v2918_v8  ;;  %v1851_v4 = vsel %vm3085_vm2, %v1846_v0, %v1850_v59  ;;  %v2397_v5 = vld [vmem:[%s3014_s11 + $0x38] sm:$0xf] }
  0x79   : > { %2719 = vmatprep.subr.bf16.mxu0 %v2919_v9 }
  0x7b   : > { %2624 = vmatpush3.bf16.msra.mxu1 %v2918_v8  ;;  %v2389_v8 = vld [vmem:[%s3014_s11 + $0x18] sm:$0xf] }
  0x7c   : > { %2720 = vmatpush3.bf16.msra.mxu0 %v2919_v9  ;;  %2625 = vmatprep.subr.bf16.mxu1 %v2921_v10  ;;  %v2391_v9 = vld [vmem:[%s3014_s11 + $0x20] sm:$0xf]  ;;  %v1797_v16 = vshrl.u32 %v2389_v8, 16  ;;  %v1800_v17 = vshll.u32 %v2389_v8, 16 }
  0x7d   : > { %2721 = vmatprep.subr.bf16.mxu0 %v2923_v11  ;;  %v1811_v18 = vshrl.u32 %v2391_v9, 16  ;;  %v1814_v19 = vshll.u32 %v2391_v9, 16  ;;  %v2429_v9 = vld [vmem:[%s3341_s2] ss:$0 sm:$0xff] }
  0x7e   : > { %v1799_v26 = vrot.slane %v1797_v16, 4  ;;  %v1802_v27 = vrot.slane %v1800_v17, 5 }
  0x7f   : > { %2626 = vmatpush3.bf16.msra.mxu1 %v2921_v10  ;;  %v2419_v10 = vcombine.low %v1837_v2, %v1851_v4  ;;  %v1813_v28 = vrot.slane %v1811_v18, 4  ;;  %v1816_v29 = vrot.slane %v1814_v19, 5 }
  0x80   : > { %2722 = vmatpush3.bf16.msra.mxu0 %v2923_v11  ;;  %2627 = vmatprep.subr.bf16.mxu1 %v2924_v12  ;;  %v1853_v11 = vshrl.u32 %v2397_v5, 16  ;;  %v1803_v38 = vor.u32 %v1802_v27, %v1799_v26 }
  0x81   : > { %2723 = vmatprep.subr.bf16.mxu0 %v2925_v13  ;;  %v1817_v40 = vor.u32 %v1816_v29, %v1813_v28 }
  0x82   : > { %v1855_v22 = vrot.slane %v1853_v11, 4  ;;  %v1804_v47 = vrot.slane %v1803_v38, 4 }
  0x83   : > { %2628 = vmatpush3.bf16.msra.mxu1 %v2924_v12  ;;  %v1856_v12 = vshll.u32 %v2397_v5, 16 }
  0x84   : > { %2724 = vmatpush3.bf16.msra.mxu0 %v2925_v13  ;;  %2757 = vmatprep.subr.bf16.mxu1 %v2930_v14  ;;  %v1867_v13 = vshrl.u32 %v2399_v6, 16 }
  0x85   : > { %2733 = vmatprep.subr.bf16.mxu0 %v2930_v14  ;;  %v1858_v23 = vrot.slane %v1856_v12, 5 }
  0x86   : > { %2630 = vmatmul.mubr.bf16.vlgmr.msra.gmra.mrb[0].mxu1 %v2928_v30  ;;  %v1869_v24 = vrot.slane %v1867_v13, 4  ;;  %v2400_v30 = vld [vmem:[%s3014_s11 + $0x44] sm:$0x1] }
  0x87   : > { %2726 = vmatmul.mubr.bf16.vlgmr.msra.gmra.mrb[0].mxu0 %v2929_v34  ;;  %2765 = vmatpush3.bf16.msra.mxu1 %v2930_v14  ;;  %v1859_v33 = vor.u32 %v1858_v23, %v1855_v22  ;;  %v1862_v34 = vshll.u32 %v2398_v21, 16  ;;  %v1876_v36 = vshll.u32 %v2400_v30, 16 }
  0x88   : > { %2734 = vmatpush3.bf16.msra.mxu0 %v2930_v14  ;;  %2758 = vmatprep.subr.bf16.mxu1 %v2931_v39  ;;  %v1870_v14 = vshll.u32 %v2399_v6, 16 }
  0x89   : > { %2735 = vmatprep.subr.bf16.mxu0 %v2931_v39  ;;  %2633 = vmatprep.mubr.bf16.mxu1 %v2932_v44  ;;  %v1860_v42 = vrot.slane %v1859_v33, 4  ;;  %v1864_v43 = vrot.slane %v1862_v34, 5  ;;  %v1878_v45 = vrot.slane %v1876_v36, 5 }
  0x8a   : > { %2729 = vmatprep.mubr.bf16.mxu0 %v2933_v49  ;;  %v1872_v25 = vrot.slane %v1870_v14, 5  ;;  %v1818_v49 = vrot.slane %v1817_v40, 4 }
  0x8b   : > { %2766 = vmatpush3.bf16.msra.mxu1 %v2931_v39  ;;  %v1865_v51 = vsel %vm3085_vm2, %v1860_v42, %v1864_v43 }
  0x8c   : > { %2736 = vmatpush3.bf16.msra.mxu0 %v2931_v39  ;;  %2759 = vmatprep.subr.bf16.mxu1 %v2936_v57  ;;  %v1873_v35 = vor.u32 %v1872_v25, %v1869_v24  ;;  %v1806_v39 = vshll.u32 %v2390_v31, 16  ;;  %v1823_v55 = vsel %vm3085_vm2, %v1818_v49, %v1822_v50 }
  0x8d   : > { %2737 = vmatprep.subr.bf16.mxu0 %v2936_v57 }
  0x8e   : > { %2634 = vmatmul.mubr.bf16.gmra.mrb[4].mxu1 %v2934_v61  ;;  %v1874_v44 = vrot.slane %v1873_v35, 4  ;;  %v1808_v48 = vrot.slane %v1806_v39, 5 }
  0x8f   : > { %2730 = vmatmul.mubr.bf16.gmra.mrb[4].mxu0 %v2935_v1  ;;  %2767 = vmatpush3.bf16.msra.mxu1 %v2936_v57 }
  0x90   : > { %2738 = vmatpush3.bf16.msra.mxu0 %v2936_v57  ;;  %2760 = vmatprep.subr.bf16.mxu1 %v2937_v3  ;;  %v1879_v52 = vsel %vm3085_vm2, %v1874_v44, %v1878_v45  ;;  %v1809_v54 = vsel %vm3085_vm2, %v1804_v47, %v1808_v48 }
  0x91   : > { %2739 = vmatprep.subr.bf16.mxu0 %v2937_v3  ;;  %2749 = vmatprep.mubr.bf16.mxu0 %v2417_v7  ;;  %v2420_v56 = vcombine.low %v1865_v51, %v1879_v52  ;;  %v2418_v57 = vcombine.low %v1809_v54, %v1823_v55 }
  0x92   : > { %2753 = vmatprep.mubr.bf16.mxu1 %v2419_v10 }
  0x93   : > { %2768 = vmatpush3.bf16.msra.mxu1 %v2937_v3 }
  0x94   : > { %2740 = vmatpush3.bf16.msra.mxu0 %v2937_v3  ;;  %2761 = vmatprep.subr.bf16.mxu1 %v2938_v15 }
  0x95   : > { %2741 = vmatprep.subr.bf16.mxu0 %v2938_v15 }
  0x97   : > { %2769 = vmatpush3.bf16.msra.mxu1 %v2938_v15 }
  0x98   : > { %2742 = vmatpush3.bf16.msra.mxu0 %v2938_v15  ;;  %2762 = vmatprep.subr.bf16.mxu1 %v2939_v20 }
  0x99   : > { %2743 = vmatprep.subr.bf16.mxu0 %v2939_v20 }
  0x9b   : > { %2770 = vmatpush3.bf16.msra.mxu1 %v2939_v20 }
  0x9c   : > { %2744 = vmatpush3.bf16.msra.mxu0 %v2939_v20  ;;  %2763 = vmatprep.subr.bf16.mxu1 %v2940_v37 }
  0x9d   : > { %2745 = vmatprep.subr.bf16.mxu0 %v2940_v37 }
  0x9f   : > { %2771 = vmatpush3.bf16.msra.mxu1 %v2940_v37 }
  0xa0   : > { %2746 = vmatpush3.bf16.msra.mxu0 %v2940_v37  ;;  %2764 = vmatprep.subr.bf16.mxu1 %v2941_v46 }
  0xa1   : > { %2747 = vmatprep.subr.bf16.mxu0 %v2941_v46 }
  0xa3   : > { %2772 = vmatpush3.bf16.msra.mxu1 %v2941_v46 }
  0xa4   : > { %2748 = vmatpush3.bf16.msra.mxu0 %v2941_v46 }
  0xa6   : > { %2754 = vmatmul.mubr.bf16.vlgmr.msra.gmra.mrb[8].mxu1 %v2420_v56 }
  0xa7   : > { %2750 = vmatmul.mubr.bf16.vlgmr.msra.gmra.mrb[0].mxu0 %v2418_v57 }
 0x159   : > { %v2631_v58 = vpop.f32.mrb[0].mxu1 }
 0x15a   : > { %v918_v59 = vpop.f32.mrb[1].mxu1 }
 0x15b   : > { %v2632_v60 = vpop.f32.mrb[2].mxu1 }
 0x15c   : > { %v921_v61 = vpop.f32.mrb[3].mxu1 }
 0x161   : > { %v2635_v62 = vpop.f32.mrb[4].mxu1 }
 0x162   : > { %v2731_v63 = vpop.f32.mrb[4].mxu0  ;;  %v934_v0 = vpop.f32.mrb[5].mxu1 }
 0x163   : > { %v2777_v1 = vadd.f32 %v2731_v63, %v2635_v62  ;;  %v1729_v2 = vpop.f32.mrb[5].mxu0  ;;  %v2636_v53 = vpop.f32.mrb[6].mxu1 }
 0x164   : > { %v2779_v3 = vadd.f32 %v1729_v2, %v934_v0  ;;  %v2732_v4 = vpop.f32.mrb[6].mxu0  ;;  %v937_v5 = vpop.f32.mrb[7].mxu1 }
 0x165   : > { %v2781_v6 = vadd.f32 %v2732_v4, %v2636_v53  ;;  %v1732_v7 = vpop.f32.mrb[7].mxu0 }
 0x166   : > { %v2783_v8 = vadd.f32 %v1732_v7, %v937_v5 }
 0x179   : > { %v2755_v10 = vpop.f32.mrb[8].mxu1 }
 0x17a   : > { %v2751_v11 = vpop.f32.mrb[0].mxu0  ;;  %v2778_v12 = vadd.f32 %v2777_v1, %v2755_v10  ;;  %v2011_v13 = vpop.f32.mrb[9].mxu1 }
 0x17b   : > { %v2773_v14 = vadd.f32 %v2751_v11, %v2631_v58  ;;  %v1995_v15 = vpop.f32.mrb[1].mxu0  ;;  %v2780_v16 = vadd.f32 %v2779_v3, %v2011_v13  ;;  %v2756_v17 = vpop.f32.mrb[10].mxu1 }
 0x17c   : > { %v2047_v18 = vadd.f32 %v2778_v12, %v2429_v9  ;;  %v2774_v19 = vadd.f32 %v1995_v15, %v918_v59  ;;  %v2752_v20 = vpop.f32.mrb[2].mxu0  ;;  %v2782_v21 = vadd.f32 %v2781_v6, %v2756_v17  ;;  %v2014_v22 = vpop.f32.mrb[11].mxu1 }
 0x17d   : > { %v2043_v23 = vadd.f32 %v2773_v14, %v2429_v9  ;;  %v2045_v24 = vadd.f32 %v2780_v16, %v2429_v9  ;;  %v2775_v25 = vadd.f32 %v2752_v20, %v2632_v60  ;;  %v1998_v26 = vpop.f32.mrb[3].mxu0  ;;  %v2784_v27 = vadd.f32 %v2783_v8, %v2014_v22 }
 0x17e   : > { %2055 = vst [vmem:[%s175_s22 + $0x30] sm:$0xff] %v2047_v18  ;;  %v2041_v28 = vadd.f32 %v2774_v19, %v2429_v9  ;;  %v2048_v29 = vadd.f32 %v2782_v21, %v2429_v9  ;;  %v2776_v30 = vadd.f32 %v1998_v26, %v921_v61 }
 0x17f   : > { %2051 = vst [vmem:[%s175_s22 + $0x10] sm:$0xff] %v2043_v23  ;;  %2053 = vst [vmem:[%s175_s22 + $0x20] sm:$0xff] %v2045_v24  ;;  %v2044_v31 = vadd.f32 %v2775_v25, %v2429_v9  ;;  %v2046_v32 = vadd.f32 %v2784_v27, %v2429_v9 }
 0x180   : > { %2049 = vst [vmem:[%s175_s22] sm:$0xff] %v2041_v28  ;;  %2056 = vst [vmem:[%s175_s22 + $0x38] sm:$0xff] %v2048_v29  ;;  %v2042_v33 = vadd.f32 %v2776_v30, %v2429_v9 }
 0x181   : > { %2052 = vst [vmem:[%s175_s22 + $0x18] sm:$0xff] %v2044_v31  ;;  %2054 = vst [vmem:[%s175_s22 + $0x28] sm:$0xff] %v2046_v32 }
 0x182   : > { %2050 = vst [vmem:[%s175_s22 + $0x8] sm:$0xff] %v2042_v33 }
 0x183 PF: > { %s13_s12 = sadd.s32 1, %s2948_s12  }
 0x184   : > { %p10_p5 = scmp.ge.s32.totalorder %s13_s12, 4  }
 0x186   :  { %12 = sbr.rel (!%p10_p5) target bundleno = 1 (0x1), region = 75 }

// kernel: preact_block_forward.10
= control target key start
LH: loop header
LB: loop body
LE: loop exit
PB: predicated region body
PF: predicated region fallthrough
CT: control target
= control target key end

     0   :  { %s483_s1 = inlined_call_operand.vmem [shape: bf16[128,128], index: 1, kind: input, shape index: {}]   ;;  %s484_s0 = inlined_call_operand.vmem [shape: bf16[128,128], index: 0, kind: input, shape index: {}]   ;;  %s485_s2 = inlined_call_operand.vmem [shape: f32[1,128], index: 2, kind: input, shape index: {}]   ;;  %s486_s3 = inlined_call_operand.vmem [shape: f32[128,128], index: 3, kind: output, shape index: {}]  }
   0x1   :  { %v348_v0 = vld [vmem:[%s483_s1] sm:$0xff]   ;;  %v349_v1 = vld [vmem:[%s483_s1 + $0x8] sm:$0xff]   ;;  %v350_v2 = vld [vmem:[%s483_s1 + $0x10] sm:$0xff]  }
   0x2   :  { %300 = vmatprep.subr.bf16.mxu0 %v348_v0  ;;  %332 = vmatprep.subr.bf16.mxu1 %v348_v0  ;;  %v351_v3 = vld [vmem:[%s483_s1 + $0x18] sm:$0xff]   ;;  %v356_v4 = vld [vmem:[%s484_s0] sm:$0xff]   ;;  %v353_v7 = vld [vmem:[%s483_s1 + $0x28] sm:$0xff]  }
   0x3   :  { %301 = vmatpush3.bf16.msra.mxu0 %v348_v0  ;;  %340 = vmatpush3.bf16.msra.mxu1 %v348_v0  ;;  %v357_v5 = vld [vmem:[%s484_s0 + $0x20] sm:$0xff]   ;;  %v354_v8 = vld [vmem:[%s483_s1 + $0x30] sm:$0xff]   ;;  %v355_v9 = vld [vmem:[%s483_s1 + $0x38] sm:$0xff]  }
   0x4   :  { %302 = vmatprep.subr.bf16.mxu0 %v349_v1  ;;  %333 = vmatprep.subr.bf16.mxu1 %v349_v1  ;;  %v352_v6 = vld [vmem:[%s483_s1 + $0x20] sm:$0xff]   ;;  %v358_v10 = vld [vmem:[%s484_s0 + $0x8] sm:$0xff]   ;;  %v360_v12 = vld [vmem:[%s484_s0 + $0x10] sm:$0xff]  }
   0x5   :  { %316 = vmatprep.mubr.bf16.mxu0 %v356_v4  ;;  %324 = vmatprep.mubr.bf16.mxu1 %v357_v5  ;;  %v359_v11 = vld [vmem:[%s484_s0 + $0x28] sm:$0xff]   ;;  %v361_v13 = vld [vmem:[%s484_s0 + $0x30] sm:$0xff]   ;;  %v362_v14 = vld [vmem:[%s484_s0 + $0x18] sm:$0xff]  }
   0x6   :  { %v363_v15 = vld [vmem:[%s484_s0 + $0x38] sm:$0xff]   ;;  %v267_v16 = vld [vmem:[%s485_s2] ss:$0 sm:$0xff] }
   0x7   :  { %303 = vmatpush3.bf16.msra.mxu0 %v349_v1  ;;  %341 = vmatpush3.bf16.msra.mxu1 %v349_v1 }
   0x8   :  { %304 = vmatprep.subr.bf16.mxu0 %v350_v2  ;;  %334 = vmatprep.subr.bf16.mxu1 %v350_v2 }
   0xb   :  { %305 = vmatpush3.bf16.msra.mxu0 %v350_v2  ;;  %342 = vmatpush3.bf16.msra.mxu1 %v350_v2 }
   0xc   :  { %306 = vmatprep.subr.bf16.mxu0 %v351_v3  ;;  %335 = vmatprep.subr.bf16.mxu1 %v351_v3 }
   0xf   :  { %307 = vmatpush3.bf16.msra.mxu0 %v351_v3  ;;  %343 = vmatpush3.bf16.msra.mxu1 %v351_v3 }
  0x10   :  { %308 = vmatprep.subr.bf16.mxu0 %v352_v6  ;;  %336 = vmatprep.subr.bf16.mxu1 %v352_v6 }
  0x13   :  { %309 = vmatpush3.bf16.msra.mxu0 %v352_v6  ;;  %344 = vmatpush3.bf16.msra.mxu1 %v352_v6 }
  0x14   :  { %310 = vmatprep.subr.bf16.mxu0 %v353_v7  ;;  %337 = vmatprep.subr.bf16.mxu1 %v353_v7 }
  0x17   :  { %311 = vmatpush3.bf16.msra.mxu0 %v353_v7  ;;  %345 = vmatpush3.bf16.msra.mxu1 %v353_v7 }
  0x18   :  { %312 = vmatprep.subr.bf16.mxu0 %v354_v8  ;;  %338 = vmatprep.subr.bf16.mxu1 %v354_v8 }
  0x1b   :  { %313 = vmatpush3.bf16.msra.mxu0 %v354_v8  ;;  %346 = vmatpush3.bf16.msra.mxu1 %v354_v8 }
  0x1c   :  { %314 = vmatprep.subr.bf16.mxu0 %v355_v9  ;;  %339 = vmatprep.subr.bf16.mxu1 %v355_v9 }
  0x1f   :  { %315 = vmatpush3.bf16.msra.mxu0 %v355_v9  ;;  %347 = vmatpush3.bf16.msra.mxu1 %v355_v9 }
  0x22   :  { %317 = vmatmul.mubr.bf16.vlgmr.msra.gmra.mrb[0].mxu0 %v358_v10  ;;  %325 = vmatmul.mubr.bf16.vlgmr.msra.gmra.mrb[0].mxu1 %v359_v11 }
  0x23   :  { %320 = vmatprep.mubr.bf16.mxu0 %v360_v12  ;;  %328 = vmatprep.mubr.bf16.mxu1 %v361_v13 }
  0x2a   :  { %321 = vmatmul.mubr.bf16.gmra.mrb[4].mxu0 %v362_v14  ;;  %329 = vmatmul.mubr.bf16.gmra.mrb[4].mxu1 %v363_v15 }
  0xf5   :  { %v318_v17 = vpop.f32.mrb[0].mxu0  ;;  %v326_v18 = vpop.f32.mrb[0].mxu1 }
  0xf6   :  { %v193_v19 = vadd.f32 %v318_v17, %v267_v16  ;;  %v225_v20 = vadd.f32 %v326_v18, %v267_v16  ;;  %v184_v21 = vpop.f32.mrb[1].mxu0  ;;  %v216_v22 = vpop.f32.mrb[1].mxu1 }
  0xf7   :  { %v185_v23 = vadd.f32 %v267_v16, %v184_v21  ;;  %v217_v24 = vadd.f32 %v267_v16, %v216_v22  ;;  %v319_v25 = vpop.f32.mrb[2].mxu0  ;;  %v327_v26 = vpop.f32.mrb[2].mxu1 }
  0xf8   :  { %249 = vst [vmem:[%s486_s3 + $0x10] sm:$0xff] %v193_v19  ;;  %257 = vst [vmem:[%s486_s3 + $0x50] sm:$0xff] %v225_v20  ;;  %v196_v27 = vadd.f32 %v319_v25, %v267_v16  ;;  %v228_v28 = vadd.f32 %v327_v26, %v267_v16  ;;  %v187_v29 = vpop.f32.mrb[3].mxu0  ;;  %v219_v30 = vpop.f32.mrb[3].mxu1 }
  0xf9   :  { %247 = vst [vmem:[%s486_s3] sm:$0xff] %v185_v23  ;;  %255 = vst [vmem:[%s486_s3 + $0x40] sm:$0xff] %v217_v24  ;;  %v188_v31 = vadd.f32 %v267_v16, %v187_v29  ;;  %v220_v32 = vadd.f32 %v267_v16, %v219_v30 }
  0xfa   :  { %250 = vst [vmem:[%s486_s3 + $0x18] sm:$0xff] %v196_v27  ;;  %258 = vst [vmem:[%s486_s3 + $0x58] sm:$0xff] %v228_v28 }
  0xfb   :  { %248 = vst [vmem:[%s486_s3 + $0x8] sm:$0xff] %v188_v31  ;;  %256 = vst [vmem:[%s486_s3 + $0x48] sm:$0xff] %v220_v32 }
  0xfd   :  { %v322_v33 = vpop.f32.mrb[4].mxu0  ;;  %v330_v34 = vpop.f32.mrb[4].mxu1 }
  0xfe   :  { %v209_v35 = vadd.f32 %v322_v33, %v267_v16  ;;  %v241_v36 = vadd.f32 %v330_v34, %v267_v16  ;;  %v200_v37 = vpop.f32.mrb[5].mxu0  ;;  %v232_v38 = vpop.f32.mrb[5].mxu1 }
  0xff   :  { %v201_v39 = vadd.f32 %v267_v16, %v200_v37  ;;  %v233_v40 = vadd.f32 %v267_v16, %v232_v38  ;;  %v323_v41 = vpop.f32.mrb[6].mxu0  ;;  %v331_v42 = vpop.f32.mrb[6].mxu1 }
 0x100   :  { %253 = vst [vmem:[%s486_s3 + $0x30] sm:$0xff] %v209_v35  ;;  %261 = vst [vmem:[%s486_s3 + $0x70] sm:$0xff] %v241_v36  ;;  %v212_v43 = vadd.f32 %v323_v41, %v267_v16  ;;  %v244_v44 = vadd.f32 %v331_v42, %v267_v16  ;;  %v203_v45 = vpop.f32.mrb[7].mxu0  ;;  %v235_v46 = vpop.f32.mrb[7].mxu1 }
 0x101   :  { %251 = vst [vmem:[%s486_s3 + $0x20] sm:$0xff] %v201_v39  ;;  %259 = vst [vmem:[%s486_s3 + $0x60] sm:$0xff] %v233_v40  ;;  %v204_v47 = vadd.f32 %v267_v16, %v203_v45  ;;  %v236_v48 = vadd.f32 %v267_v16, %v235_v46 }
 0x102   :  { %254 = vst [vmem:[%s486_s3 + $0x38] sm:$0xff] %v212_v43  ;;  %262 = vst [vmem:[%s486_s3 + $0x78] sm:$0xff] %v244_v44 }
 0x103   :  { %252 = vst [vmem:[%s486_s3 + $0x28] sm:$0xff] %v204_v47  ;;  %260 = vst [vmem:[%s486_s3 + $0x68] sm:$0xff] %v236_v48 }

// kernel: preact_block_forward.13
= control target key start
LH: loop header
LB: loop body
LE: loop exit
PB: predicated region body
PF: predicated region fallthrough
CT: control target
= control target key end

     0   :  { %s3163_s15 = smov 0   ;;  %s3758_s0 = inlined_call_operand.vmem [shape: bf16[2,10,10,128], index: 0, kind: input, shape index: {}]   ;;  %s3759_s1 = inlined_call_operand.vmem [shape: bf16[9,128,128], index: 1, kind: input, shape index: {}]   ;;  %s3760_s2 = inlined_call_operand.vmem [shape: f32[1,128], index: 2, kind: input, shape index: {}]   ;;  %s3761_s3 = inlined_call_operand.vmem [shape: f32[2,64,128], index: 3, kind: input, shape index: {}]   ;;  %s3762_s4 = inlined_call_operand.vmem [shape: f32[2,64,128], index: 4, kind: output, shape index: {}]  }
   0x1 LB: > { %s2294_s16 = sadd.s32 4294967295, %s3136_s15   ;;  %p2298_p0 = scmp.ge.s32.totalorder %s3136_s15, 1  ;;  %s3136_s15 = sphi %s3163_s15, %s14_s15  }
   0x2   : > { %p172_p1 = scmp.lt.s32.totalorder %s3136_s15, 3 }
   0x4   : > { %p173_p2 = pnand %p2298_p0, %p172_p1 }
   0x5   : > { %v3046_v0 = vld [vmem:[%s3759_s1 + $0x40] sm:$0xff] (!%p173_p2)   ;;  %p203_p3 = scmp.lt.s32.totalorder (!%p173_p2), %s2294_s16, 1  ;;  %v3048_v2 = vld [vmem:[%s3759_s1 + $0x48] sm:$0xff] (!%p173_p2)   ;;  %v3050_v4 = vld [vmem:[%s3759_s1 + $0x50] sm:$0xff] (!%p173_p2)   ;;  %vm251_vm0 = vsmask.f32 (!%p173_p2), 3328 }
   0x6   : > { %176 = sbr.rel (%p173_p2) target bundleno = 394 (0x18a), region = 36  ;;  %v3047_v1 = vld [vmem:[%s3759_s1 + $0x100] sm:$0xff] (!%p173_p2)   ;;  %2741 = vmatprep.subr.bf16.mxu1 (!%p173_p2), %v3046_v0  ;;  %v3049_v3 = vld [vmem:[%s3759_s1 + $0x108] sm:$0xff] (!%p173_p2)   ;;  %v3051_v5 = vld [vmem:[%s3759_s1 + $0x110] sm:$0xff] (!%p173_p2)   ;;  %vm252_vm1 = vsmask.f32 (!%p173_p2), 7440 }
   0x7   : > { %2837 = vmatprep.subr.bf16.mxu0 (!%p173_p2), %v3047_v1  ;;  %2742 = vmatpush3.bf16.msra.mxu1 (!%p173_p2), %v3046_v0  ;;  %v3052_v6 = vld [vmem:[%s3759_s1 + $0x58] sm:$0xff] (!%p173_p2)   ;;  %v3054_v8 = vld [vmem:[%s3759_s1 + $0x60] sm:$0xff] (!%p173_p2)   ;;  %v3056_v10 = vld [vmem:[%s3759_s1 + $0x68] sm:$0xff] (!%p173_p2)   ;;  %vm673_vm3 = vcmask (!%p173_p2), 1042432   ;;  %vm674_vm4 = vcmask (!%p173_p2), 1046532  }
   0x8   : > { %2838 = vmatpush3.bf16.msra.mxu0 (!%p173_p2), %v3047_v1  ;;  %2743 = vmatprep.subr.bf16.mxu1 (!%p173_p2), %v3048_v2  ;;  %v3053_v7 = vld [vmem:[%s3759_s1 + $0x118] sm:$0xff] (!%p173_p2)   ;;  %v3055_v9 = vld [vmem:[%s3759_s1 + $0x120] sm:$0xff] (!%p173_p2)   ;;  %v3057_v14 = vld [vmem:[%s3759_s1 + $0x128] sm:$0xff] (!%p173_p2)  }
   0x9   : > { %2839 = vmatprep.subr.bf16.mxu0 (!%p173_p2), %v3049_v3  ;;  %v3058_v22 = vld [vmem:[%s3759_s1 + $0x70] sm:$0xff] (!%p173_p2)   ;;  %v3060_v37 = vld [vmem:[%s3759_s1 + $0x78] sm:$0xff] (!%p173_p2)   ;;  %vm3252_vm2 = vmor (!%p173_p2), %vm251_vm0, %vm252_vm1 }
   0xa   : > { %v3059_v23 = vld [vmem:[%s3759_s1 + $0x130] sm:$0xff] (!%p173_p2)   ;;  %v3061_v47 = vld [vmem:[%s3759_s1 + $0x138] sm:$0xff] (!%p173_p2)   ;;  %v3062_v63 = vld [vmem:[%s3759_s1] sm:$0xff] (!%p173_p2)  }
   0xb   : > { %2744 = vmatpush3.bf16.msra.mxu1 (!%p173_p2), %v3048_v2  ;;  %v3284_v1 = vld [vmem:[%s3759_s1 + $0x140] sm:$0xff] (!%p173_p2)   ;;  %vm3426_vm5 = vmor (!%p173_p2), %vm673_vm3, %vm674_vm4 }
   0xc   : > { %2840 = vmatpush3.bf16.msra.mxu0 (!%p173_p2), %v3049_v3  ;;  %2745 = vmatprep.subr.bf16.mxu1 (!%p173_p2), %v3050_v4  ;;  %v3126_v38 = vld [vmem:[%s3759_s1 + $0x220] sm:$0xff] (!%p173_p2)  }
   0xd   : > { %s3768_s16 = smov (!%p203_p3, %s2294_s16), 1  ;;  %2841 = vmatprep.subr.bf16.mxu0 %v3051_v5 }
   0xe   : > { %s3037_s7 = smul.u32 80, %s3768_s16 }
   0xf   : > { %2746 = vmatpush3.bf16.msra.mxu1 %v3050_v4 }
  0x10   : > { %2842 = vmatpush3.bf16.msra.mxu0 %v3051_v5  ;;  %2747 = vmatprep.subr.bf16.mxu1 %v3052_v6  ;;  %s3207_s14 = scalar_lea.vmem %s3758_s0, %s3037_s7 }
  0x11   : > { %2843 = vmatprep.subr.bf16.mxu0 %v3053_v7  ;;  %v3213_v11 = vld [vmem:[%s3207_s14] sm:$0xf]  ;;  %v3216_v12 = vld [vmem:[%s3207_s14 + $0x8] sm:$0xf]  ;;  %v3219_v13 = vld [vmem:[%s3207_s14 + $0x4] sm:$0x1] }
  0x12   : > { %v3225_v15 = vld [vmem:[%s3207_s14 + $0xc] sm:$0x1]  ;;  %v255_v16 = vshrl.u32 %v3213_v11, 16  ;;  %v258_v17 = vshll.u32 %v3213_v11, 16  ;;  %v264_v18 = vshll.u32 %v3219_v13, 16  ;;  %v269_v19 = vshrl.u32 %v3216_v12, 16 }
  0x13   : > { %2748 = vmatpush3.bf16.msra.mxu1 %v3052_v6  ;;  %v272_v20 = vshll.u32 %v3216_v12, 16  ;;  %v278_v21 = vshll.u32 %v3225_v15, 16  ;;  %v2416_v30 = vld [vmem:[%s3207_s14 + $0x8] sm:$0xf]  ;;  %v3241_v31 = vld [vmem:[%s3207_s14 + $0xc] sm:$0x1] }
  0x14   : > { %2844 = vmatpush3.bf16.msra.mxu0 %v3053_v7  ;;  %2749 = vmatprep.subr.bf16.mxu1 %v3054_v8  ;;  %v257_v24 = vrot.slane %v255_v16, 4  ;;  %v260_v25 = vrot.slane %v258_v17, 5  ;;  %v266_v26 = vrot.slane %v264_v18, 5  ;;  %v271_v27 = vrot.slane %v269_v19, 4  ;;  %v2418_v33 = vld [vmem:[%s3207_s14 + $0x10] sm:$0xf] }
  0x15   : > { %2845 = vmatprep.subr.bf16.mxu0 %v3055_v9  ;;  %v274_v28 = vrot.slane %v272_v20, 5  ;;  %v280_v29 = vrot.slane %v278_v21, 5  ;;  %v3245_v34 = vld [vmem:[%s3207_s14 + $0x14] sm:$0x1]  ;;  %v1050_v35 = vshrl.u32 %v2416_v30, 16  ;;  %v1053_v36 = vshll.u32 %v2416_v30, 16 }
  0x16   : > { %v261_v32 = vor.u32 %v260_v25, %v257_v24  ;;  %v1059_v40 = vshll.u32 %v3241_v31, 16  ;;  %v1064_v41 = vshrl.u32 %v2418_v33, 16  ;;  %v1067_v42 = vshll.u32 %v2418_v33, 16  ;;  %v3262_v51 = vld [vmem:[%s3207_s14 + $0x10] sm:$0xf] }
  0x17   : > { %2750 = vmatpush3.bf16.msra.mxu1 %v3054_v8  ;;  %v275_v39 = vor.u32 %v274_v28, %v271_v27  ;;  %v1052_v44 = vrot.slane %v1050_v35, 4  ;;  %v1055_v45 = vrot.slane %v1053_v36, 5  ;;  %v1073_v46 = vshll.u32 %v3245_v34, 16  ;;  %v3267_v55 = vld [vmem:[%s3207_s14 + $0x18] sm:$0xf] }
  0x18   : > { %2846 = vmatpush3.bf16.msra.mxu0 %v3055_v9  ;;  %2751 = vmatprep.subr.bf16.mxu1 %v3056_v10  ;;  %v262_v43 = vrot.slane %v261_v32, 4  ;;  %v1066_v49 = vrot.slane %v1064_v41, 4  ;;  %v1069_v50 = vrot.slane %v1067_v42, 5  ;;  %v1061_v54 = vrot.slane %v1059_v40, 5  ;;  %v3270_v56 = vld [vmem:[%s3207_s14 + $0x14] sm:$0x1] }
  0x19   : > { %2847 = vmatprep.subr.bf16.mxu0 %v3057_v14  ;;  %v276_v48 = vrot.slane %v275_v39, 4  ;;  %v1056_v53 = vor.u32 %v1055_v45, %v1052_v44  ;;  %v1075_v59 = vrot.slane %v1073_v46, 5  ;;  %v3275_v60 = vld [vmem:[%s3207_s14 + $0x1c] sm:$0x1]  ;;  %v283_v61 = vshrl.u32 %v3262_v51, 16 }
  0x1a   : > { %v267_v52 = vsel %vm3252_vm2, %v262_v43, %v266_v26  ;;  %v1070_v58 = vor.u32 %v1069_v50, %v1066_v49  ;;  %v286_v2 = vshll.u32 %v3262_v51, 16  ;;  %v292_v3 = vshll.u32 %v3270_v56, 16  ;;  %v2420_v8 = vld [vmem:[%s3207_s14 + $0x18] sm:$0xf]  ;;  %v3295_v16 = vld [vmem:[%s3207_s14 + $0x1c] sm:$0x1] }
  0x1b   : > { %2752 = vmatpush3.bf16.msra.mxu1 %v3056_v10  ;;  %v281_v57 = vsel %vm3252_vm2, %v276_v48, %v280_v29  ;;  %v1057_v0 = vrot.slane %v1056_v53, 4  ;;  %v285_v5 = vrot.slane %v283_v61, 4  ;;  %v297_v6 = vshrl.u32 %v3267_v55, 16  ;;  %v2422_v17 = vld [vmem:[%s3207_s14 + $0x20] sm:$0xf]  ;;  %v3064_v43 = vld [vmem:[%s3759_s1 + $0x8] sm:$0xff]  }
  0x1c   : > { %2848 = vmatpush3.bf16.msra.mxu0 %v3057_v14  ;;  %2753 = vmatprep.subr.bf16.mxu1 %v3058_v22  ;;  %v2320_v62 = vcombine.low %v267_v52, %v281_v57  ;;  %v1071_v4 = vrot.slane %v1070_v58, 4  ;;  %v300_v7 = vshll.u32 %v3267_v55, 16  ;;  %v288_v10 = vrot.slane %v286_v2, 5  ;;  %v3301_v21 = vld [vmem:[%s3207_s14 + $0x24] sm:$0x1] }
  0x1d   : > { %2849 = vmatprep.subr.bf16.mxu0 %v3059_v23  ;;  %v1062_v9 = vsel %vm3252_vm2, %v1057_v0, %v1061_v54  ;;  %v306_v14 = vshll.u32 %v3275_v60, 16  ;;  %v299_v19 = vrot.slane %v297_v6, 4  ;;  %v294_v24 = vrot.slane %v292_v3, 5  ;;  %v3065_v54 = vld [vmem:[%s3759_s1 + $0x148] sm:$0xff]   ;;  %v3331_v0 = vld [vmem:[%s3207_s14 + $0x24] sm:$0x1] }
  0x1e   : > { %2757 = vmatprep.mubr.bf16.mxu1 %v2320_v62  ;;  %v1076_v18 = vsel %vm3252_vm2, %v1071_v4, %v1075_v59  ;;  %v302_v20 = vrot.slane %v300_v7, 5  ;;  %v1078_v27 = vshrl.u32 %v2420_v8, 16  ;;  %v1081_v28 = vshll.u32 %v2420_v8, 16  ;;  %v3066_v59 = vld [vmem:[%s3759_s1 + $0x10] sm:$0xff]   ;;  %v3325_v62 = vld [vmem:[%s3207_s14 + $0x20] sm:$0xf] }
  0x1f   : > { %2754 = vmatpush3.bf16.msra.mxu1 %v3058_v22  ;;  %v2448_v22 = vcombine.low %v1062_v9, %v1076_v18  ;;  %v308_v25 = vrot.slane %v306_v14, 5  ;;  %v1087_v29 = vshll.u32 %v3295_v16, 16  ;;  %v1092_v32 = vshrl.u32 %v2422_v17, 16  ;;  %v3334_v2 = vld [vmem:[%s3207_s14 + $0x2c] sm:$0x1]  ;;  %v3067_v9 = vld [vmem:[%s3759_s1 + $0x150] sm:$0xff]  }
  0x20   : > { %2850 = vmatpush3.bf16.msra.mxu0 %v3059_v23  ;;  %2755 = vmatprep.subr.bf16.mxu1 %v3060_v37  ;;  %v289_v23 = vor.u32 %v288_v10, %v285_v5  ;;  %v303_v26 = vor.u32 %v302_v20, %v299_v19  ;;  %v1095_v33 = vshll.u32 %v2422_v17, 16  ;;  %v1101_v35 = vshll.u32 %v3301_v21, 16  ;;  %v3068_v10 = vld [vmem:[%s3759_s1 + $0x18] sm:$0xff]  }
  0x21   : > { %2851 = vmatprep.subr.bf16.mxu0 %v3061_v47  ;;  %2853 = vmatprep.mubr.bf16.mxu0 %v2448_v22  ;;  %v1083_v39 = vrot.slane %v1081_v28, 5  ;;  %v1094_v41 = vrot.slane %v1092_v32, 4  ;;  %v1089_v46 = vrot.slane %v1087_v29, 5  ;;  %v1341_v57 = vrot.slane %v3241_v31, 5  ;;  %v3069_v29 = vld [vmem:[%s3759_s1 + $0x158] sm:$0xff]  }
  0x22   : > { %v290_v30 = vrot.slane %v289_v23, 4  ;;  %v304_v36 = vrot.slane %v303_v26, 4  ;;  %v1097_v42 = vrot.slane %v1095_v33, 5  ;;  %v311_v3 = vshrl.u32 %v3325_v62, 16  ;;  %v2424_v23 = vld [vmem:[%s3207_s14 + $0x28] sm:$0xf] }
  0x23   : > { %2756 = vmatpush3.bf16.msra.mxu1 %v3060_v37  ;;  %v1080_v37 = vrot.slane %v1078_v27, 4  ;;  %v314_v4 = vshll.u32 %v3325_v62, 16  ;;  %v320_v5 = vshll.u32 %v3331_v0, 16  ;;  %v334_v8 = vshll.u32 %v3334_v2, 16  ;;  %v3355_v26 = vld [vmem:[%s3207_s14 + $0x34] sm:$0x1] }
  0x24   : > { %2852 = vmatpush3.bf16.msra.mxu0 %v3061_v47  ;;  %2765 = vmatprep.subr.bf16.mxu1 %v3062_v63  ;;  %v295_v40 = vsel %vm3252_vm2, %v290_v30, %v294_v24  ;;  %v309_v44 = vsel %vm3252_vm2, %v304_v36, %v308_v25  ;;  %v1103_v47 = vrot.slane %v1101_v35, 5  ;;  %v1098_v49 = vor.u32 %v1097_v42, %v1094_v41  ;;  %v3351_v24 = vld [vmem:[%s3207_s14 + $0x2c] sm:$0x1]  ;;  %v2426_v25 = vld [vmem:[%s3207_s14 + $0x30] sm:$0xf]  ;;  %v3070_v30 = vld [vmem:[%s3759_s1 + $0x20] sm:$0xff]  }
  0x25   : > { %2861 = vmatprep.subr.bf16.mxu0 %v3284_v1  ;;  %v1084_v45 = vor.u32 %v1083_v39, %v1080_v37  ;;  %v2321_v48 = vcombine.low %v295_v40, %v309_v44  ;;  %v313_v14 = vrot.slane %v311_v3, 4  ;;  %v316_v17 = vrot.slane %v314_v4, 5 }
  0x26   : > { %v1099_v52 = vrot.slane %v1098_v49, 4  ;;  %v322_v18 = vrot.slane %v320_v5, 5  ;;  %v336_v22 = vrot.slane %v334_v8, 5  ;;  %v1106_v27 = vshrl.u32 %v2424_v23, 16  ;;  %v2428_v5 = vld [vmem:[%s3207_s14 + $0x38] sm:$0xf] }
  0x27   : > { %v1085_v50 = vrot.slane %v1084_v45, 4  ;;  %2758 = vmatmul.mubr.bf16.vlgmr.msra.gmra.mrb[0].mxu1 %v2321_v48  ;;  %v1109_v28 = vshll.u32 %v2424_v23, 16  ;;  %v1115_v33 = vshll.u32 %v3351_v24, 16  ;;  %v1120_v35 = vshrl.u32 %v2426_v25, 16 }
  0x28   : > { %2766 = vmatpush3.bf16.msra.mxu1 %v3062_v63  ;;  %v1104_v58 = vsel %vm3252_vm2, %v1099_v52, %v1103_v47  ;;  %v3328_v63 = vld [vmem:[%s3207_s14 + $0x28] sm:$0xf]  ;;  %v1123_v36 = vshll.u32 %v2426_v25, 16  ;;  %v1108_v39 = vrot.slane %v1106_v27, 4  ;;  %v1129_v41 = vshll.u32 %v3355_v26, 16 }
  0x29   : > { %v1090_v53 = vsel %vm3252_vm2, %v1085_v50, %v1089_v46  ;;  %2767 = vmatprep.subr.bf16.mxu1 %v3064_v43  ;;  %v325_v6 = vshrl.u32 %v3328_v63, 16  ;;  %v328_v7 = vshll.u32 %v3328_v63, 16  ;;  %v1111_v40 = vrot.slane %v1109_v28, 5  ;;  %v3366_v46 = vld [vmem:[%s3207_s14 + $0x30] sm:$0xf] }
  0x2a   : > { %v2449_v61 = vcombine.low %v1090_v53, %v1104_v58  ;;  %v1122_v44 = vrot.slane %v1120_v35, 4  ;;  %v1125_v45 = vrot.slane %v1123_v36, 5  ;;  %v1131_v49 = vrot.slane %v1129_v41, 5  ;;  %v3371_v50 = vld [vmem:[%s3207_s14 + $0x38] sm:$0xf] }
  0x2b   : > { %v327_v19 = vrot.slane %v325_v6, 4  ;;  %v330_v20 = vrot.slane %v328_v7, 5  ;;  %v1112_v48 = vor.u32 %v1111_v40, %v1108_v39  ;;  %v3374_v52 = vld [vmem:[%s3207_s14 + $0x34] sm:$0x1]  ;;  %v339_v53 = vshrl.u32 %v3366_v46, 16  ;;  %v3072_v6 = vld [vmem:[%s3759_s1 + $0x28] sm:$0xff]  }
  0x2c   : > { %2854 = vmatmul.mubr.bf16.vlgmr.msra.gmra.mrb[0].mxu0 %v2449_v61  ;;  %2768 = vmatpush3.bf16.msra.mxu1 %v3064_v43  ;;  %v1117_v43 = vrot.slane %v1115_v33, 5  ;;  %v3383_v61 = vld [vmem:[%s3207_s14 + $0x3c] sm:$0x1]  ;;  %v342_v3 = vshll.u32 %v3366_v46, 16  ;;  %v348_v4 = vshll.u32 %v3374_v52, 16  ;;  %v1134_v28 = vshrl.u32 %v2428_v5, 16 }
  0x2d   : > { %2862 = vmatpush3.bf16.msra.mxu0 %v3284_v1  ;;  %2769 = vmatprep.subr.bf16.mxu1 %v3066_v59  ;;  %v317_v1 = vor.u32 %v316_v17, %v313_v14  ;;  %v331_v32 = vor.u32 %v330_v20, %v327_v19  ;;  %v1113_v8 = vrot.slane %v1112_v48, 4  ;;  %v353_v14 = vshrl.u32 %v3371_v50, 16  ;;  %v3393_v17 = vld [vmem:[%s3207_s14 + $0x3c] sm:$0x1]  ;;  %v3401_v27 = vld [vmem:[%s3207_s14 + $0x44] sm:$0x1] }
  0x2e   : > { %2863 = vmatprep.subr.bf16.mxu0 %v3065_v54  ;;  %v344_v19 = vrot.slane %v342_v3, 5  ;;  %v350_v20 = vrot.slane %v348_v4, 5  ;;  %v362_v25 = vshll.u32 %v3383_v61, 16  ;;  %v1137_v36 = vshll.u32 %v2428_v5, 16 }
  0x2f   : > { %v318_v37 = vrot.slane %v317_v1, 4  ;;  %v332_v42 = vrot.slane %v331_v32, 4  ;;  %v1118_v23 = vsel %vm3252_vm2, %v1113_v8, %v1117_v43  ;;  %v355_v1 = vrot.slane %v353_v14, 4 }
  0x30   : > { %2770 = vmatpush3.bf16.msra.mxu1 %v3066_v59  ;;  %v1126_v59 = vor.u32 %v1125_v45, %v1122_v44  ;;  %v364_v40 = vrot.slane %v362_v25, 5  ;;  %v1136_v41 = vrot.slane %v1134_v28, 4  ;;  %v1139_v45 = vrot.slane %v1137_v36, 5  ;;  %v2462_v25 = vld [vmem:[%s3207_s14 + $0x18] sm:$0xe] }
  0x31   : > { %2864 = vmatpush3.bf16.msra.mxu0 %v3065_v54  ;;  %2771 = vmatprep.subr.bf16.mxu1 %v3068_v10  ;;  %v323_v47 = vsel %vm3252_vm2, %v318_v37, %v322_v18  ;;  %v3071_v54 = vld [vmem:[%s3759_s1 + $0x160] sm:$0xff]   ;;  %v337_v58 = vsel %vm3252_vm2, %v332_v42, %v336_v22  ;;  %v356_v22 = vshll.u32 %v3371_v50, 16  ;;  %v3074_v37 = vld [vmem:[%s3759_s1 + $0x30] sm:$0xff]   ;;  %v1143_v42 = vshll.u32 %v3393_v17, 16  ;;  %v3077_v28 = vld [vmem:[%s3759_s1 + $0x178] sm:$0xff]  }
  0x32   : > { %2865 = vmatprep.subr.bf16.mxu0 %v3067_v9  ;;  %v2322_v7 = vcombine.low %v323_v47, %v337_v58  ;;  %v1127_v18 = vrot.slane %v1126_v59, 4  ;;  %v1345_v47 = vrot.slane %v3245_v34, 5  ;;  %v1349_v48 = vrot.slane %v3295_v16, 5  ;;  %v3075_v58 = vld [vmem:[%s3759_s1 + $0x170] sm:$0xff]  }
  0x33   : > { %v358_v35 = vrot.slane %v356_v22, 5  ;;  %v1140_v4 = vor.u32 %v1139_v45, %v1136_v41  ;;  %v1145_v34 = vrot.slane %v1143_v42, 5  ;;  %v1353_v22 = vrot.slane %v3301_v21, 5  ;;  %v3080_v41 = vld [vmem:[%s3759_s1 + $0x180] sm:$0xff]  }
  0x34   : > { %2772 = vmatpush3.bf16.msra.mxu1 %v3068_v10  ;;  %v341_v10 = vrot.slane %v339_v53, 4  ;;  %2761 = vmatprep.mubr.bf16.mxu1 %v2322_v7  ;;  %v1132_v32 = vsel %vm3252_vm2, %v1127_v18, %v1131_v49  ;;  %v1157_v53 = vshll.u32 %v3401_v27, 16  ;;  %v2460_v7 = vld [vmem:[%s3207_s14 + $0x8] sm:$0xe]  ;;  %v2470_v36 = vrot.slane %v2462_v25, 9 }
  0x35   : > { %2866 = vmatpush3.bf16.msra.mxu0 %v3067_v9  ;;  %2773 = vmatprep.subr.bf16.mxu1 %v3070_v30  ;;  %v2430_v9 = vld [vmem:[%s3207_s14 + $0x40] sm:$0xf]  ;;  %v2450_v39 = vcombine.low %v1118_v23, %v1132_v32  ;;  %v359_v44 = vor.u32 %v358_v35, %v355_v1  ;;  %v2468_v14 = vrot.slane %v2460_v7, 9  ;;  %v1141_v18 = vrot.slane %v1140_v4, 4 }
  0x36   : > { %2867 = vmatprep.subr.bf16.mxu0 %v3069_v29  ;;  %v345_v33 = vor.u32 %v344_v19, %v341_v10  ;;  %v1151_v49 = vshll.u32 %v2430_v9, 16  ;;  %v2461_v10 = vld [vmem:[%s3207_s14 + $0x10] sm:$0xe]  ;;  %v2332_v19 = vcombine.low %v3213_v11, %v3216_v12  ;;  %v1159_v1 = vrot.slane %v1157_v53, 5  ;;  %v2463_v12 = vld [vmem:[%s3207_s14 + $0x20] sm:$0xe] }
  0x37   : > { %2857 = vmatprep.mubr.bf16.mxu0 %v2450_v39  ;;  %v360_v3 = vrot.slane %v359_v44, 4  ;;  %v1342_v32 = vsel %vm3426_vm5, %v2468_v14, %v1341_v57  ;;  %v1146_v21 = vsel %vm3252_vm2, %v1141_v18, %v1145_v34  ;;  %v3079_v35 = vld [vmem:[%s3759_s1 + $0x80] sm:$0xff]   ;;  %v1350_v42 = vsel %vm3426_vm5, %v2470_v36, %v1349_v48  ;;  %v3084_v44 = vld [vmem:[%s3759_s1 + $0x90] sm:$0xff]  }
  0x38   : > { %2774 = vmatpush3.bf16.msra.mxu1 %v3070_v30  ;;  %v3073_v30 = vld [vmem:[%s3759_s1 + $0x168] sm:$0xff]   ;;  %v346_v43 = vrot.slane %v345_v33, 4  ;;  %v1153_v16 = vrot.slane %v1151_v49, 5  ;;  %v1357_v45 = vrot.slane %v3351_v24, 5  ;;  %v1365_v53 = vrot.slane %v3393_v17, 5  ;;  %v3088_v18 = vld [vmem:[%s3759_s1 + $0xa0] sm:$0xff]  }
  0x39   : > { %2868 = vmatpush3.bf16.msra.mxu0 %v3069_v29  ;;  %2775 = vmatprep.subr.bf16.mxu1 %v3072_v6  ;;  %v1148_v29 = vshrl.u32 %v2430_v9, 16  ;;  %v1369_v24 = vrot.slane %v3401_v27, 5  ;;  %v682_v34 = vrot.slane %v3225_v15, 5  ;;  %v686_v17 = vrot.slane %v3270_v56, 5  ;;  %v650_v15 = vld [vmem:[%s3207_s14 + $0x8] sm:$0xe] }
  0x3a   : > { %2869 = vmatprep.subr.bf16.mxu0 %v3071_v54  ;;  %v351_v59 = vsel %vm3252_vm2, %v346_v43, %v350_v20  ;;  %v2469_v20 = vrot.slane %v2461_v10, 9  ;;  %v3082_v43 = vld [vmem:[%s3759_s1 + $0x88] sm:$0xff]   ;;  %v3085_v10 = vld [vmem:[%s3759_s1 + $0x190] sm:$0xff]   ;;  %v2345_v14 = vrot.slane %v650_v15, 9  ;;  %v694_v36 = vrot.slane %v3331_v0, 5  ;;  %v3098_v0 = vld [vmem:[%s3759_s1 + $0xc0] sm:$0xff]  }
  0x3b   : > { %v1150_v5 = vrot.slane %v1148_v29, 4  ;;  %v1361_v29 = vrot.slane %v3355_v26, 5  ;;  %v2335_v26 = vcombine.low %v3366_v46, %v3371_v50  ;;  %v3086_v46 = vld [vmem:[%s3759_s1 + $0x98] sm:$0xff]   ;;  %v3103_v15 = vld [vmem:[%s3759_s1 + $0x1c8] sm:$0xff]  }
  0x3c   : > { %2776 = vmatpush3.bf16.msra.mxu1 %v3072_v6  ;;  %v3076_v6 = vld [vmem:[%s3759_s1 + $0x38] sm:$0xff]   ;;  %v1346_v11 = vsel %vm3426_vm5, %v2469_v20, %v1345_v47 }
  0x3d   : > { %2870 = vmatpush3.bf16.msra.mxu0 %v3071_v54  ;;  %2777 = vmatprep.subr.bf16.mxu1 %v3074_v37  ;;  %v365_v54 = vsel %vm3252_vm2, %v360_v3, %v364_v40  ;;  %v1154_v23 = vor.u32 %v1153_v16, %v1150_v5  ;;  %v2492_v57 = vcombine.low %v1342_v32, %v1346_v11  ;;  %v649_v16 = vld [vmem:[%s3207_s14] sm:$0xe]  ;;  %v3087_v20 = vld [vmem:[%s3759_s1 + $0x198] sm:$0xff]  }
  0x3e   : > { %2871 = vmatprep.subr.bf16.mxu0 %v3073_v30  ;;  %v2323_v9 = vcombine.low %v351_v59, %v365_v54  ;;  %v2333_v40 = vcombine.low %v3262_v51, %v3267_v55  ;;  %v2334_v51 = vcombine.low %v3325_v62, %v3328_v63  ;;  %v678_v55 = vrot.slane %v3219_v13, 5  ;;  %v3083_v62 = vld [vmem:[%s3759_s1 + $0x188] sm:$0xff]   ;;  %v2465_v63 = vld [vmem:[%s3207_s14 + $0x30] sm:$0xe]  ;;  %v2467_v59 = vld [vmem:[%s3207_s14 + $0x40] sm:$0xe] }
  0x3f   : > { %v1155_v33 = vrot.slane %v1154_v23, 4  ;;  %v2464_v13 = vld [vmem:[%s3207_s14 + $0x28] sm:$0xe]  ;;  %v2473_v49 = vrot.slane %v2465_v63, 9  ;;  %v2475_v7 = vrot.slane %v2467_v59, 9  ;;  %v2344_v56 = vrot.slane %v649_v16, 9 }
  0x40   : > { %2778 = vmatpush3.bf16.msra.mxu1 %v3074_v37  ;;  %v2471_v37 = vrot.slane %v2463_v12, 9  ;;  %v2472_v48 = vrot.slane %v2464_v13, 9  ;;  %v690_v54 = vrot.slane %v3275_v60, 5  ;;  %v651_v23 = vld [vmem:[%s3207_s14 + $0x10] sm:$0xe] }
  0x41   : > { %2872 = vmatpush3.bf16.msra.mxu0 %v3073_v30  ;;  %2762 = vmatmul.mubr.bf16.gmra.mrb[4].mxu1 %v2323_v9  ;;  %v1160_v31 = vsel %vm3252_vm2, %v1155_v33, %v1159_v1  ;;  %v1362_v4 = vsel %vm3426_vm5, %v2473_v49, %v1361_v29  ;;  %v683_v9 = vsel %vm3426_vm5, %v2345_v14, %v682_v34  ;;  %v652_v60 = vld [vmem:[%s3207_s14 + $0x18] sm:$0xe]  ;;  %v2346_v25 = vrot.slane %v651_v23, 9  ;;  %v3090_v33 = vld [vmem:[%s3759_s1 + $0xa8] sm:$0xff]  }
  0x42   : > { %2873 = vmatprep.subr.bf16.mxu0 %v3075_v58  ;;  %2779 = vmatprep.subr.bf16.mxu1 %v3076_v6  ;;  %v2451_v39 = vcombine.low %v1146_v21, %v1160_v31  ;;  %v1354_v30 = vsel %vm3426_vm5, %v2471_v37, %v1353_v22  ;;  %v1358_v3 = vsel %vm3426_vm5, %v2472_v48, %v1357_v45  ;;  %v3099_v32 = vld [vmem:[%s3207_s14 + $0x10] ss:$8 sps:$4 sm:$0xff]   ;;  %v702_v29 = vrot.slane %v3374_v52, 5  ;;  %v3102_v49 = vld [vmem:[%s3759_s1 + $0xc8] sm:$0xff]  }
  0x43   : > { %2781 = vmatprep.mubr.bf16.mxu1 %v2332_v19  ;;  %v2493_v47 = vcombine.low %v1350_v42, %v1354_v30  ;;  %v2494_v27 = vcombine.low %v1358_v3, %v1362_v4  ;;  %v679_v19 = vsel %vm3426_vm5, %v2344_v56, %v678_v55  ;;  %v687_v11 = vsel %vm3426_vm5, %v2346_v25, %v686_v17  ;;  %v3093_v31 = vld [vmem:[%s3759_s1 + $0xb0] sm:$0xff]   ;;  %v3096_v37 = vld [vmem:[%s3759_s1 + $0xb8] sm:$0xff]   ;;  %v2546_v25 = vld [vmem:[%s3207_s14 + $0x28] sm:$0xf] }
  0x44   : > { %2780 = vmatpush3.bf16.msra.mxu1 %v3076_v6  ;;  %2858 = vmatmul.mubr.bf16.gmra.mrb[4].mxu0 %v2451_v39  ;;  %v1370_v6 = vsel %vm3426_vm5, %v2475_v7, %v1369_v24  ;;  %v2368_v1 = vcombine.low %v679_v19, %v683_v9  ;;  %v653_v39 = vld [vmem:[%s3207_s14 + $0x20] sm:$0xe]  ;;  %v3097_v45 = vld [vmem:[%s3759_s1 + $0x1b8] sm:$0xff]   ;;  %v3565_v24 = vld [vmem:[%s3207_s14 + $0x14] sm:$0x1] }
  0x45   : > { %2874 = vmatpush3.bf16.msra.mxu0 %v3075_v58  ;;  %2789 = vmatprep.subr.bf16.mxu1 %v3079_v35  ;;  %v2466_v58 = vld [vmem:[%s3207_s14 + $0x38] sm:$0xe]  ;;  %v2348_v42 = vrot.slane %v653_v39, 9  ;;  %v1722_v59 = vshll.u32 %v3565_v24, 16  ;;  %v3101_v7 = vld [vmem:[%s3207_s14 + $0x20] ss:$8 sps:$4 sm:$0xff]  }
  0x46   : > { %2875 = vmatprep.subr.bf16.mxu0 %v3077_v28  ;;  %2877 = vmatprep.mubr.bf16.mxu0 %v2492_v57  ;;  %v2474_v5 = vrot.slane %v2466_v58, 9  ;;  %v3091_v57 = vld [vmem:[%s3759_s1 + $0x1a8] sm:$0xff]   ;;  %v2542_v52 = vld [vmem:[%s3207_s14 + $0x18] sm:$0xf]  ;;  %v3105_v9 = vld [vmem:[%s3759_s1 + $0x1d0] sm:$0xff]  }
  0x47   : > { %v1727_v3 = vshrl.u32 %v2542_v52, 16  ;;  %v1730_v4 = vshll.u32 %v2542_v52, 16  ;;  %v3112_v56 = vld [vmem:[%s3207_s14 + $0x30] ss:$8 sps:$4 sm:$0xff]   ;;  %v3111_v52 = vld [vmem:[%s3759_s1 + $0x1e8] sm:$0xff]  }
  0x48   : > { %v1366_v50 = vsel %vm3426_vm5, %v2474_v5, %v1365_v53  ;;  %v2540_v53 = vld [vmem:[%s3207_s14 + $0x10] sm:$0xf]  ;;  %v3106_v23 = vld [vmem:[%s3759_s1 + $0xd8] sm:$0xff]  }
  0x49   : > { %2876 = vmatpush3.bf16.msra.mxu0 %v3077_v28  ;;  %2782 = vmatmul.mubr.bf16.vlgmr.msra.gmra.mrb[0].mxu1 %v2333_v40  ;;  %v2495_v22 = vcombine.low %v1366_v50, %v1370_v6  ;;  %v2347_v28 = vrot.slane %v652_v60, 9  ;;  %v654_v40 = vld [vmem:[%s3207_s14 + $0x28] sm:$0xe]  ;;  %v1716_v58 = vshll.u32 %v2540_v53, 16  ;;  %v1729_v50 = vrot.slane %v1727_v3, 4 }
  0x4a   : > { %2885 = vmatprep.subr.bf16.mxu0 %v3080_v41  ;;  %2790 = vmatpush3.bf16.msra.mxu1 %v3079_v35  ;;  %v3089_v35 = vld [vmem:[%s3759_s1 + $0x1a0] sm:$0xff]   ;;  %v2349_v30 = vrot.slane %v654_v40, 9  ;;  %v1732_v6 = vrot.slane %v1730_v4, 5 }
  0x4b   : > { %2791 = vmatprep.subr.bf16.mxu1 %v3082_v43  ;;  %2785 = vmatprep.mubr.bf16.mxu1 %v2334_v51  ;;  %v691_v12 = vsel %vm3426_vm5, %v2347_v28, %v690_v54  ;;  %v655_v51 = vld [vmem:[%s3207_s14 + $0x30] sm:$0xe]  ;;  %v1718_v16 = vrot.slane %v1716_v58, 5  ;;  %v1724_v54 = vrot.slane %v1722_v59, 5 }
  0x4c   : > { %2878 = vmatmul.mubr.bf16.vlgmr.msra.gmra.mrb[0].mxu0 %v2493_v47  ;;  %v2369_v21 = vcombine.low %v687_v11, %v691_v12  ;;  %v706_v47 = vrot.slane %v3383_v61, 5  ;;  %v2350_v63 = vrot.slane %v655_v51, 9  ;;  %v3569_v61 = vld [vmem:[%s3207_s14 + $0x1c] sm:$0x1]  ;;  %v3114_v11 = vld [vmem:[%s3207_s14 + $0x40] ss:$8 sps:$4 sm:$0xff]  }
  0x4d   : > { %2886 = vmatpush3.bf16.msra.mxu0 %v3080_v41  ;;  %2881 = vmatprep.mubr.bf16.mxu0 %v2494_v27  ;;  %v698_v41 = vrot.slane %v3334_v2, 5  ;;  %v695_v2 = vsel %vm3426_vm5, %v2348_v42, %v694_v36  ;;  %v1736_v5 = vshll.u32 %v3569_v61, 16  ;;  %v2548_v12 = vld [vmem:[%s3207_s14 + $0x30] sm:$0xf]  ;;  %v1758_v36 = vshll.u32 %v2546_v25, 16 }
  0x4e   : > { %2792 = vmatpush3.bf16.msra.mxu1 %v3082_v43  ;;  %2887 = vmatprep.subr.bf16.mxu0 %v3083_v62  ;;  %v3094_v43 = vld [vmem:[%s3759_s1 + $0x1b0] sm:$0xff]   ;;  %v703_v34 = vsel %vm3426_vm5, %v2350_v63, %v702_v29  ;;  %v1769_v40 = vshrl.u32 %v2548_v12, 16  ;;  %v3614_v51 = vld [vmem:[%s3207_s14 + $0x24] sm:$0x1] }
  0x4f   : > { %2793 = vmatprep.subr.bf16.mxu1 %v3084_v44  ;;  %v699_v55 = vsel %vm3426_vm5, %v2349_v30, %v698_v41  ;;  %v1738_v19 = vrot.slane %v1736_v5, 5  ;;  %v1772_v41 = vshll.u32 %v2548_v12, 16  ;;  %v1760_v29 = vrot.slane %v1758_v36, 5  ;;  %v2554_v5 = vld [vmem:[%s3207_s14 + $0x48] sm:$0xf]  ;;  %v3117_v12 = vld [vmem:[%s3759_s1 + $0x1f8] sm:$0xff]  }
  0x50   : > { %v2370_v13 = vcombine.low %v695_v2, %v699_v55  ;;  %v3617_v2 = vld [vmem:[%s3207_s14 + $0x2c] sm:$0x1]  ;;  %v1750_v58 = vshll.u32 %v3614_v51, 16 }
  0x51   : > { %2786 = vmatmul.mubr.bf16.gmra.mrb[4].mxu1 %v2335_v26  ;;  %2888 = vmatpush3.bf16.msra.mxu0 %v3083_v62  ;;  %v3100_v62 = vld [vmem:[%s3759_s1 + $0x1c0] sm:$0xff]   ;;  %v1713_v26 = vshrl.u32 %v2540_v53, 16  ;;  %v1774_v63 = vrot.slane %v1772_v41, 5  ;;  %v1764_v59 = vshll.u32 %v3617_v2, 16 }
  0x52   : > { %2794 = vmatpush3.bf16.msra.mxu1 %v3084_v44  ;;  %2889 = vmatprep.subr.bf16.mxu0 %v3085_v10  ;;  %v656_v44 = vld [vmem:[%s3207_s14 + $0x38] sm:$0xe]  ;;  %v2552_v53 = vld [vmem:[%s3207_s14 + $0x40] sm:$0xf] }
  0x53   : > { %2795 = vmatprep.subr.bf16.mxu1 %v3086_v46  ;;  %2805 = vmatprep.mubr.bf16.mxu1 %v2368_v1  ;;  %v2351_v48 = vrot.slane %v656_v44, 9  ;;  %v1715_v27 = vrot.slane %v1713_v26, 4  ;;  %v2544_v1 = vld [vmem:[%s3207_s14 + $0x20] sm:$0xf]  ;;  %v3113_v26 = vld [vmem:[%s3759_s1 + $0xf0] sm:$0xff]  }
  0x54   : > { %2882 = vmatmul.mubr.bf16.gmra.mrb[4].mxu0 %v2495_v22 }
  0x55   : > { %2890 = vmatpush3.bf16.msra.mxu0 %v3085_v10  ;;  %2901 = vmatprep.mubr.bf16.mxu0 %v3099_v32  ;;  %v707_v17 = vsel %vm3426_vm5, %v2351_v48, %v706_v47  ;;  %v1719_v10 = vor.u32 %v1718_v16, %v1715_v27  ;;  %v3620_v47 = vld [vmem:[%s3207_s14 + $0x34] sm:$0x1]  ;;  %v1800_v27 = vshll.u32 %v2552_v53, 16 }
  0x56   : > { %2796 = vmatpush3.bf16.msra.mxu1 %v3086_v46  ;;  %2891 = vmatprep.subr.bf16.mxu0 %v3087_v20  ;;  %v3104_v46 = vld [vmem:[%s3759_s1 + $0xd0] sm:$0xff]   ;;  %v2371_v14 = vcombine.low %v703_v34, %v707_v17  ;;  %v1778_v3 = vshll.u32 %v3620_v47, 16  ;;  %v1797_v17 = vshrl.u32 %v2552_v53, 16  ;;  %v2585_v53 = vld [vmem:[%s3207_s14 + $0x18] sm:$0xe] }
  0x57   : > { %2797 = vmatprep.subr.bf16.mxu1 %v3088_v18  ;;  %v1720_v22 = vrot.slane %v1719_v10, 4 }
  0x59   : > { %2892 = vmatpush3.bf16.msra.mxu0 %v3087_v20  ;;  %v3118_v20 = vld [vmem:[%s3207_s14 + $0x8] ss:$8 sps:$4 sm:$0xff]   ;;  %v1725_v28 = vsel %vm3252_vm2, %v1720_v22, %v1724_v54 }
  0x5a   : > { %2798 = vmatpush3.bf16.msra.mxu1 %v3088_v18  ;;  %2893 = vmatprep.subr.bf16.mxu0 %v3089_v35  ;;  %v1733_v18 = vor.u32 %v1732_v6, %v1729_v50  ;;  %v1811_v50 = vshrl.u32 %v2554_v5, 16  ;;  %v1814_v6 = vshll.u32 %v2554_v5, 16  ;;  %v2593_v5 = vrot.slane %v2585_v53, 9 }
  0x5b   : > { %2799 = vmatprep.subr.bf16.mxu1 %v3090_v33 }
  0x5c   : > { %v1734_v60 = vrot.slane %v1733_v18, 4  ;;  %v1766_v18 = vrot.slane %v1764_v59, 5  ;;  %v3123_v59 = vld [vmem:[%s3207_s14 + $0x38] ss:$8 sps:$4 sm:$0xff]  }
  0x5d   : > { %2894 = vmatpush3.bf16.msra.mxu0 %v3089_v35  ;;  %v1741_v35 = vshrl.u32 %v2544_v1, 16 }
  0x5e   : > { %2800 = vmatpush3.bf16.msra.mxu1 %v3090_v33  ;;  %2895 = vmatprep.subr.bf16.mxu0 %v3091_v57  ;;  %v1739_v32 = vsel %vm3252_vm2, %v1734_v60, %v1738_v19  ;;  %v3108_v33 = vld [vmem:[%s3759_s1 + $0xe0] sm:$0xff]   ;;  %v3647_v60 = vld [vmem:[%s3207_s14 + $0x4c] sm:$0x1] }
  0x5f   : > { %2801 = vmatprep.subr.bf16.mxu1 %v3093_v31  ;;  %v2572_v39 = vcombine.low %v1725_v28, %v1739_v32  ;;  %v1743_v55 = vrot.slane %v1741_v35, 4  ;;  %v1813_v28 = vrot.slane %v1811_v50, 4  ;;  %v1816_v32 = vrot.slane %v1814_v6, 5  ;;  %v3119_v35 = vld [vmem:[%s3207_s14 + $0x18] ss:$8 sps:$4 sm:$0xff]   ;;  %v3127_v6 = vld [vmem:[%s3759_s1 + $0x228] sm:$0xff]  }
  0x61   : > { %2896 = vmatpush3.bf16.msra.mxu0 %v3091_v57  ;;  %v1755_v57 = vshrl.u32 %v2546_v25, 16  ;;  %v1802_v25 = vrot.slane %v1800_v27, 5 }
  0x62   : > { %2802 = vmatpush3.bf16.msra.mxu1 %v3093_v31  ;;  %2897 = vmatprep.subr.bf16.mxu0 %v3094_v43  ;;  %v1744_v31 = vshll.u32 %v2544_v1, 16  ;;  %v1799_v1 = vrot.slane %v1797_v17, 4 }
  0x63   : > { %2803 = vmatprep.subr.bf16.mxu1 %v3096_v37 }
  0x64   : > { %v1746_v44 = vrot.slane %v1744_v31, 5 }
  0x65   : > { %2898 = vmatpush3.bf16.msra.mxu0 %v3094_v43  ;;  %v3109_v43 = vld [vmem:[%s3759_s1 + $0x1e0] sm:$0xff]  }
  0x66   : > { %2804 = vmatpush3.bf16.msra.mxu1 %v3096_v37  ;;  %2899 = vmatprep.subr.bf16.mxu0 %v3097_v45  ;;  %v3107_v37 = vld [vmem:[%s3759_s1 + $0x1d8] sm:$0xff]  }
  0x67   : > { %2813 = vmatprep.subr.bf16.mxu1 %v3098_v0 }
  0x69   : > { %2806 = vmatmul.mubr.bf16.vlgmr.msra.gmra.mrb[0].mxu1 %v2369_v21  ;;  %2900 = vmatpush3.bf16.msra.mxu0 %v3097_v45  ;;  %v2550_v21 = vld [vmem:[%s3207_s14 + $0x38] sm:$0xf]  ;;  %v1757_v45 = vrot.slane %v1755_v57, 4 }
  0x6a   : > { %2814 = vmatpush3.bf16.msra.mxu1 %v3098_v0  ;;  %2809 = vmatprep.mubr.bf16.mxu1 %v2370_v13  ;;  %v1783_v42 = vshrl.u32 %v2550_v21, 16  ;;  %v1786_v30 = vshll.u32 %v2550_v21, 16  ;;  %v3110_v0 = vld [vmem:[%s3759_s1 + $0xe8] sm:$0xff]   ;;  %v1771_v13 = vrot.slane %v1769_v40, 4  ;;  %v2588_v21 = vld [vmem:[%s3207_s14 + $0x30] sm:$0xe] }
  0x6b   : > { %2815 = vmatprep.subr.bf16.mxu1 %v3102_v49  ;;  %2909 = vmatprep.subr.bf16.mxu0 %v3100_v62  ;;  %v1761_v34 = vor.u32 %v1760_v29, %v1757_v45 }
  0x6c   : > { %2902 = vmatmul.mubr.bf16.vlgmr.msra.gmra.mrb[0].mxu0 %v3101_v7  ;;  %v1785_v48 = vrot.slane %v1783_v42, 4  ;;  %v1747_v7 = vor.u32 %v1746_v44, %v1743_v55  ;;  %v1775_v16 = vor.u32 %v1774_v63, %v1771_v13  ;;  %v1803_v42 = vor.u32 %v1802_v25, %v1799_v1 }
  0x6d   : > { %2910 = vmatpush3.bf16.msra.mxu0 %v3100_v62  ;;  %2905 = vmatprep.mubr.bf16.mxu0 %v3112_v56  ;;  %v3623_v62 = vld [vmem:[%s3207_s14 + $0x3c] sm:$0x1]  ;;  %v3115_v56 = vld [vmem:[%s3759_s1 + $0x1f0] sm:$0xff]   ;;  %v1762_v54 = vrot.slane %v1761_v34, 4  ;;  %v2020_v55 = vrot.slane %v3620_v47, 5  ;;  %v2012_v25 = vrot.slane %v3614_v51, 5 }
  0x6e   : > { %2816 = vmatpush3.bf16.msra.mxu1 %v3102_v49  ;;  %2911 = vmatprep.subr.bf16.mxu0 %v3103_v15  ;;  %v1788_v49 = vrot.slane %v1786_v30, 5  ;;  %v1792_v4 = vshll.u32 %v3623_v62, 16  ;;  %v1748_v10 = vrot.slane %v1747_v7, 4  ;;  %v1776_v19 = vrot.slane %v1775_v16, 4  ;;  %v3125_v16 = vld [vmem:[%s3759_s1 + $0x218] sm:$0xff]  }
  0x6f   : > { %2817 = vmatprep.subr.bf16.mxu1 %v3104_v46  ;;  %v1767_v57 = vsel %vm3252_vm2, %v1762_v54, %v1766_v18  ;;  %v1817_v30 = vor.u32 %v1816_v32, %v1813_v28  ;;  %v2024_v45 = vrot.slane %v3623_v62, 5  ;;  %v2008_v7 = vrot.slane %v3569_v61, 5 }
  0x70   : > { %v2032_v54 = vrot.slane %v3647_v60, 5  ;;  %v2016_v32 = vrot.slane %v3617_v2, 5 }
  0x71   : > { %2810 = vmatmul.mubr.bf16.gmra.mrb[4].mxu1 %v2371_v14  ;;  %2912 = vmatpush3.bf16.msra.mxu0 %v3103_v15  ;;  %v3116_v15 = vld [vmem:[%s3759_s1 + $0xf8] sm:$0xff]   ;;  %v1752_v14 = vrot.slane %v1750_v58, 5  ;;  %v3124_v58 = vld [vmem:[%s3759_s1 + $0x210] sm:$0xff]   ;;  %v2009_v61 = vsel %vm3426_vm5, %v2593_v5, %v2008_v7 }
  0x72   : > { %2818 = vmatpush3.bf16.msra.mxu1 %v3104_v46  ;;  %2829 = vmatprep.mubr.bf16.mxu1 %v3118_v20  ;;  %v1789_v46 = vor.u32 %v1788_v49, %v1785_v48  ;;  %v1780_v20 = vrot.slane %v1778_v3, 5  ;;  %v2584_v49 = vld [vmem:[%s3207_s14 + $0x10] sm:$0xe] }
  0x73   : > { %2819 = vmatprep.subr.bf16.mxu1 %v3106_v23  ;;  %2913 = vmatprep.subr.bf16.mxu0 %v3105_v9  ;;  %v1753_v31 = vsel %vm3252_vm2, %v1748_v10, %v1752_v14  ;;  %v2592_v3 = vrot.slane %v2584_v49, 9  ;;  %v2591_v10 = vld [vmem:[%s3207_s14 + $0x48] sm:$0xe] }
  0x74   : > { %2906 = vmatmul.mubr.bf16.gmra.mrb[4].mxu0 %v3114_v11  ;;  %v1790_v22 = vrot.slane %v1789_v46, 4  ;;  %v3120_v11 = vld [vmem:[%s3759_s1 + $0x200] sm:$0xff]   ;;  %v1781_v40 = vsel %vm3252_vm2, %v1776_v19, %v1780_v20  ;;  %v2573_v29 = vcombine.low %v1753_v31, %v1767_v57  ;;  %v2599_v19 = vrot.slane %v2591_v10, 9  ;;  %v3129_v20 = vld [vmem:[%s3759_s1 + $0x238] sm:$0xff]  }
  0x75   : > { %2914 = vmatpush3.bf16.msra.mxu0 %v3105_v9  ;;  %2925 = vmatprep.mubr.bf16.mxu0 %v2572_v39  ;;  %v1794_v9 = vrot.slane %v1792_v4, 5  ;;  %v3122_v39 = vld [vmem:[%s3207_s14 + $0x28] ss:$8 sps:$4 sm:$0xff]   ;;  %v2004_v4 = vrot.slane %v3565_v24, 5 }
  0x76   : > { %2820 = vmatpush3.bf16.msra.mxu1 %v3106_v23  ;;  %2915 = vmatprep.subr.bf16.mxu0 %v3107_v37  ;;  %v3644_v23 = vld [vmem:[%s3207_s14 + $0x44] sm:$0x1] }
  0x77   : > { %2821 = vmatprep.subr.bf16.mxu1 %v3108_v33  ;;  %v1806_v36 = vshll.u32 %v3644_v23, 16  ;;  %v1795_v41 = vsel %vm3252_vm2, %v1790_v22, %v1794_v9  ;;  %v2005_v24 = vsel %vm3426_vm5, %v2592_v3, %v2004_v4  ;;  %v2028_v14 = vrot.slane %v3644_v23, 5  ;;  %v2586_v22 = vld [vmem:[%s3207_s14 + $0x20] sm:$0xe]  ;;  %v2587_v9 = vld [vmem:[%s3207_s14 + $0x28] sm:$0xe] }
  0x78   : > { %v2574_v13 = vcombine.low %v1781_v40, %v1795_v41  ;;  %v2616_v50 = vcombine.low %v2005_v24, %v2009_v61  ;;  %v2033_v23 = vsel %vm3426_vm5, %v2599_v19, %v2032_v54  ;;  %v2595_v28 = vrot.slane %v2587_v9, 9 }
  0x79   : > { %2916 = vmatpush3.bf16.msra.mxu0 %v3107_v37  ;;  %v1820_v37 = vshll.u32 %v3647_v60, 16  ;;  %v1808_v63 = vrot.slane %v1806_v36, 5  ;;  %v2594_v60 = vrot.slane %v2586_v22, 9 }
  0x7a   : > { %2822 = vmatpush3.bf16.msra.mxu1 %v3108_v33  ;;  %2917 = vmatprep.subr.bf16.mxu0 %v3109_v43  ;;  %v2589_v33 = vld [vmem:[%s3207_s14 + $0x38] sm:$0xe] }
  0x7b   : > { %2823 = vmatprep.subr.bf16.mxu1 %v3110_v0  ;;  %v2597_v44 = vrot.slane %v2589_v33, 9  ;;  %v1822_v48 = vrot.slane %v1820_v37, 5 }
  0x7d   : > { %2918 = vmatpush3.bf16.msra.mxu0 %v3109_v43  ;;  %v3121_v43 = vld [vmem:[%s3759_s1 + $0x208] sm:$0xff]   ;;  %v2025_v62 = vsel %vm3426_vm5, %v2597_v44, %v2024_v45  ;;  %v2628_v44 = vld [vmem:[%s3760_s2] ss:$0 sm:$0xff] }
  0x7e   : > { %2824 = vmatpush3.bf16.msra.mxu1 %v3110_v0  ;;  %2919 = vmatprep.subr.bf16.mxu0 %v3111_v52  ;;  %v2596_v0 = vrot.slane %v2588_v21, 9  ;;  %v2017_v21 = vsel %vm3426_vm5, %v2595_v28, %v2016_v32 }
  0x7f   : > { %2825 = vmatprep.subr.bf16.mxu1 %v3113_v26 }
  0x80   : > { %v2021_v47 = vsel %vm3426_vm5, %v2596_v0, %v2020_v55 }
  0x81   : > { %2920 = vmatpush3.bf16.msra.mxu0 %v3111_v52  ;;  %v1804_v52 = vrot.slane %v1803_v42, 4  ;;  %v2618_v34 = vcombine.low %v2021_v47, %v2025_v62 }
  0x82   : > { %2826 = vmatpush3.bf16.msra.mxu1 %v3113_v26  ;;  %2921 = vmatprep.subr.bf16.mxu0 %v3115_v56  ;;  %v1818_v26 = vrot.slane %v1817_v30, 4 }
  0x83   : > { %2827 = vmatprep.subr.bf16.mxu1 %v3116_v15  ;;  %v1809_v17 = vsel %vm3252_vm2, %v1804_v52, %v1808_v63 }
  0x84   : > { %v1823_v27 = vsel %vm3252_vm2, %v1818_v26, %v1822_v48 }
  0x85   : > { %2922 = vmatpush3.bf16.msra.mxu0 %v3115_v56  ;;  %v2575_v46 = vcombine.low %v1809_v17, %v1823_v27  ;;  %v2590_v56 = vld [vmem:[%s3207_s14 + $0x40] sm:$0xe]  ;;  %s2631_s14 = sshll.u32 %s3768_s16, 6 }
  0x86   : > { %2828 = vmatpush3.bf16.msra.mxu1 %v3116_v15  ;;  %2923 = vmatprep.subr.bf16.mxu0 %v3117_v12  ;;  %v3128_v15 = vld [vmem:[%s3759_s1 + $0x230] sm:$0xff]   ;;  %v2598_v18 = vrot.slane %v2590_v56, 9  ;;  %s3729_s28 = scalar_lea.vmem %s3761_s3, %s2631_s14  ;;  %s3739_s6 = scalar_lea.vmem %s3762_s4, %s2631_s14 }
  0x87   : > { %2957 = vmatprep.subr.bf16.mxu1 %v3120_v11  ;;  %v2209_v63 = vld [vmem:[%s3729_s28 + $0x30] sm:$0xff]  ;;  %v2207_v52 = vld [vmem:[%s3729_s28 + $0x20] sm:$0xff]  ;;  %v2208_v7 = vld [vmem:[%s3729_s28 + $0x28] sm:$0xff] }
  0x88   : > { %v2029_v1 = vsel %vm3426_vm5, %v2598_v18, %v2028_v14  ;;  %v2205_v24 = vld [vmem:[%s3729_s28 + $0x10] sm:$0xff]  ;;  %v2206_v54 = vld [vmem:[%s3729_s28 + $0x18] sm:$0xff]  ;;  %v2204_v22 = vld [vmem:[%s3729_s28 + $0x8] sm:$0xff] }
  0x89   : > { %2830 = vmatmul.mubr.bf16.vlgmr.msra.gmra.mrb[0].mxu1 %v3119_v35  ;;  %2924 = vmatpush3.bf16.msra.mxu0 %v3117_v12  ;;  %v2013_v12 = vsel %vm3426_vm5, %v2594_v60, %v2012_v25 }
  0x8a   : > { %2965 = vmatpush3.bf16.msra.mxu1 %v3120_v11  ;;  %2833 = vmatprep.mubr.bf16.mxu1 %v3122_v39  ;;  %v2617_v33 = vcombine.low %v2013_v12, %v2017_v21 }
  0x8b   : > { %2958 = vmatprep.subr.bf16.mxu1 %v3121_v43  ;;  %2933 = vmatprep.subr.bf16.mxu0 %v3120_v11 }
  0x8c   : > { %2926 = vmatmul.mubr.bf16.vlgmr.msra.gmra.mrb[0].mxu0 %v2573_v29 }
  0x8d   : > { %2934 = vmatpush3.bf16.msra.mxu0 %v3120_v11  ;;  %2929 = vmatprep.mubr.bf16.mxu0 %v2574_v13  ;;  %v2619_v11 = vcombine.low %v2029_v1, %v2033_v23 }
  0x8e   : > { %2966 = vmatpush3.bf16.msra.mxu1 %v3121_v43  ;;  %2935 = vmatprep.subr.bf16.mxu0 %v3121_v43 }
  0x8f   : > { %2959 = vmatprep.subr.bf16.mxu1 %v3124_v58 }
  0x91   : > { %2834 = vmatmul.mubr.bf16.gmra.mrb[4].mxu1 %v3123_v59  ;;  %2936 = vmatpush3.bf16.msra.mxu0 %v3121_v43 }
  0x92   : > { %2967 = vmatpush3.bf16.msra.mxu1 %v3124_v58  ;;  %2953 = vmatprep.mubr.bf16.mxu1 %v2618_v34 }
  0x93   : > { %2960 = vmatprep.subr.bf16.mxu1 %v3125_v16  ;;  %2937 = vmatprep.subr.bf16.mxu0 %v3124_v58 }
  0x94   : > { %2930 = vmatmul.mubr.bf16.gmra.mrb[4].mxu0 %v2575_v46 }
  0x95   : > { %2938 = vmatpush3.bf16.msra.mxu0 %v3124_v58  ;;  %2949 = vmatprep.mubr.bf16.mxu0 %v2616_v50  ;;  %v2210_v58 = vld [vmem:[%s3729_s28 + $0x38] sm:$0xff] }
  0x96   : > { %2968 = vmatpush3.bf16.msra.mxu1 %v3125_v16  ;;  %2939 = vmatprep.subr.bf16.mxu0 %v3125_v16 }
  0x97   : > { %2961 = vmatprep.subr.bf16.mxu1 %v3126_v38 }
  0x99   : > { %2940 = vmatpush3.bf16.msra.mxu0 %v3125_v16 }
  0x9a   : > { %2969 = vmatpush3.bf16.msra.mxu1 %v3126_v38  ;;  %2941 = vmatprep.subr.bf16.mxu0 %v3126_v38 }
  0x9b   : > { %2962 = vmatprep.subr.bf16.mxu1 %v3127_v6 }
  0x9d   : > { %2942 = vmatpush3.bf16.msra.mxu0 %v3126_v38 }
  0x9e   : > { %2970 = vmatpush3.bf16.msra.mxu1 %v3127_v6  ;;  %2943 = vmatprep.subr.bf16.mxu0 %v3127_v6 }
  0x9f   : > { %2963 = vmatprep.subr.bf16.mxu1 %v3128_v15 }
  0xa1   : > { %2944 = vmatpush3.bf16.msra.mxu0 %v3127_v6  ;;  %v2203_v6 = vld [vmem:[%s3729_s28] sm:$0xff] }
  0xa2   : > { %2971 = vmatpush3.bf16.msra.mxu1 %v3128_v15  ;;  %2945 = vmatprep.subr.bf16.mxu0 %v3128_v15 }
  0xa3   : > { %2964 = vmatprep.subr.bf16.mxu1 %v3129_v20 }
  0xa5   : > { %2946 = vmatpush3.bf16.msra.mxu0 %v3128_v15 }
  0xa6   : > { %2972 = vmatpush3.bf16.msra.mxu1 %v3129_v20  ;;  %2947 = vmatprep.subr.bf16.mxu0 %v3129_v20 }
  0xa9   : > { %2954 = vmatmul.mubr.bf16.vlgmr.msra.gmra.mrb[8].mxu1 %v2619_v11  ;;  %2948 = vmatpush3.bf16.msra.mxu0 %v3129_v20 }
  0xac   : > { %2950 = vmatmul.mubr.bf16.vlgmr.msra.gmra.mrb[0].mxu0 %v2617_v33 }
 0x15c   : > { %v2831_v35 = vpop.f32.mrb[0].mxu1 }
 0x15d   : > { %v994_v51 = vpop.f32.mrb[1].mxu1 }
 0x15e   : > { %v2832_v31 = vpop.f32.mrb[2].mxu1 }
 0x15f   : > { %v997_v2 = vpop.f32.mrb[3].mxu1 }
 0x164   : > { %v2835_v57 = vpop.f32.mrb[4].mxu1 }
 0x165   : > { %v1010_v36 = vpop.f32.mrb[5].mxu1 }
 0x166   : > { %v2836_v37 = vpop.f32.mrb[6].mxu1 }
 0x167   : > { %v1013_v39 = vpop.f32.mrb[7].mxu1  ;;  %v2931_v40 = vpop.f32.mrb[4].mxu0 }
 0x168   : > { %v2977_v41 = vadd.f32 %v2931_v40, %v2835_v57  ;;  %v1955_v42 = vpop.f32.mrb[5].mxu0 }
 0x169   : > { %v2979_v30 = vadd.f32 %v1955_v42, %v1010_v36  ;;  %v2932_v8 = vpop.f32.mrb[6].mxu0 }
 0x16a   : > { %v2981_v43 = vadd.f32 %v2932_v8, %v2836_v37  ;;  %v1958_v0 = vpop.f32.mrb[7].mxu0 }
 0x16b   : > { %v2983_v55 = vadd.f32 %v1958_v0, %v1013_v39 }
 0x17c   : > { %v2955_v45 = vpop.f32.mrb[8].mxu1 }
 0x17d   : > { %v2978_v29 = vadd.f32 %v2977_v41, %v2955_v45  ;;  %v2165_v13 = vpop.f32.mrb[9].mxu1 }
 0x17e   : > { %v2980_v48 = vadd.f32 %v2979_v30, %v2165_v13  ;;  %v2956_v49 = vpop.f32.mrb[10].mxu1 }
 0x17f   : > { %v2201_v53 = vadd.f32 %v2978_v29, %v2628_v44  ;;  %v2982_v26 = vadd.f32 %v2981_v43, %v2956_v49  ;;  %v2168_v47 = vpop.f32.mrb[11].mxu1  ;;  %v2951_v3 = vpop.f32.mrb[0].mxu0 }
 0x180   : > { %v2199_v62 = vadd.f32 %v2980_v48, %v2628_v44  ;;  %v2984_v59 = vadd.f32 %v2983_v55, %v2168_v47  ;;  %v2973_v34 = vadd.f32 %v2951_v3, %v2831_v35  ;;  %v2149_v17 = vpop.f32.mrb[1].mxu0 }
 0x181   : > { %v2217_v4 = vadd.f32 %v2209_v63, %v2201_v53  ;;  %v2202_v5 = vadd.f32 %v2982_v26, %v2628_v44  ;;  %v2974_v61 = vadd.f32 %v2149_v17, %v994_v51  ;;  %v2952_v46 = vpop.f32.mrb[2].mxu0 }
 0x182   : > { %v2215_v27 = vadd.f32 %v2207_v52, %v2199_v62  ;;  %v2200_v16 = vadd.f32 %v2984_v59, %v2628_v44  ;;  %v2197_v50 = vadd.f32 %v2973_v34, %v2628_v44  ;;  %v2975_v15 = vadd.f32 %v2952_v46, %v2832_v31  ;;  %v2152_v56 = vpop.f32.mrb[3].mxu0 }
 0x183   : > { %2225 = vst [vmem:[%s3739_s6 + $0x30] sm:$0xff] %v2217_v4  ;;  %v2218_v38 = vadd.f32 %v2210_v58, %v2202_v5  ;;  %v2195_v14 = vadd.f32 %v2974_v61, %v2628_v44  ;;  %v2976_v18 = vadd.f32 %v2152_v56, %v997_v2 }
 0x184   : > { %2223 = vst [vmem:[%s3739_s6 + $0x20] sm:$0xff] %v2215_v27  ;;  %v2216_v10 = vadd.f32 %v2208_v7, %v2200_v16  ;;  %v2213_v19 = vadd.f32 %v2205_v24, %v2197_v50  ;;  %v2198_v20 = vadd.f32 %v2975_v15, %v2628_v44 }
 0x185   : > { %2226 = vst [vmem:[%s3739_s6 + $0x38] sm:$0xff] %v2218_v38  ;;  %v2211_v9 = vadd.f32 %v2203_v6, %v2195_v14  ;;  %v2196_v1 = vadd.f32 %v2976_v18, %v2628_v44 }
 0x186   : > { %2224 = vst [vmem:[%s3739_s6 + $0x28] sm:$0xff] %v2216_v10  ;;  %2221 = vst [vmem:[%s3739_s6 + $0x10] sm:$0xff] %v2213_v19  ;;  %v2214_v23 = vadd.f32 %v2206_v54, %v2198_v20 }
 0x187   : > { %2219 = vst [vmem:[%s3739_s6] sm:$0xff] %v2211_v9  ;;  %v2212_v60 = vadd.f32 %v2204_v22, %v2196_v1 }
 0x188   : > { %2222 = vst [vmem:[%s3739_s6 + $0x18] sm:$0xff] %v2214_v23 }
 0x189   : > { %2220 = vst [vmem:[%s3739_s6 + $0x8] sm:$0xff] %v2212_v60 }
 0x18a PF: > { %s14_s15 = sadd.s32 1, %s3136_s15  }
 0x18b   : > { %p11_p4 = scmp.ge.s32.totalorder %s14_s15, 4  }
 0x18d   :  { %13 = sbr.rel (!%p11_p4) target bundleno = 1 (0x1), region = 79 }

</bundles_post_ra>
